<compile_context>
chip_gen: v5e
topology: v5e:2x2
jax: 0.10.0
libtpu: 0.0.40
codegen_flags: <defaults>
</compile_context>

<pallas_src>
import functools
import numpy as np
import jax
import jax.numpy as jnp
from jax import lax
from jax.experimental import pallas as pl
from jax.experimental.pallas import tpu as pltpu

LN_EPS = 1e-5   # torch.nn.LayerNorm default eps
SA_EPS = 1e-8   # SlotAttentionMod eps


def _layernorm(x, gamma, beta):
    mu = jnp.mean(x, axis=-1, keepdims=True)
    var = jnp.mean((x - mu) ** 2, axis=-1, keepdims=True)
    return (x - mu) * lax.rsqrt(var + LN_EPS) * gamma + beta


def _sigmoid(x):
    # manual logistic: exp (EUP) + reciprocal; guaranteed Mosaic lowering
    return pl.reciprocal(1.0 + jnp.exp(-x))


# ---------------------------------------------------------------------------
# Fused kernel: one grid step == one batch element == the FULL iterate() loop.
# ---------------------------------------------------------------------------
def _fused_kernel(iters, scale, lora_mul, rank,
                  x_ref, cond_ref, ni_ref, wk_ref, wv_ref, wq_ref, lnsl_ref,
                  wih_ref, whh_ref, bgru_ref,
                  w1_ref, b1_ref, w2_ref, b2_ref,
                  cbt_ref, cn2_ref, cb_ref,
                  a1f_ref, b1f_ref, a2f_ref, b2f_ref,
                  slots_ref, attn_ref, idx_ref, commit_ref):
    f32 = jnp.float32
    E = cbt_ref.shape[1]

    # --- per-batch invariants: norm_input -> k, v (paid once, reused iters x) ---
    ni = ni_ref[...]                                            # (2, Df): gamma, beta
    xn = _layernorm(x_ref[0], ni[0:1], ni[1:2])                 # (N, Df)
    k = jnp.dot(xn, wk_ref[...], preferred_element_type=f32)    # (N, D)
    v = jnp.dot(xn, wv_ref[...], preferred_element_type=f32)    # (N, D)

    lsl = lnsl_ref[...]                                         # (4, D)
    ns_g, ns_b, nf_g, nf_b = lsl[0:1], lsl[1:2], lsl[2:3], lsl[3:4]
    bg = bgru_ref[...]                                          # (4, D)
    b_r, b_z, bi_n, bh_n = bg[0:1], bg[1:2], bg[2:3], bg[3:4]
    w_ir, w_iz, w_in = wih_ref[0], wih_ref[1], wih_ref[2]       # (D, D) each
    w_hr, w_hz, w_hn = whh_ref[0], whh_ref[1], whh_ref[2]

    slots = cond_ref[0]                                         # (S, D), stays in vregs

    for it in range(iters):
        # ---- pool (nearest-neighbour VQ) + LoRA selection mask, for it >= 1 ----
        if it > 0:
            sc = jnp.dot(slots, cbt_ref[...], preferred_element_type=f32)   # (S, E)
            d2 = cn2_ref[...] - 2.0 * sc           # argmin_e ||s-c_e||^2 (s-term const)
            dmin = jnp.min(d2, axis=-1, keepdims=True)
            eiota = lax.broadcasted_iota(jnp.int32, d2.shape, 1)            # (S, E)
            idxf = jnp.min(jnp.where(d2 <= dmin, eiota.astype(f32), float(E)),
                           axis=-1, keepdims=True)              # first argmin
            idx = idxf.astype(jnp.int32)                        # (S, 1)
            riota = lax.broadcasted_iota(jnp.int32, (d2.shape[0], E * rank), 1)
            sel = jnp.logical_and(riota >= idx * rank,
                                  riota < (idx + 1) * rank).astype(f32)     # (S, E*r)
            if it == iters - 1:
                # only the last get_logit()'s indices / commit are returned
                onehot = (eiota == idx).astype(f32)                         # (S, E)
                quant = jnp.dot(onehot, cb_ref[...], preferred_element_type=f32)
                diff = slots - quant
                sse = jnp.sum(jnp.sum(diff * diff, axis=-1, keepdims=True),
                              axis=0, keepdims=True)                        # (1, 1)
                idx_ref[0] = idx
                commit_ref[0] = sse

        # ---- slot attention step ----
        slots_prev = slots
        sn = _layernorm(slots_prev, ns_g, ns_b)
        q = jnp.dot(sn, wq_ref[...], preferred_element_type=f32)            # (S, D)
        dots = lax.dot_general(q, k, (((1,), (1,)), ((), ())),
                               preferred_element_type=f32) * scale          # (S, N)
        # torch: dots.flatten(1,2).softmax(dim=1)  == softmax over slot axis
        m = jnp.max(dots, axis=0, keepdims=True)
        p = jnp.exp(dots - m)
        attn_bw = p * pl.reciprocal(jnp.sum(p, axis=0, keepdims=True))
        if it == iters - 1:
            attn_ref[0] = attn_bw                # attn_before_reweighting.mean(dim=2)
        a = attn_bw + SA_EPS
        a = a * pl.reciprocal(jnp.sum(a, axis=-1, keepdims=True))
        upd = jnp.dot(a, v, preferred_element_type=f32)                     # (S, D)

        # ---- GRUCell(updates, slots_prev); gate order r, z, n ----
        r_g = _sigmoid(jnp.dot(upd, w_ir, preferred_element_type=f32)
                       + jnp.dot(slots_prev, w_hr, preferred_element_type=f32) + b_r)
        z_g = _sigmoid(jnp.dot(upd, w_iz, preferred_element_type=f32)
                       + jnp.dot(slots_prev, w_hz, preferred_element_type=f32) + b_z)
        gi_n = jnp.dot(upd, w_in, preferred_element_type=f32) + bi_n
        gh_n = jnp.dot(slots_prev, w_hn, preferred_element_type=f32) + bh_n
        n_g = jnp.tanh(gi_n + r_g * gh_n)
        sgru = (1.0 - z_g) * n_g + z_g * slots_prev                         # (S, D)

        # ---- norm_slots_ff_mlp + ff MLP (+ rank-r AdaLoRA via masked matmul) ----
        xff = _layernorm(sgru, nf_g, nf_b)
        h1 = jnp.dot(xff, w1_ref[...], preferred_element_type=f32) + b1_ref[...]
        if it > 0:
            z1 = jnp.dot(xff, a1f_ref[...], preferred_element_type=f32)     # (S, E*r)
            h1 = h1 + jnp.dot(z1 * sel, b1f_ref[...],
                              preferred_element_type=f32) * lora_mul
        h1 = jnp.maximum(h1, 0.0)
        out = jnp.dot(h1, w2_ref[...], preferred_element_type=f32) + b2_ref[...]
        if it > 0:
            z2 = jnp.dot(h1, a2f_ref[...], preferred_element_type=f32)      # (S, E*r)
            out = out + jnp.dot(z2 * sel, b2f_ref[...],
                                preferred_element_type=f32) * lora_mul
        slots = out + sgru                                                   # residual

    slots_ref[0] = slots


def _rep_spec(arr):
    # weight / table replicated across the batch grid (block == full array)
    if arr.ndim == 2:
        return pl.BlockSpec(arr.shape, lambda b: (0, 0))
    return pl.BlockSpec(arr.shape, lambda b: (0, 0, 0))


def slot_attention_mod_forward(inputs, conditioning, params, iters=3):
    # TODO(synk): masks path (masked_fill with -inf over slots) not implemented;
    # the forward is exercised with masks=None, as the module signature allows.
    assert iters >= 2, "indices/commit are only defined for iters >= 2 (as in torch)"
    B, N, Df = inputs.shape
    S = conditioning.shape[1]
    D = params["wq"].shape[0]
    H = params["w1"].shape[1]
    E = params["codebook"].shape[0]
    rank = int(params["rank"])
    scale = float(D) ** -0.5                       # dims_per_head ** -0.5, n_heads == 1
    lora_mul = float(params["lora_scale"]) / float(rank)

    # ---- one-time parameter repacking (cheap XLA ops, outside the kernel) ----
    ni = jnp.stack([params["ni_g"], params["ni_b"]])                        # (2, Df)
    lnsl = jnp.stack([params["ns_g"], params["ns_b"],
                      params["nf_g"], params["nf_b"]])                      # (4, D)
    wih, whh = params["gru_wih"], params["gru_whh"]
    wih3 = jnp.stack([wih[:, :D], wih[:, D:2 * D], wih[:, 2 * D:]])         # (3, D, D)
    whh3 = jnp.stack([whh[:, :D], whh[:, D:2 * D], whh[:, 2 * D:]])
    bih, bhh = params["gru_bih"], params["gru_bhh"]
    bgru = jnp.stack([bih[:D] + bhh[:D], bih[D:2 * D] + bhh[D:2 * D],
                      bih[2 * D:], bhh[2 * D:]])                            # (4, D)
    cb = params["codebook"]                                                 # (E, D)
    cbt = cb.T                                                              # (D, E)
    cn2 = jnp.sum(cb * cb, axis=-1).reshape(1, E)
    a1f = jnp.transpose(params["A1"], (1, 0, 2)).reshape(D, E * rank)       # (D, E*r)
    b1f = params["B1"].reshape(E * rank, H)                                 # (E*r, H)
    a2f = jnp.transpose(params["A2"], (1, 0, 2)).reshape(H, E * rank)       # (H, E*r)
    b2f = params["B2"].reshape(E * rank, D)                                 # (E*r, D)
    b1 = params["b1"].reshape(1, H)
    b2 = params["b2"].reshape(1, D)

    weights = (ni, params["wk"], params["wv"], params["wq"], lnsl,
               wih3, whh3, bgru,
               params["w1"], b1, params["w2"], b2,
               cbt, cn2, cb, a1f, b1f, a2f, b2f)

    kern = functools.partial(_fused_kernel, iters, scale, lora_mul, rank)

    slots, attn, idx3, commit_b = pl.pallas_call(
        kern,
        out_shape=(jax.ShapeDtypeStruct((B, S, D), jnp.float32),
                   jax.ShapeDtypeStruct((B, S, N), jnp.float32),
                   jax.ShapeDtypeStruct((B, S, 1), jnp.int32),
                   jax.ShapeDtypeStruct((B, 1, 1), jnp.float32)),
        grid=(B,),
        in_specs=[pl.BlockSpec((1, N, Df), lambda b: (b, 0, 0)),
                  pl.BlockSpec((1, S, D), lambda b: (b, 0, 0))]
                 + [_rep_spec(w) for w in weights],
        out_specs=(pl.BlockSpec((1, S, D), lambda b: (b, 0, 0)),
                   pl.BlockSpec((1, S, N), lambda b: (b, 0, 0)),
                   pl.BlockSpec((1, S, 1), lambda b: (b, 0, 0)),
                   pl.BlockSpec((1, 1, 1), lambda b: (b, 0, 0))),
        compiler_params=pltpu.CompilerParams(
            dimension_semantics=("parallel",)),    # v7x: one batch per TensorCore
    )(inputs, conditioning, *weights)

    indices = idx3[..., 0]                                    # (B, S) int32
    commit = jnp.sum(commit_b) / float(B * S * D)             # mean over B,S,D
    logit = indices                                           # get_logit, use_gumbel=False
    return slots, attn, indices, commit, logit


# ---------------------------------------------------------------------------
# Pure-JAX reference of the same forward (for the correctness check only).
# ---------------------------------------------------------------------------
def vq_pool(slots, codebook):
    d2 = jnp.sum((slots[:, :, None, :] - codebook[None, None]) ** 2, axis=-1)
    indices = jnp.argmin(d2, axis=-1)                     # (B, S)
    quant = codebook[indices]
    commit = jnp.mean((slots - quant) ** 2)
    return quant, indices, commit


def ada_lora(x, indices, A, B, scale, rank):
    Ai = A[indices]                                       # (B, S, Din, r)
    Bi = B[indices]                                       # (B, S, r, Dout)
    y = jnp.einsum("bsd,bsdr->bsr", x, Ai)
    y = jnp.einsum("bsr,bsro->bso", y, Bi)
    return y * (scale / rank)


def reference_forward(inputs, conditioning, p, iters=3):
    D = p["wq"].shape[0]
    scale = float(D) ** -0.5
    xn = _layernorm(inputs, p["ni_g"], p["ni_b"])
    k = xn @ p["wk"]
    v = xn @ p["wv"]
    slots = conditioning
    indices = commit = logit = attn = None
    for it in range(iters):
        if it == 0:
            logit = None
        else:
            _, indices, commit = vq_pool(slots, p["codebook"])
            logit = indices
        slots_prev = slots
        sn = _layernorm(slots, p["ns_g"], p["ns_b"])
        q = sn @ p["wq"]
        dots = jnp.einsum("bid,bjd->bij", q, k) * scale
        attn_bw = jax.nn.softmax(dots, axis=1)
        attn = attn_bw
        a = attn_bw + SA_EPS
        a = a / jnp.sum(a, axis=-1, keepdims=True)
        upd = jnp.einsum("bij,bjd->bid", a, v)
        gi = upd @ p["gru_wih"] + p["gru_bih"]
        gh = slots_prev @ p["gru_whh"] + p["gru_bhh"]
        r = jax.nn.sigmoid(gi[..., :D] + gh[..., :D])
        z = jax.nn.sigmoid(gi[..., D:2 * D] + gh[..., D:2 * D])
        n = jnp.tanh(gi[..., 2 * D:] + r * gh[..., 2 * D:])
        sg = (1.0 - z) * n + z * slots_prev
        xff = _layernorm(sg, p["nf_g"], p["nf_b"])
        if logit is None:
            d1 = 0.0
        else:
            d1 = ada_lora(xff, indices, p["A1"], p["B1"], p["lora_scale"], p["rank"])
        h = jnp.maximum(xff @ p["w1"] + p["b1"] + d1, 0.0)
        out = h @ p["w2"] + p["b2"]
        if logit is not None:
            out = out + ada_lora(h, indices, p["A2"], p["B2"],
                                 p["lora_scale"], p["rank"])
        slots = out + sg
    return slots, attn, indices, commit, logit


def init_params(key, dim, feature_dim, num_entries, rank, lora_scale):
    ks = jax.random.split(key, 16)
    D, Df, H = dim, feature_dim, 4 * dim

    def lin(k, fan_in, shape):
        return jax.random.normal(k, shape, jnp.float32) / np.sqrt(fan_in)

    return dict(
        wq=lin(ks[0], D, (D, D)),
        wk=lin(ks[1], Df, (Df, D)),
        wv=lin(ks[2], Df, (Df, D)),
        gru_wih=lin(ks[3], D, (D, 3 * D)),
        gru_whh=lin(ks[4], D, (D, 3 * D)),
        gru_bih=0.01 * jax.random.normal(ks[5], (3 * D,), jnp.float32),
        gru_bhh=0.01 * jax.random.normal(ks[6], (3 * D,), jnp.float32),
        ni_g=jnp.ones((Df,), jnp.float32), ni_b=jnp.zeros((Df,), jnp.float32),
        ns_g=jnp.ones((D,), jnp.float32), ns_b=jnp.zeros((D,), jnp.float32),
        nf_g=jnp.ones((D,), jnp.float32), nf_b=jnp.zeros((D,), jnp.float32),
        w1=lin(ks[7], D, (D, H)),
        b1=0.01 * jax.random.normal(ks[8], (H,), jnp.float32),
        w2=lin(ks[9], H, (H, D)),
        b2=0.01 * jax.random.normal(ks[10], (D,), jnp.float32),
        codebook=jax.random.normal(ks[11], (num_entries, D), jnp.float32),
        A1=0.1 * jax.random.normal(ks[12], (num_entries, D, rank), jnp.float32),
        B1=0.1 * jax.random.normal(ks[13], (num_entries, rank, H), jnp.float32),
        A2=0.1 * jax.random.normal(ks[14], (num_entries, H, rank), jnp.float32),
        B2=0.1 * jax.random.normal(ks[15], (num_entries, rank, D), jnp.float32),
        lora_scale=float(lora_scale), rank=rank,
    )


if __name__ == "__main__":
    B, N, S = 2, 16, 8
    dim, feature_dim = 32, 48
    num_entries, rank, lora_scale, iters = 16, 8, 8, 3

    key = jax.random.PRNGKey(0)
    k_in, k_cond, k_par = jax.random.split(key, 3)
    inputs = jax.random.normal(k_in, (B, N, feature_dim), jnp.float32)
    conditioning = jax.random.normal(k_cond, (B, S, dim), jnp.float32)
    params = init_params(k_par, dim, feature_dim, num_entries, rank, lora_scale)

    # jit the wrapper so the (tiny) parameter repacking + post-ops fuse into one
    # XLA program around the single pallas_call.
    fwd = jax.jit(lambda x, c: slot_attention_mod_forward(x, c, params, iters=iters))
    slots, attn, indices, commit, logit = fwd(inputs, conditioning)
    jax.block_until_ready((slots, attn, indices, commit))

    r_slots, r_attn, r_idx, r_commit, _ = reference_forward(
        inputs, conditioning, params, iters=iters)
    np.testing.assert_allclose(np.asarray(slots), np.asarray(r_slots),
                               atol=1e-2, rtol=1e-2)
    np.testing.assert_allclose(np.asarray(attn), np.asarray(r_attn),
                               atol=1e-2, rtol=1e-2)
    np.testing.assert_allclose(np.asarray(commit), np.asarray(r_commit),
                               atol=1e-2, rtol=1e-2)
    print("KERNEL_OK")
</pallas_src>

<mosaic_0001>
module attributes {stable_mosaic.version = 11 : i64} {
  func.func @_fused_kernel(%arg0: i32, %arg1: memref<1x16x48xf32, #tpu.memory_space<vmem>>, %arg2: memref<1x8x32xf32, #tpu.memory_space<vmem>>, %arg3: memref<2x48xf32, #tpu.memory_space<vmem>>, %arg4: memref<48x32xf32, #tpu.memory_space<vmem>>, %arg5: memref<48x32xf32, #tpu.memory_space<vmem>>, %arg6: memref<32x32xf32, #tpu.memory_space<vmem>>, %arg7: memref<4x32xf32, #tpu.memory_space<vmem>>, %arg8: memref<3x32x32xf32, #tpu.memory_space<vmem>>, %arg9: memref<3x32x32xf32, #tpu.memory_space<vmem>>, %arg10: memref<4x32xf32, #tpu.memory_space<vmem>>, %arg11: memref<32x128xf32, #tpu.memory_space<vmem>>, %arg12: memref<1x128xf32, #tpu.memory_space<vmem>>, %arg13: memref<128x32xf32, #tpu.memory_space<vmem>>, %arg14: memref<1x32xf32, #tpu.memory_space<vmem>>, %arg15: memref<32x16xf32, #tpu.memory_space<vmem>>, %arg16: memref<1x16xf32, #tpu.memory_space<vmem>>, %arg17: memref<16x32xf32, #tpu.memory_space<vmem>>, %arg18: memref<32x128xf32, #tpu.memory_space<vmem>>, %arg19: memref<128x128xf32, #tpu.memory_space<vmem>>, %arg20: memref<128x128xf32, #tpu.memory_space<vmem>>, %arg21: memref<128x32xf32, #tpu.memory_space<vmem>>, %arg22: memref<1x8x32xf32, #tpu.memory_space<vmem>>, %arg23: memref<1x8x16xf32, #tpu.memory_space<vmem>>, %arg24: memref<1x8x1xi32, #tpu.memory_space<vmem>>, %arg25: memref<1x1x1xf32, #tpu.memory_space<vmem>>) attributes {dimension_semantics = [#tpu.dimension_semantics<parallel>], iteration_bounds = array<i64: 2>, scalar_prefetch = 0 : i64, scratch_operands = 0 : i64, tpu.core_type = #tpu.core_type<tc>, window_params = [{transform_indices = @transform_0, window_bounds = array<i64: 1, 16, 48>}, {transform_indices = @transform_1, window_bounds = array<i64: 1, 8, 32>}, {pipeline_mode = #tpu.pipeline_mode<synchronous>, transform_indices = @transform_2, window_bounds = array<i64: 2, 48>}, {pipeline_mode = #tpu.pipeline_mode<synchronous>, transform_indices = @transform_3, window_bounds = array<i64: 48, 32>}, {pipeline_mode = #tpu.pipeline_mode<synchronous>, transform_indices = @transform_4, window_bounds = array<i64: 48, 32>}, {pipeline_mode = #tpu.pipeline_mode<synchronous>, transform_indices = @transform_5, window_bounds = array<i64: 32, 32>}, {pipeline_mode = #tpu.pipeline_mode<synchronous>, transform_indices = @transform_6, window_bounds = array<i64: 4, 32>}, {pipeline_mode = #tpu.pipeline_mode<synchronous>, transform_indices = @transform_7, window_bounds = array<i64: 3, 32, 32>}, {pipeline_mode = #tpu.pipeline_mode<synchronous>, transform_indices = @transform_8, window_bounds = array<i64: 3, 32, 32>}, {pipeline_mode = #tpu.pipeline_mode<synchronous>, transform_indices = @transform_9, window_bounds = array<i64: 4, 32>}, {pipeline_mode = #tpu.pipeline_mode<synchronous>, transform_indices = @transform_10, window_bounds = array<i64: 32, 128>}, {pipeline_mode = #tpu.pipeline_mode<synchronous>, transform_indices = @transform_11, window_bounds = array<i64: 1, 128>}, {pipeline_mode = #tpu.pipeline_mode<synchronous>, transform_indices = @transform_12, window_bounds = array<i64: 128, 32>}, {pipeline_mode = #tpu.pipeline_mode<synchronous>, transform_indices = @transform_13, window_bounds = array<i64: 1, 32>}, {pipeline_mode = #tpu.pipeline_mode<synchronous>, transform_indices = @transform_14, window_bounds = array<i64: 32, 16>}, {pipeline_mode = #tpu.pipeline_mode<synchronous>, transform_indices = @transform_15, window_bounds = array<i64: 1, 16>}, {pipeline_mode = #tpu.pipeline_mode<synchronous>, transform_indices = @transform_16, window_bounds = array<i64: 16, 32>}, {pipeline_mode = #tpu.pipeline_mode<synchronous>, transform_indices = @transform_17, window_bounds = array<i64: 32, 128>}, {pipeline_mode = #tpu.pipeline_mode<synchronous>, transform_indices = @transform_18, window_bounds = array<i64: 128, 128>}, {pipeline_mode = #tpu.pipeline_mode<synchronous>, transform_indices = @transform_19, window_bounds = array<i64: 128, 128>}, {pipeline_mode = #tpu.pipeline_mode<synchronous>, transform_indices = @transform_20, window_bounds = array<i64: 128, 32>}, {transform_indices = @transform_21, window_bounds = array<i64: 1, 8, 32>}, {transform_indices = @transform_22, window_bounds = array<i64: 1, 8, 16>}, {transform_indices = @transform_23, window_bounds = array<i64: 1, 8, 1>}, {transform_indices = @transform_24, window_bounds = array<i64: 1, 1, 1>}]} {
    %c0 = arith.constant 0 : index
    %c0_0 = arith.constant 0 : index
    %0 = vector.load %arg3[%c0, %c0_0] : memref<2x48xf32, #tpu.memory_space<vmem>>, vector<2x48xf32>
    %c0_1 = arith.constant 0 : index
    %c0_2 = arith.constant 0 : index
    %c0_3 = arith.constant 0 : index
    %1 = vector.load %arg1[%c0_1, %c0_2, %c0_3] : memref<1x16x48xf32, #tpu.memory_space<vmem>>, vector<1x16x48xf32>
    %2 = vector.shape_cast %1 : vector<1x16x48xf32> to vector<16x48xf32>
    %3 = vector.extract_strided_slice %0 {offsets = [0, 0], sizes = [1, 48], strides = [1, 1]} : vector<2x48xf32> to vector<1x48xf32>
    %4 = vector.extract_strided_slice %0 {offsets = [1, 0], sizes = [1, 48], strides = [1, 1]} : vector<2x48xf32> to vector<1x48xf32>
    %cst = arith.constant dense<0.000000e+00> : vector<16xf32>
    %5 = vector.multi_reduction <add>, %2, %cst [1] : vector<16x48xf32> to vector<16xf32>
    %6 = vector.shape_cast %5 : vector<16xf32> to vector<16x1xf32>
    %cst_4 = arith.constant 4.800000e+01 : f32
    %7 = vector.broadcast %cst_4 : f32 to vector<16x1xf32>
    %8 = arith.divf %6, %7 : vector<16x1xf32>
    %9 = vector.broadcast %8 : vector<16x1xf32> to vector<16x48xf32>
    %10 = arith.subf %2, %9 : vector<16x48xf32>
    %11 = arith.mulf %10, %10 : vector<16x48xf32>
    %cst_5 = arith.constant dense<0.000000e+00> : vector<16xf32>
    %12 = vector.multi_reduction <add>, %11, %cst_5 [1] : vector<16x48xf32> to vector<16xf32>
    %13 = vector.shape_cast %12 : vector<16xf32> to vector<16x1xf32>
    %cst_6 = arith.constant 4.800000e+01 : f32
    %14 = vector.broadcast %cst_6 : f32 to vector<16x1xf32>
    %15 = arith.divf %13, %14 : vector<16x1xf32>
    %16 = vector.broadcast %8 : vector<16x1xf32> to vector<16x48xf32>
    %17 = arith.subf %2, %16 : vector<16x48xf32>
    %cst_7 = arith.constant 9.99999974E-6 : f32
    %18 = vector.broadcast %cst_7 : f32 to vector<16x1xf32>
    %19 = arith.addf %15, %18 : vector<16x1xf32>
    %20 = math.rsqrt %19 : vector<16x1xf32>
    %21 = vector.broadcast %20 : vector<16x1xf32> to vector<16x48xf32>
    %22 = arith.mulf %17, %21 : vector<16x48xf32>
    %23 = vector.broadcast %3 : vector<1x48xf32> to vector<16x48xf32>
    %24 = arith.mulf %22, %23 : vector<16x48xf32>
    %25 = vector.broadcast %4 : vector<1x48xf32> to vector<16x48xf32>
    %26 = arith.addf %24, %25 : vector<16x48xf32>
    %c0_8 = arith.constant 0 : index
    %c0_9 = arith.constant 0 : index
    %27 = vector.load %arg4[%c0_8, %c0_9] : memref<48x32xf32, #tpu.memory_space<vmem>>, vector<48x32xf32>
    %cst_10 = arith.constant dense<0.000000e+00> : vector<16x32xf32>
    %28 = tpu.matmul %26, %27, %cst_10 {dimension_numbers = #tpu.dot_dimension_numbers<[1], [0], [0], [1], [0, 0, 1, 1], [], []>} : vector<16x48xf32>, vector<48x32xf32>, vector<16x32xf32> -> vector<16x32xf32>
    %c0_11 = arith.constant 0 : index
    %c0_12 = arith.constant 0 : index
    %29 = vector.load %arg5[%c0_11, %c0_12] : memref<48x32xf32, #tpu.memory_space<vmem>>, vector<48x32xf32>
    %cst_13 = arith.constant dense<0.000000e+00> : vector<16x32xf32>
    %30 = tpu.matmul %26, %29, %cst_13 {dimension_numbers = #tpu.dot_dimension_numbers<[1], [0], [0], [1], [0, 0, 1, 1], [], []>} : vector<16x48xf32>, vector<48x32xf32>, vector<16x32xf32> -> vector<16x32xf32>
    %c0_14 = arith.constant 0 : index
    %c0_15 = arith.constant 0 : index
    %31 = vector.load %arg7[%c0_14, %c0_15] : memref<4x32xf32, #tpu.memory_space<vmem>>, vector<4x32xf32>
    %32 = vector.extract_strided_slice %31 {offsets = [0, 0], sizes = [1, 32], strides = [1, 1]} : vector<4x32xf32> to vector<1x32xf32>
    %33 = vector.extract_strided_slice %31 {offsets = [1, 0], sizes = [1, 32], strides = [1, 1]} : vector<4x32xf32> to vector<1x32xf32>
    %34 = vector.extract_strided_slice %31 {offsets = [2, 0], sizes = [1, 32], strides = [1, 1]} : vector<4x32xf32> to vector<1x32xf32>
    %35 = vector.extract_strided_slice %31 {offsets = [3, 0], sizes = [1, 32], strides = [1, 1]} : vector<4x32xf32> to vector<1x32xf32>
    %c0_16 = arith.constant 0 : index
    %c0_17 = arith.constant 0 : index
    %36 = vector.load %arg10[%c0_16, %c0_17] : memref<4x32xf32, #tpu.memory_space<vmem>>, vector<4x32xf32>
    %37 = vector.extract_strided_slice %36 {offsets = [0, 0], sizes = [1, 32], strides = [1, 1]} : vector<4x32xf32> to vector<1x32xf32>
    %38 = vector.extract_strided_slice %36 {offsets = [1, 0], sizes = [1, 32], strides = [1, 1]} : vector<4x32xf32> to vector<1x32xf32>
    %39 = vector.extract_strided_slice %36 {offsets = [2, 0], sizes = [1, 32], strides = [1, 1]} : vector<4x32xf32> to vector<1x32xf32>
    %40 = vector.extract_strided_slice %36 {offsets = [3, 0], sizes = [1, 32], strides = [1, 1]} : vector<4x32xf32> to vector<1x32xf32>
    %c0_18 = arith.constant 0 : index
    %c0_19 = arith.constant 0 : index
    %c0_20 = arith.constant 0 : index
    %41 = vector.load %arg8[%c0_18, %c0_19, %c0_20] : memref<3x32x32xf32, #tpu.memory_space<vmem>>, vector<1x32x32xf32>
    %42 = vector.shape_cast %41 : vector<1x32x32xf32> to vector<32x32xf32>
    %c1 = arith.constant 1 : index
    %c0_21 = arith.constant 0 : index
    %c0_22 = arith.constant 0 : index
    %43 = vector.load %arg8[%c1, %c0_21, %c0_22] : memref<3x32x32xf32, #tpu.memory_space<vmem>>, vector<1x32x32xf32>
    %44 = vector.shape_cast %43 : vector<1x32x32xf32> to vector<32x32xf32>
    %c2 = arith.constant 2 : index
    %c0_23 = arith.constant 0 : index
    %c0_24 = arith.constant 0 : index
    %45 = vector.load %arg8[%c2, %c0_23, %c0_24] : memref<3x32x32xf32, #tpu.memory_space<vmem>>, vector<1x32x32xf32>
    %46 = vector.shape_cast %45 : vector<1x32x32xf32> to vector<32x32xf32>
    %c0_25 = arith.constant 0 : index
    %c0_26 = arith.constant 0 : index
    %c0_27 = arith.constant 0 : index
    %47 = vector.load %arg9[%c0_25, %c0_26, %c0_27] : memref<3x32x32xf32, #tpu.memory_space<vmem>>, vector<1x32x32xf32>
    %48 = vector.shape_cast %47 : vector<1x32x32xf32> to vector<32x32xf32>
    %c1_28 = arith.constant 1 : index
    %c0_29 = arith.constant 0 : index
    %c0_30 = arith.constant 0 : index
    %49 = vector.load %arg9[%c1_28, %c0_29, %c0_30] : memref<3x32x32xf32, #tpu.memory_space<vmem>>, vector<1x32x32xf32>
    %50 = vector.shape_cast %49 : vector<1x32x32xf32> to vector<32x32xf32>
    %c2_31 = arith.constant 2 : index
    %c0_32 = arith.constant 0 : index
    %c0_33 = arith.constant 0 : index
    %51 = vector.load %arg9[%c2_31, %c0_32, %c0_33] : memref<3x32x32xf32, #tpu.memory_space<vmem>>, vector<1x32x32xf32>
    %52 = vector.shape_cast %51 : vector<1x32x32xf32> to vector<32x32xf32>
    %c0_34 = arith.constant 0 : index
    %c0_35 = arith.constant 0 : index
    %c0_36 = arith.constant 0 : index
    %53 = vector.load %arg2[%c0_34, %c0_35, %c0_36] : memref<1x8x32xf32, #tpu.memory_space<vmem>>, vector<1x8x32xf32>
    %54 = vector.shape_cast %53 : vector<1x8x32xf32> to vector<8x32xf32>
    %cst_37 = arith.constant dense<0.000000e+00> : vector<8xf32>
    %55 = vector.multi_reduction <add>, %54, %cst_37 [1] : vector<8x32xf32> to vector<8xf32>
    %56 = vector.shape_cast %55 : vector<8xf32> to vector<8x1xf32>
    %cst_38 = arith.constant 3.200000e+01 : f32
    %57 = vector.broadcast %cst_38 : f32 to vector<8x1xf32>
    %58 = arith.divf %56, %57 : vector<8x1xf32>
    %59 = vector.broadcast %58 : vector<8x1xf32> to vector<8x32xf32>
    %60 = arith.subf %54, %59 : vector<8x32xf32>
    %61 = arith.mulf %60, %60 : vector<8x32xf32>
    %cst_39 = arith.constant dense<0.000000e+00> : vector<8xf32>
    %62 = vector.multi_reduction <add>, %61, %cst_39 [1] : vector<8x32xf32> to vector<8xf32>
    %63 = vector.shape_cast %62 : vector<8xf32> to vector<8x1xf32>
    %cst_40 = arith.constant 3.200000e+01 : f32
    %64 = vector.broadcast %cst_40 : f32 to vector<8x1xf32>
    %65 = arith.divf %63, %64 : vector<8x1xf32>
    %66 = vector.broadcast %58 : vector<8x1xf32> to vector<8x32xf32>
    %67 = arith.subf %54, %66 : vector<8x32xf32>
    %cst_41 = arith.constant 9.99999974E-6 : f32
    %68 = vector.broadcast %cst_41 : f32 to vector<8x1xf32>
    %69 = arith.addf %65, %68 : vector<8x1xf32>
    %70 = math.rsqrt %69 : vector<8x1xf32>
    %71 = vector.broadcast %70 : vector<8x1xf32> to vector<8x32xf32>
    %72 = arith.mulf %67, %71 : vector<8x32xf32>
    %73 = vector.broadcast %32 : vector<1x32xf32> to vector<8x32xf32>
    %74 = arith.mulf %72, %73 : vector<8x32xf32>
    %75 = vector.broadcast %33 : vector<1x32xf32> to vector<8x32xf32>
    %76 = arith.addf %74, %75 : vector<8x32xf32>
    %c0_42 = arith.constant 0 : index
    %c0_43 = arith.constant 0 : index
    %77 = vector.load %arg6[%c0_42, %c0_43] : memref<32x32xf32, #tpu.memory_space<vmem>>, vector<32x32xf32>
    %cst_44 = arith.constant dense<0.000000e+00> : vector<8x32xf32>
    %78 = tpu.matmul %76, %77, %cst_44 {dimension_numbers = #tpu.dot_dimension_numbers<[1], [0], [0], [1], [0, 0, 1, 1], [], []>} : vector<8x32xf32>, vector<32x32xf32>, vector<8x32xf32> -> vector<8x32xf32>
    %cst_45 = arith.constant dense<0.000000e+00> : vector<8x16xf32>
    %79 = tpu.matmul %78, %28, %cst_45 {dimension_numbers = #tpu.dot_dimension_numbers<[1], [1], [0], [0], [0, 0, 1, 0], [], []>} : vector<8x32xf32>, vector<16x32xf32>, vector<8x16xf32> -> vector<8x16xf32>
    %cst_46 = arith.constant 0.176776692 : f32
    %80 = vector.broadcast %cst_46 : f32 to vector<8x16xf32>
    %81 = arith.mulf %79, %80 : vector<8x16xf32>
    %cst_47 = arith.constant dense<0xFF800000> : vector<16xf32>
    %82 = vector.multi_reduction <maximumf>, %81, %cst_47 [0] : vector<8x16xf32> to vector<16xf32>
    %83 = vector.shape_cast %82 : vector<16xf32> to vector<1x16xf32>
    %84 = vector.broadcast %83 : vector<1x16xf32> to vector<8x16xf32>
    %85 = arith.subf %81, %84 : vector<8x16xf32>
    %86 = math.exp %85 : vector<8x16xf32>
    %cst_48 = arith.constant dense<0.000000e+00> : vector<16xf32>
    %87 = vector.multi_reduction <add>, %86, %cst_48 [0] : vector<8x16xf32> to vector<16xf32>
    %88 = vector.shape_cast %87 : vector<16xf32> to vector<1x16xf32>
    %89 = tpu.reciprocal %88 : vector<1x16xf32> -> vector<1x16xf32>
    %90 = vector.broadcast %89 : vector<1x16xf32> to vector<8x16xf32>
    %91 = arith.mulf %86, %90 : vector<8x16xf32>
    %cst_49 = arith.constant 9.99999993E-9 : f32
    %92 = vector.broadcast %cst_49 : f32 to vector<8x16xf32>
    %93 = arith.addf %91, %92 : vector<8x16xf32>
    %cst_50 = arith.constant dense<0.000000e+00> : vector<8xf32>
    %94 = vector.multi_reduction <add>, %93, %cst_50 [1] : vector<8x16xf32> to vector<8xf32>
    %95 = vector.shape_cast %94 : vector<8xf32> to vector<8x1xf32>
    %96 = tpu.reciprocal %95 : vector<8x1xf32> -> vector<8x1xf32>
    %97 = vector.broadcast %96 : vector<8x1xf32> to vector<8x16xf32>
    %98 = arith.mulf %93, %97 : vector<8x16xf32>
    %cst_51 = arith.constant dense<0.000000e+00> : vector<8x32xf32>
    %99 = tpu.matmul %98, %30, %cst_51 {dimension_numbers = #tpu.dot_dimension_numbers<[1], [0], [0], [1], [0, 0, 1, 1], [], []>} : vector<8x16xf32>, vector<16x32xf32>, vector<8x32xf32> -> vector<8x32xf32>
    %cst_52 = arith.constant dense<0.000000e+00> : vector<8x32xf32>
    %100 = tpu.matmul %99, %42, %cst_52 {dimension_numbers = #tpu.dot_dimension_numbers<[1], [0], [0], [1], [0, 0, 1, 1], [], []>} : vector<8x32xf32>, vector<32x32xf32>, vector<8x32xf32> -> vector<8x32xf32>
    %cst_53 = arith.constant dense<0.000000e+00> : vector<8x32xf32>
    %101 = tpu.matmul %54, %48, %cst_53 {dimension_numbers = #tpu.dot_dimension_numbers<[1], [0], [0], [1], [0, 0, 1, 1], [], []>} : vector<8x32xf32>, vector<32x32xf32>, vector<8x32xf32> -> vector<8x32xf32>
    %102 = arith.addf %100, %101 : vector<8x32xf32>
    %103 = vector.broadcast %37 : vector<1x32xf32> to vector<8x32xf32>
    %104 = arith.addf %102, %103 : vector<8x32xf32>
    %cst_54 = arith.constant 0.000000e+00 : f32
    %105 = vector.broadcast %cst_54 : f32 to vector<8x32xf32>
    %106 = arith.subf %105, %104 : vector<8x32xf32>
    %107 = math.exp %106 : vector<8x32xf32>
    %cst_55 = arith.constant 1.000000e+00 : f32
    %108 = vector.broadcast %cst_55 : f32 to vector<8x32xf32>
    %109 = arith.addf %108, %107 : vector<8x32xf32>
    %110 = tpu.reciprocal %109 : vector<8x32xf32> -> vector<8x32xf32>
    %cst_56 = arith.constant dense<0.000000e+00> : vector<8x32xf32>
    %111 = tpu.matmul %99, %44, %cst_56 {dimension_numbers = #tpu.dot_dimension_numbers<[1], [0], [0], [1], [0, 0, 1, 1], [], []>} : vector<8x32xf32>, vector<32x32xf32>, vector<8x32xf32> -> vector<8x32xf32>
    %cst_57 = arith.constant dense<0.000000e+00> : vector<8x32xf32>
    %112 = tpu.matmul %54, %50, %cst_57 {dimension_numbers = #tpu.dot_dimension_numbers<[1], [0], [0], [1], [0, 0, 1, 1], [], []>} : vector<8x32xf32>, vector<32x32xf32>, vector<8x32xf32> -> vector<8x32xf32>
    %113 = arith.addf %111, %112 : vector<8x32xf32>
    %114 = vector.broadcast %38 : vector<1x32xf32> to vector<8x32xf32>
    %115 = arith.addf %113, %114 : vector<8x32xf32>
    %cst_58 = arith.constant 0.000000e+00 : f32
    %116 = vector.broadcast %cst_58 : f32 to vector<8x32xf32>
    %117 = arith.subf %116, %115 : vector<8x32xf32>
    %118 = math.exp %117 : vector<8x32xf32>
    %cst_59 = arith.constant 1.000000e+00 : f32
    %119 = vector.broadcast %cst_59 : f32 to vector<8x32xf32>
    %120 = arith.addf %119, %118 : vector<8x32xf32>
    %121 = tpu.reciprocal %120 : vector<8x32xf32> -> vector<8x32xf32>
    %cst_60 = arith.constant dense<0.000000e+00> : vector<8x32xf32>
    %122 = tpu.matmul %99, %46, %cst_60 {dimension_numbers = #tpu.dot_dimension_numbers<[1], [0], [0], [1], [0, 0, 1, 1], [], []>} : vector<8x32xf32>, vector<32x32xf32>, vector<8x32xf32> -> vector<8x32xf32>
    %123 = vector.broadcast %39 : vector<1x32xf32> to vector<8x32xf32>
    %124 = arith.addf %122, %123 : vector<8x32xf32>
    %cst_61 = arith.constant dense<0.000000e+00> : vector<8x32xf32>
    %125 = tpu.matmul %54, %52, %cst_61 {dimension_numbers = #tpu.dot_dimension_numbers<[1], [0], [0], [1], [0, 0, 1, 1], [], []>} : vector<8x32xf32>, vector<32x32xf32>, vector<8x32xf32> -> vector<8x32xf32>
    %126 = vector.broadcast %40 : vector<1x32xf32> to vector<8x32xf32>
    %127 = arith.addf %125, %126 : vector<8x32xf32>
    %128 = arith.mulf %110, %127 : vector<8x32xf32>
    %129 = arith.addf %124, %128 : vector<8x32xf32>
    %130 = math.tanh %129 : vector<8x32xf32>
    %cst_62 = arith.constant 1.000000e+00 : f32
    %131 = vector.broadcast %cst_62 : f32 to vector<8x32xf32>
    %132 = arith.subf %131, %121 : vector<8x32xf32>
    %133 = arith.mulf %132, %130 : vector<8x32xf32>
    %134 = arith.mulf %121, %54 : vector<8x32xf32>
    %135 = arith.addf %133, %134 : vector<8x32xf32>
    %cst_63 = arith.constant dense<0.000000e+00> : vector<8xf32>
    %136 = vector.multi_reduction <add>, %135, %cst_63 [1] : vector<8x32xf32> to vector<8xf32>
    %137 = vector.shape_cast %136 : vector<8xf32> to vector<8x1xf32>
    %cst_64 = arith.constant 3.200000e+01 : f32
    %138 = vector.broadcast %cst_64 : f32 to vector<8x1xf32>
    %139 = arith.divf %137, %138 : vector<8x1xf32>
    %140 = vector.broadcast %139 : vector<8x1xf32> to vector<8x32xf32>
    %141 = arith.subf %135, %140 : vector<8x32xf32>
    %142 = arith.mulf %141, %141 : vector<8x32xf32>
    %cst_65 = arith.constant dense<0.000000e+00> : vector<8xf32>
    %143 = vector.multi_reduction <add>, %142, %cst_65 [1] : vector<8x32xf32> to vector<8xf32>
    %144 = vector.shape_cast %143 : vector<8xf32> to vector<8x1xf32>
    %cst_66 = arith.constant 3.200000e+01 : f32
    %145 = vector.broadcast %cst_66 : f32 to vector<8x1xf32>
    %146 = arith.divf %144, %145 : vector<8x1xf32>
    %147 = vector.broadcast %139 : vector<8x1xf32> to vector<8x32xf32>
    %148 = arith.subf %135, %147 : vector<8x32xf32>
    %cst_67 = arith.constant 9.99999974E-6 : f32
    %149 = vector.broadcast %cst_67 : f32 to vector<8x1xf32>
    %150 = arith.addf %146, %149 : vector<8x1xf32>
    %151 = math.rsqrt %150 : vector<8x1xf32>
    %152 = vector.broadcast %151 : vector<8x1xf32> to vector<8x32xf32>
    %153 = arith.mulf %148, %152 : vector<8x32xf32>
    %154 = vector.broadcast %34 : vector<1x32xf32> to vector<8x32xf32>
    %155 = arith.mulf %153, %154 : vector<8x32xf32>
    %156 = vector.broadcast %35 : vector<1x32xf32> to vector<8x32xf32>
    %157 = arith.addf %155, %156 : vector<8x32xf32>
    %c0_68 = arith.constant 0 : index
    %c0_69 = arith.constant 0 : index
    %158 = vector.load %arg11[%c0_68, %c0_69] : memref<32x128xf32, #tpu.memory_space<vmem>>, vector<32x128xf32>
    %cst_70 = arith.constant dense<0.000000e+00> : vector<8x128xf32>
    %159 = tpu.matmul %157, %158, %cst_70 {dimension_numbers = #tpu.dot_dimension_numbers<[1], [0], [0], [1], [0, 0, 1, 1], [], []>} : vector<8x32xf32>, vector<32x128xf32>, vector<8x128xf32> -> vector<8x128xf32>
    %c0_71 = arith.constant 0 : index
    %c0_72 = arith.constant 0 : index
    %160 = vector.load %arg12[%c0_71, %c0_72] : memref<1x128xf32, #tpu.memory_space<vmem>>, vector<1x128xf32>
    %161 = vector.broadcast %160 : vector<1x128xf32> to vector<8x128xf32>
    %162 = arith.addf %159, %161 : vector<8x128xf32>
    %cst_73 = arith.constant 0.000000e+00 : f32
    %163 = vector.broadcast %cst_73 : f32 to vector<8x128xf32>
    %164 = arith.maximumf %162, %163 : vector<8x128xf32>
    %c0_74 = arith.constant 0 : index
    %c0_75 = arith.constant 0 : index
    %165 = vector.load %arg13[%c0_74, %c0_75] : memref<128x32xf32, #tpu.memory_space<vmem>>, vector<128x32xf32>
    %cst_76 = arith.constant dense<0.000000e+00> : vector<8x32xf32>
    %166 = tpu.matmul %164, %165, %cst_76 {dimension_numbers = #tpu.dot_dimension_numbers<[1], [0], [0], [1], [0, 0, 1, 1], [], []>} : vector<8x128xf32>, vector<128x32xf32>, vector<8x32xf32> -> vector<8x32xf32>
    %c0_77 = arith.constant 0 : index
    %c0_78 = arith.constant 0 : index
    %167 = vector.load %arg14[%c0_77, %c0_78] : memref<1x32xf32, #tpu.memory_space<vmem>>, vector<1x32xf32>
    %168 = vector.broadcast %167 : vector<1x32xf32> to vector<8x32xf32>
    %169 = arith.addf %166, %168 : vector<8x32xf32>
    %170 = arith.addf %169, %135 : vector<8x32xf32>
    %c0_79 = arith.constant 0 : index
    %c0_80 = arith.constant 0 : index
    %171 = vector.load %arg15[%c0_79, %c0_80] : memref<32x16xf32, #tpu.memory_space<vmem>>, vector<32x16xf32>
    %cst_81 = arith.constant dense<0.000000e+00> : vector<8x16xf32>
    %172 = tpu.matmul %170, %171, %cst_81 {dimension_numbers = #tpu.dot_dimension_numbers<[1], [0], [0], [1], [0, 0, 1, 1], [], []>} : vector<8x32xf32>, vector<32x16xf32>, vector<8x16xf32> -> vector<8x16xf32>
    %c0_82 = arith.constant 0 : index
    %c0_83 = arith.constant 0 : index
    %173 = vector.load %arg16[%c0_82, %c0_83] : memref<1x16xf32, #tpu.memory_space<vmem>>, vector<1x16xf32>
    %cst_84 = arith.constant 2.000000e+00 : f32
    %174 = vector.broadcast %cst_84 : f32 to vector<8x16xf32>
    %175 = arith.mulf %174, %172 : vector<8x16xf32>
    %176 = vector.broadcast %173 : vector<1x16xf32> to vector<8x16xf32>
    %177 = arith.subf %176, %175 : vector<8x16xf32>
    %cst_85 = arith.constant dense<0x7F800000> : vector<8xf32>
    %178 = vector.multi_reduction <minimumf>, %177, %cst_85 [1] : vector<8x16xf32> to vector<8xf32>
    %179 = vector.shape_cast %178 : vector<8xf32> to vector<8x1xf32>
    %180 = tpu.iota {dimensions = array<i32: 1>} : vector<8x16xi32>
    %181 = vector.broadcast %179 : vector<8x1xf32> to vector<8x16xf32>
    %182 = arith.cmpf ole, %177, %181 : vector<8x16xf32>
    %183 = arith.sitofp %180 : vector<8x16xi32> to vector<8x16xf32>
    %cst_86 = arith.constant 1.600000e+01 : f32
    %184 = vector.broadcast %cst_86 : f32 to vector<8x16xf32>
    %185 = arith.select %182, %183, %184 : vector<8x16xi1>, vector<8x16xf32>
    %cst_87 = arith.constant dense<0x7F800000> : vector<8xf32>
    %186 = vector.multi_reduction <minimumf>, %185, %cst_87 [1] : vector<8x16xf32> to vector<8xf32>
    %187 = vector.shape_cast %186 : vector<8xf32> to vector<8x1xf32>
    %188 = arith.fptosi %187 : vector<8x1xf32> to vector<8x1xi32>
    %189 = tpu.iota {dimensions = array<i32: 1>} : vector<8x128xi32>
    %c8_i32 = arith.constant 8 : i32
    %190 = vector.broadcast %c8_i32 : i32 to vector<8x1xi32>
    %191 = arith.muli %188, %190 : vector<8x1xi32>
    %192 = vector.broadcast %191 : vector<8x1xi32> to vector<8x128xi32>
    %193 = arith.cmpi sge, %189, %192 : vector<8x128xi32>
    %c1_i32 = arith.constant 1 : i32
    %194 = vector.broadcast %c1_i32 : i32 to vector<8x1xi32>
    %195 = arith.addi %188, %194 : vector<8x1xi32>
    %c8_i32_88 = arith.constant 8 : i32
    %196 = vector.broadcast %c8_i32_88 : i32 to vector<8x1xi32>
    %197 = arith.muli %195, %196 : vector<8x1xi32>
    %198 = vector.broadcast %197 : vector<8x1xi32> to vector<8x128xi32>
    %199 = arith.cmpi slt, %189, %198 : vector<8x128xi32>
    %200 = arith.andi %193, %199 : vector<8x128xi1>
    %201 = arith.extui %200 : vector<8x128xi1> to vector<8x128xi32>
    %202 = arith.sitofp %201 : vector<8x128xi32> to vector<8x128xf32>
    %cst_89 = arith.constant dense<0.000000e+00> : vector<8xf32>
    %203 = vector.multi_reduction <add>, %170, %cst_89 [1] : vector<8x32xf32> to vector<8xf32>
    %204 = vector.shape_cast %203 : vector<8xf32> to vector<8x1xf32>
    %cst_90 = arith.constant 3.200000e+01 : f32
    %205 = vector.broadcast %cst_90 : f32 to vector<8x1xf32>
    %206 = arith.divf %204, %205 : vector<8x1xf32>
    %207 = vector.broadcast %206 : vector<8x1xf32> to vector<8x32xf32>
    %208 = arith.subf %170, %207 : vector<8x32xf32>
    %209 = arith.mulf %208, %208 : vector<8x32xf32>
    %cst_91 = arith.constant dense<0.000000e+00> : vector<8xf32>
    %210 = vector.multi_reduction <add>, %209, %cst_91 [1] : vector<8x32xf32> to vector<8xf32>
    %211 = vector.shape_cast %210 : vector<8xf32> to vector<8x1xf32>
    %cst_92 = arith.constant 3.200000e+01 : f32
    %212 = vector.broadcast %cst_92 : f32 to vector<8x1xf32>
    %213 = arith.divf %211, %212 : vector<8x1xf32>
    %214 = vector.broadcast %206 : vector<8x1xf32> to vector<8x32xf32>
    %215 = arith.subf %170, %214 : vector<8x32xf32>
    %cst_93 = arith.constant 9.99999974E-6 : f32
    %216 = vector.broadcast %cst_93 : f32 to vector<8x1xf32>
    %217 = arith.addf %213, %216 : vector<8x1xf32>
    %218 = math.rsqrt %217 : vector<8x1xf32>
    %219 = vector.broadcast %218 : vector<8x1xf32> to vector<8x32xf32>
    %220 = arith.mulf %215, %219 : vector<8x32xf32>
    %221 = vector.broadcast %32 : vector<1x32xf32> to vector<8x32xf32>
    %222 = arith.mulf %220, %221 : vector<8x32xf32>
    %223 = vector.broadcast %33 : vector<1x32xf32> to vector<8x32xf32>
    %224 = arith.addf %222, %223 : vector<8x32xf32>
    %c0_94 = arith.constant 0 : index
    %c0_95 = arith.constant 0 : index
    %225 = vector.load %arg6[%c0_94, %c0_95] : memref<32x32xf32, #tpu.memory_space<vmem>>, vector<32x32xf32>
    %cst_96 = arith.constant dense<0.000000e+00> : vector<8x32xf32>
    %226 = tpu.matmul %224, %225, %cst_96 {dimension_numbers = #tpu.dot_dimension_numbers<[1], [0], [0], [1], [0, 0, 1, 1], [], []>} : vector<8x32xf32>, vector<32x32xf32>, vector<8x32xf32> -> vector<8x32xf32>
    %cst_97 = arith.constant dense<0.000000e+00> : vector<8x16xf32>
    %227 = tpu.matmul %226, %28, %cst_97 {dimension_numbers = #tpu.dot_dimension_numbers<[1], [1], [0], [0], [0, 0, 1, 0], [], []>} : vector<8x32xf32>, vector<16x32xf32>, vector<8x16xf32> -> vector<8x16xf32>
    %cst_98 = arith.constant 0.176776692 : f32
    %228 = vector.broadcast %cst_98 : f32 to vector<8x16xf32>
    %229 = arith.mulf %227, %228 : vector<8x16xf32>
    %cst_99 = arith.constant dense<0xFF800000> : vector<16xf32>
    %230 = vector.multi_reduction <maximumf>, %229, %cst_99 [0] : vector<8x16xf32> to vector<16xf32>
    %231 = vector.shape_cast %230 : vector<16xf32> to vector<1x16xf32>
    %232 = vector.broadcast %231 : vector<1x16xf32> to vector<8x16xf32>
    %233 = arith.subf %229, %232 : vector<8x16xf32>
    %234 = math.exp %233 : vector<8x16xf32>
    %cst_100 = arith.constant dense<0.000000e+00> : vector<16xf32>
    %235 = vector.multi_reduction <add>, %234, %cst_100 [0] : vector<8x16xf32> to vector<16xf32>
    %236 = vector.shape_cast %235 : vector<16xf32> to vector<1x16xf32>
    %237 = tpu.reciprocal %236 : vector<1x16xf32> -> vector<1x16xf32>
    %238 = vector.broadcast %237 : vector<1x16xf32> to vector<8x16xf32>
    %239 = arith.mulf %234, %238 : vector<8x16xf32>
    %cst_101 = arith.constant 9.99999993E-9 : f32
    %240 = vector.broadcast %cst_101 : f32 to vector<8x16xf32>
    %241 = arith.addf %239, %240 : vector<8x16xf32>
    %cst_102 = arith.constant dense<0.000000e+00> : vector<8xf32>
    %242 = vector.multi_reduction <add>, %241, %cst_102 [1] : vector<8x16xf32> to vector<8xf32>
    %243 = vector.shape_cast %242 : vector<8xf32> to vector<8x1xf32>
    %244 = tpu.reciprocal %243 : vector<8x1xf32> -> vector<8x1xf32>
    %245 = vector.broadcast %244 : vector<8x1xf32> to vector<8x16xf32>
    %246 = arith.mulf %241, %245 : vector<8x16xf32>
    %cst_103 = arith.constant dense<0.000000e+00> : vector<8x32xf32>
    %247 = tpu.matmul %246, %30, %cst_103 {dimension_numbers = #tpu.dot_dimension_numbers<[1], [0], [0], [1], [0, 0, 1, 1], [], []>} : vector<8x16xf32>, vector<16x32xf32>, vector<8x32xf32> -> vector<8x32xf32>
    %cst_104 = arith.constant dense<0.000000e+00> : vector<8x32xf32>
    %248 = tpu.matmul %247, %42, %cst_104 {dimension_numbers = #tpu.dot_dimension_numbers<[1], [0], [0], [1], [0, 0, 1, 1], [], []>} : vector<8x32xf32>, vector<32x32xf32>, vector<8x32xf32> -> vector<8x32xf32>
    %cst_105 = arith.constant dense<0.000000e+00> : vector<8x32xf32>
    %249 = tpu.matmul %170, %48, %cst_105 {dimension_numbers = #tpu.dot_dimension_numbers<[1], [0], [0], [1], [0, 0, 1, 1], [], []>} : vector<8x32xf32>, vector<32x32xf32>, vector<8x32xf32> -> vector<8x32xf32>
    %250 = arith.addf %248, %249 : vector<8x32xf32>
    %251 = vector.broadcast %37 : vector<1x32xf32> to vector<8x32xf32>
    %252 = arith.addf %250, %251 : vector<8x32xf32>
    %cst_106 = arith.constant 0.000000e+00 : f32
    %253 = vector.broadcast %cst_106 : f32 to vector<8x32xf32>
    %254 = arith.subf %253, %252 : vector<8x32xf32>
    %255 = math.exp %254 : vector<8x32xf32>
    %cst_107 = arith.constant 1.000000e+00 : f32
    %256 = vector.broadcast %cst_107 : f32 to vector<8x32xf32>
    %257 = arith.addf %256, %255 : vector<8x32xf32>
    %258 = tpu.reciprocal %257 : vector<8x32xf32> -> vector<8x32xf32>
    %cst_108 = arith.constant dense<0.000000e+00> : vector<8x32xf32>
    %259 = tpu.matmul %247, %44, %cst_108 {dimension_numbers = #tpu.dot_dimension_numbers<[1], [0], [0], [1], [0, 0, 1, 1], [], []>} : vector<8x32xf32>, vector<32x32xf32>, vector<8x32xf32> -> vector<8x32xf32>
    %cst_109 = arith.constant dense<0.000000e+00> : vector<8x32xf32>
    %260 = tpu.matmul %170, %50, %cst_109 {dimension_numbers = #tpu.dot_dimension_numbers<[1], [0], [0], [1], [0, 0, 1, 1], [], []>} : vector<8x32xf32>, vector<32x32xf32>, vector<8x32xf32> -> vector<8x32xf32>
    %261 = arith.addf %259, %260 : vector<8x32xf32>
    %262 = vector.broadcast %38 : vector<1x32xf32> to vector<8x32xf32>
    %263 = arith.addf %261, %262 : vector<8x32xf32>
    %cst_110 = arith.constant 0.000000e+00 : f32
    %264 = vector.broadcast %cst_110 : f32 to vector<8x32xf32>
    %265 = arith.subf %264, %263 : vector<8x32xf32>
    %266 = math.exp %265 : vector<8x32xf32>
    %cst_111 = arith.constant 1.000000e+00 : f32
    %267 = vector.broadcast %cst_111 : f32 to vector<8x32xf32>
    %268 = arith.addf %267, %266 : vector<8x32xf32>
    %269 = tpu.reciprocal %268 : vector<8x32xf32> -> vector<8x32xf32>
    %cst_112 = arith.constant dense<0.000000e+00> : vector<8x32xf32>
    %270 = tpu.matmul %247, %46, %cst_112 {dimension_numbers = #tpu.dot_dimension_numbers<[1], [0], [0], [1], [0, 0, 1, 1], [], []>} : vector<8x32xf32>, vector<32x32xf32>, vector<8x32xf32> -> vector<8x32xf32>
    %271 = vector.broadcast %39 : vector<1x32xf32> to vector<8x32xf32>
    %272 = arith.addf %270, %271 : vector<8x32xf32>
    %cst_113 = arith.constant dense<0.000000e+00> : vector<8x32xf32>
    %273 = tpu.matmul %170, %52, %cst_113 {dimension_numbers = #tpu.dot_dimension_numbers<[1], [0], [0], [1], [0, 0, 1, 1], [], []>} : vector<8x32xf32>, vector<32x32xf32>, vector<8x32xf32> -> vector<8x32xf32>
    %274 = vector.broadcast %40 : vector<1x32xf32> to vector<8x32xf32>
    %275 = arith.addf %273, %274 : vector<8x32xf32>
    %276 = arith.mulf %258, %275 : vector<8x32xf32>
    %277 = arith.addf %272, %276 : vector<8x32xf32>
    %278 = math.tanh %277 : vector<8x32xf32>
    %cst_114 = arith.constant 1.000000e+00 : f32
    %279 = vector.broadcast %cst_114 : f32 to vector<8x32xf32>
    %280 = arith.subf %279, %269 : vector<8x32xf32>
    %281 = arith.mulf %280, %278 : vector<8x32xf32>
    %282 = arith.mulf %269, %170 : vector<8x32xf32>
    %283 = arith.addf %281, %282 : vector<8x32xf32>
    %cst_115 = arith.constant dense<0.000000e+00> : vector<8xf32>
    %284 = vector.multi_reduction <add>, %283, %cst_115 [1] : vector<8x32xf32> to vector<8xf32>
    %285 = vector.shape_cast %284 : vector<8xf32> to vector<8x1xf32>
    %cst_116 = arith.constant 3.200000e+01 : f32
    %286 = vector.broadcast %cst_116 : f32 to vector<8x1xf32>
    %287 = arith.divf %285, %286 : vector<8x1xf32>
    %288 = vector.broadcast %287 : vector<8x1xf32> to vector<8x32xf32>
    %289 = arith.subf %283, %288 : vector<8x32xf32>
    %290 = arith.mulf %289, %289 : vector<8x32xf32>
    %cst_117 = arith.constant dense<0.000000e+00> : vector<8xf32>
    %291 = vector.multi_reduction <add>, %290, %cst_117 [1] : vector<8x32xf32> to vector<8xf32>
    %292 = vector.shape_cast %291 : vector<8xf32> to vector<8x1xf32>
    %cst_118 = arith.constant 3.200000e+01 : f32
    %293 = vector.broadcast %cst_118 : f32 to vector<8x1xf32>
    %294 = arith.divf %292, %293 : vector<8x1xf32>
    %295 = vector.broadcast %287 : vector<8x1xf32> to vector<8x32xf32>
    %296 = arith.subf %283, %295 : vector<8x32xf32>
    %cst_119 = arith.constant 9.99999974E-6 : f32
    %297 = vector.broadcast %cst_119 : f32 to vector<8x1xf32>
    %298 = arith.addf %294, %297 : vector<8x1xf32>
    %299 = math.rsqrt %298 : vector<8x1xf32>
    %300 = vector.broadcast %299 : vector<8x1xf32> to vector<8x32xf32>
    %301 = arith.mulf %296, %300 : vector<8x32xf32>
    %302 = vector.broadcast %34 : vector<1x32xf32> to vector<8x32xf32>
    %303 = arith.mulf %301, %302 : vector<8x32xf32>
    %304 = vector.broadcast %35 : vector<1x32xf32> to vector<8x32xf32>
    %305 = arith.addf %303, %304 : vector<8x32xf32>
    %c0_120 = arith.constant 0 : index
    %c0_121 = arith.constant 0 : index
    %306 = vector.load %arg11[%c0_120, %c0_121] : memref<32x128xf32, #tpu.memory_space<vmem>>, vector<32x128xf32>
    %cst_122 = arith.constant dense<0.000000e+00> : vector<8x128xf32>
    %307 = tpu.matmul %305, %306, %cst_122 {dimension_numbers = #tpu.dot_dimension_numbers<[1], [0], [0], [1], [0, 0, 1, 1], [], []>} : vector<8x32xf32>, vector<32x128xf32>, vector<8x128xf32> -> vector<8x128xf32>
    %c0_123 = arith.constant 0 : index
    %c0_124 = arith.constant 0 : index
    %308 = vector.load %arg12[%c0_123, %c0_124] : memref<1x128xf32, #tpu.memory_space<vmem>>, vector<1x128xf32>
    %309 = vector.broadcast %308 : vector<1x128xf32> to vector<8x128xf32>
    %310 = arith.addf %307, %309 : vector<8x128xf32>
    %c0_125 = arith.constant 0 : index
    %c0_126 = arith.constant 0 : index
    %311 = vector.load %arg18[%c0_125, %c0_126] : memref<32x128xf32, #tpu.memory_space<vmem>>, vector<32x128xf32>
    %cst_127 = arith.constant dense<0.000000e+00> : vector<8x128xf32>
    %312 = tpu.matmul %305, %311, %cst_127 {dimension_numbers = #tpu.dot_dimension_numbers<[1], [0], [0], [1], [0, 0, 1, 1], [], []>} : vector<8x32xf32>, vector<32x128xf32>, vector<8x128xf32> -> vector<8x128xf32>
    %313 = arith.mulf %312, %202 : vector<8x128xf32>
    %c0_128 = arith.constant 0 : index
    %c0_129 = arith.constant 0 : index
    %314 = vector.load %arg19[%c0_128, %c0_129] : memref<128x128xf32, #tpu.memory_space<vmem>>, vector<128x128xf32>
    %cst_130 = arith.constant dense<0.000000e+00> : vector<8x128xf32>
    %315 = tpu.matmul %313, %314, %cst_130 {dimension_numbers = #tpu.dot_dimension_numbers<[1], [0], [0], [1], [0, 0, 1, 1], [], []>} : vector<8x128xf32>, vector<128x128xf32>, vector<8x128xf32> -> vector<8x128xf32>
    %cst_131 = arith.constant 1.000000e+00 : f32
    %316 = vector.broadcast %cst_131 : f32 to vector<8x128xf32>
    %317 = arith.mulf %315, %316 : vector<8x128xf32>
    %318 = arith.addf %310, %317 : vector<8x128xf32>
    %cst_132 = arith.constant 0.000000e+00 : f32
    %319 = vector.broadcast %cst_132 : f32 to vector<8x128xf32>
    %320 = arith.maximumf %318, %319 : vector<8x128xf32>
    %c0_133 = arith.constant 0 : index
    %c0_134 = arith.constant 0 : index
    %321 = vector.load %arg13[%c0_133, %c0_134] : memref<128x32xf32, #tpu.memory_space<vmem>>, vector<128x32xf32>
    %cst_135 = arith.constant dense<0.000000e+00> : vector<8x32xf32>
    %322 = tpu.matmul %320, %321, %cst_135 {dimension_numbers = #tpu.dot_dimension_numbers<[1], [0], [0], [1], [0, 0, 1, 1], [], []>} : vector<8x128xf32>, vector<128x32xf32>, vector<8x32xf32> -> vector<8x32xf32>
    %c0_136 = arith.constant 0 : index
    %c0_137 = arith.constant 0 : index
    %323 = vector.load %arg14[%c0_136, %c0_137] : memref<1x32xf32, #tpu.memory_space<vmem>>, vector<1x32xf32>
    %324 = vector.broadcast %323 : vector<1x32xf32> to vector<8x32xf32>
    %325 = arith.addf %322, %324 : vector<8x32xf32>
    %c0_138 = arith.constant 0 : index
    %c0_139 = arith.constant 0 : index
    %326 = vector.load %arg20[%c0_138, %c0_139] : memref<128x128xf32, #tpu.memory_space<vmem>>, vector<128x128xf32>
    %cst_140 = arith.constant dense<0.000000e+00> : vector<8x128xf32>
    %327 = tpu.matmul %320, %326, %cst_140 {dimension_numbers = #tpu.dot_dimension_numbers<[1], [0], [0], [1], [0, 0, 1, 1], [], []>} : vector<8x128xf32>, vector<128x128xf32>, vector<8x128xf32> -> vector<8x128xf32>
    %328 = arith.mulf %327, %202 : vector<8x128xf32>
    %c0_141 = arith.constant 0 : index
    %c0_142 = arith.constant 0 : index
    %329 = vector.load %arg21[%c0_141, %c0_142] : memref<128x32xf32, #tpu.memory_space<vmem>>, vector<128x32xf32>
    %cst_143 = arith.constant dense<0.000000e+00> : vector<8x32xf32>
    %330 = tpu.matmul %328, %329, %cst_143 {dimension_numbers = #tpu.dot_dimension_numbers<[1], [0], [0], [1], [0, 0, 1, 1], [], []>} : vector<8x128xf32>, vector<128x32xf32>, vector<8x32xf32> -> vector<8x32xf32>
    %cst_144 = arith.constant 1.000000e+00 : f32
    %331 = vector.broadcast %cst_144 : f32 to vector<8x32xf32>
    %332 = arith.mulf %330, %331 : vector<8x32xf32>
    %333 = arith.addf %325, %332 : vector<8x32xf32>
    %334 = arith.addf %333, %283 : vector<8x32xf32>
    %c0_145 = arith.constant 0 : index
    %c0_146 = arith.constant 0 : index
    %335 = vector.load %arg15[%c0_145, %c0_146] : memref<32x16xf32, #tpu.memory_space<vmem>>, vector<32x16xf32>
    %cst_147 = arith.constant dense<0.000000e+00> : vector<8x16xf32>
    %336 = tpu.matmul %334, %335, %cst_147 {dimension_numbers = #tpu.dot_dimension_numbers<[1], [0], [0], [1], [0, 0, 1, 1], [], []>} : vector<8x32xf32>, vector<32x16xf32>, vector<8x16xf32> -> vector<8x16xf32>
    %c0_148 = arith.constant 0 : index
    %c0_149 = arith.constant 0 : index
    %337 = vector.load %arg16[%c0_148, %c0_149] : memref<1x16xf32, #tpu.memory_space<vmem>>, vector<1x16xf32>
    %cst_150 = arith.constant 2.000000e+00 : f32
    %338 = vector.broadcast %cst_150 : f32 to vector<8x16xf32>
    %339 = arith.mulf %338, %336 : vector<8x16xf32>
    %340 = vector.broadcast %337 : vector<1x16xf32> to vector<8x16xf32>
    %341 = arith.subf %340, %339 : vector<8x16xf32>
    %cst_151 = arith.constant dense<0x7F800000> : vector<8xf32>
    %342 = vector.multi_reduction <minimumf>, %341, %cst_151 [1] : vector<8x16xf32> to vector<8xf32>
    %343 = vector.shape_cast %342 : vector<8xf32> to vector<8x1xf32>
    %344 = tpu.iota {dimensions = array<i32: 1>} : vector<8x16xi32>
    %345 = vector.broadcast %343 : vector<8x1xf32> to vector<8x16xf32>
    %346 = arith.cmpf ole, %341, %345 : vector<8x16xf32>
    %347 = arith.sitofp %344 : vector<8x16xi32> to vector<8x16xf32>
    %cst_152 = arith.constant 1.600000e+01 : f32
    %348 = vector.broadcast %cst_152 : f32 to vector<8x16xf32>
    %349 = arith.select %346, %347, %348 : vector<8x16xi1>, vector<8x16xf32>
    %cst_153 = arith.constant dense<0x7F800000> : vector<8xf32>
    %350 = vector.multi_reduction <minimumf>, %349, %cst_153 [1] : vector<8x16xf32> to vector<8xf32>
    %351 = vector.shape_cast %350 : vector<8xf32> to vector<8x1xf32>
    %352 = arith.fptosi %351 : vector<8x1xf32> to vector<8x1xi32>
    %353 = tpu.iota {dimensions = array<i32: 1>} : vector<8x128xi32>
    %c8_i32_154 = arith.constant 8 : i32
    %354 = vector.broadcast %c8_i32_154 : i32 to vector<8x1xi32>
    %355 = arith.muli %352, %354 : vector<8x1xi32>
    %356 = vector.broadcast %355 : vector<8x1xi32> to vector<8x128xi32>
    %357 = arith.cmpi sge, %353, %356 : vector<8x128xi32>
    %c1_i32_155 = arith.constant 1 : i32
    %358 = vector.broadcast %c1_i32_155 : i32 to vector<8x1xi32>
    %359 = arith.addi %352, %358 : vector<8x1xi32>
    %c8_i32_156 = arith.constant 8 : i32
    %360 = vector.broadcast %c8_i32_156 : i32 to vector<8x1xi32>
    %361 = arith.muli %359, %360 : vector<8x1xi32>
    %362 = vector.broadcast %361 : vector<8x1xi32> to vector<8x128xi32>
    %363 = arith.cmpi slt, %353, %362 : vector<8x128xi32>
    %364 = arith.andi %357, %363 : vector<8x128xi1>
    %365 = arith.extui %364 : vector<8x128xi1> to vector<8x128xi32>
    %366 = arith.sitofp %365 : vector<8x128xi32> to vector<8x128xf32>
    %367 = vector.broadcast %352 : vector<8x1xi32> to vector<8x16xi32>
    %368 = arith.cmpi eq, %344, %367 : vector<8x16xi32>
    %369 = arith.extui %368 : vector<8x16xi1> to vector<8x16xi32>
    %370 = arith.sitofp %369 : vector<8x16xi32> to vector<8x16xf32>
    %c0_157 = arith.constant 0 : index
    %c0_158 = arith.constant 0 : index
    %371 = vector.load %arg17[%c0_157, %c0_158] : memref<16x32xf32, #tpu.memory_space<vmem>>, vector<16x32xf32>
    %cst_159 = arith.constant dense<0.000000e+00> : vector<8x32xf32>
    %372 = tpu.matmul %370, %371, %cst_159 {dimension_numbers = #tpu.dot_dimension_numbers<[1], [0], [0], [1], [0, 0, 1, 1], [], []>} : vector<8x16xf32>, vector<16x32xf32>, vector<8x32xf32> -> vector<8x32xf32>
    %373 = arith.subf %334, %372 : vector<8x32xf32>
    %374 = arith.mulf %373, %373 : vector<8x32xf32>
    %cst_160 = arith.constant dense<0.000000e+00> : vector<8xf32>
    %375 = vector.multi_reduction <add>, %374, %cst_160 [1] : vector<8x32xf32> to vector<8xf32>
    %376 = vector.shape_cast %375 : vector<8xf32> to vector<8x1xf32>
    %cst_161 = arith.constant dense<0.000000e+00> : vector<1xf32>
    %377 = vector.multi_reduction <add>, %376, %cst_161 [0] : vector<8x1xf32> to vector<1xf32>
    %378 = vector.shape_cast %377 : vector<1xf32> to vector<1x1xf32>
    %c0_162 = arith.constant 0 : index
    %c0_163 = arith.constant 0 : index
    %c0_164 = arith.constant 0 : index
    %379 = vector.load %arg24[%c0_162, %c0_163, %c0_164] : memref<1x8x1xi32, #tpu.memory_space<vmem>>, vector<1x8x1xi32>
    %380 = vector.shape_cast %379 : vector<1x8x1xi32> to vector<8x1xi32>
    %381 = vector.shape_cast %352 : vector<8x1xi32> to vector<1x8x1xi32>
    tpu.vector_store %arg24[%c0_162, %c0_163, %c0_164], %381 {strides = array<i32>} : memref<1x8x1xi32, #tpu.memory_space<vmem>>, vector<1x8x1xi32>,
    %c0_165 = arith.constant 0 : index
    %c0_166 = arith.constant 0 : index
    %c0_167 = arith.constant 0 : index
    %382 = vector.load %arg25[%c0_165, %c0_166, %c0_167] : memref<1x1x1xf32, #tpu.memory_space<vmem>>, vector<1x1x1xf32>
    %383 = vector.shape_cast %382 : vector<1x1x1xf32> to vector<1x1xf32>
    %384 = vector.shape_cast %378 : vector<1x1xf32> to vector<1x1x1xf32>
    tpu.vector_store %arg25[%c0_165, %c0_166, %c0_167], %384 {strides = array<i32>} : memref<1x1x1xf32, #tpu.memory_space<vmem>>, vector<1x1x1xf32>,
    %cst_168 = arith.constant dense<0.000000e+00> : vector<8xf32>
    %385 = vector.multi_reduction <add>, %334, %cst_168 [1] : vector<8x32xf32> to vector<8xf32>
    %386 = vector.shape_cast %385 : vector<8xf32> to vector<8x1xf32>
    %cst_169 = arith.constant 3.200000e+01 : f32
    %387 = vector.broadcast %cst_169 : f32 to vector<8x1xf32>
    %388 = arith.divf %386, %387 : vector<8x1xf32>
    %389 = vector.broadcast %388 : vector<8x1xf32> to vector<8x32xf32>
    %390 = arith.subf %334, %389 : vector<8x32xf32>
    %391 = arith.mulf %390, %390 : vector<8x32xf32>
    %cst_170 = arith.constant dense<0.000000e+00> : vector<8xf32>
    %392 = vector.multi_reduction <add>, %391, %cst_170 [1] : vector<8x32xf32> to vector<8xf32>
    %393 = vector.shape_cast %392 : vector<8xf32> to vector<8x1xf32>
    %cst_171 = arith.constant 3.200000e+01 : f32
    %394 = vector.broadcast %cst_171 : f32 to vector<8x1xf32>
    %395 = arith.divf %393, %394 : vector<8x1xf32>
    %396 = vector.broadcast %388 : vector<8x1xf32> to vector<8x32xf32>
    %397 = arith.subf %334, %396 : vector<8x32xf32>
    %cst_172 = arith.constant 9.99999974E-6 : f32
    %398 = vector.broadcast %cst_172 : f32 to vector<8x1xf32>
    %399 = arith.addf %395, %398 : vector<8x1xf32>
    %400 = math.rsqrt %399 : vector<8x1xf32>
    %401 = vector.broadcast %400 : vector<8x1xf32> to vector<8x32xf32>
    %402 = arith.mulf %397, %401 : vector<8x32xf32>
    %403 = vector.broadcast %32 : vector<1x32xf32> to vector<8x32xf32>
    %404 = arith.mulf %402, %403 : vector<8x32xf32>
    %405 = vector.broadcast %33 : vector<1x32xf32> to vector<8x32xf32>
    %406 = arith.addf %404, %405 : vector<8x32xf32>
    %c0_173 = arith.constant 0 : index
    %c0_174 = arith.constant 0 : index
    %407 = vector.load %arg6[%c0_173, %c0_174] : memref<32x32xf32, #tpu.memory_space<vmem>>, vector<32x32xf32>
    %cst_175 = arith.constant dense<0.000000e+00> : vector<8x32xf32>
    %408 = tpu.matmul %406, %407, %cst_175 {dimension_numbers = #tpu.dot_dimension_numbers<[1], [0], [0], [1], [0, 0, 1, 1], [], []>} : vector<8x32xf32>, vector<32x32xf32>, vector<8x32xf32> -> vector<8x32xf32>
    %cst_176 = arith.constant dense<0.000000e+00> : vector<8x16xf32>
    %409 = tpu.matmul %408, %28, %cst_176 {dimension_numbers = #tpu.dot_dimension_numbers<[1], [1], [0], [0], [0, 0, 1, 0], [], []>} : vector<8x32xf32>, vector<16x32xf32>, vector<8x16xf32> -> vector<8x16xf32>
    %cst_177 = arith.constant 0.176776692 : f32
    %410 = vector.broadcast %cst_177 : f32 to vector<8x16xf32>
    %411 = arith.mulf %409, %410 : vector<8x16xf32>
    %cst_178 = arith.constant dense<0xFF800000> : vector<16xf32>
    %412 = vector.multi_reduction <maximumf>, %411, %cst_178 [0] : vector<8x16xf32> to vector<16xf32>
    %413 = vector.shape_cast %412 : vector<16xf32> to vector<1x16xf32>
    %414 = vector.broadcast %413 : vector<1x16xf32> to vector<8x16xf32>
    %415 = arith.subf %411, %414 : vector<8x16xf32>
    %416 = math.exp %415 : vector<8x16xf32>
    %cst_179 = arith.constant dense<0.000000e+00> : vector<16xf32>
    %417 = vector.multi_reduction <add>, %416, %cst_179 [0] : vector<8x16xf32> to vector<16xf32>
    %418 = vector.shape_cast %417 : vector<16xf32> to vector<1x16xf32>
    %419 = tpu.reciprocal %418 : vector<1x16xf32> -> vector<1x16xf32>
    %420 = vector.broadcast %419 : vector<1x16xf32> to vector<8x16xf32>
    %421 = arith.mulf %416, %420 : vector<8x16xf32>
    %c0_180 = arith.constant 0 : index
    %c0_181 = arith.constant 0 : index
    %c0_182 = arith.constant 0 : index
    %422 = vector.load %arg23[%c0_180, %c0_181, %c0_182] : memref<1x8x16xf32, #tpu.memory_space<vmem>>, vector<1x8x16xf32>
    %423 = vector.shape_cast %422 : vector<1x8x16xf32> to vector<8x16xf32>
    %424 = vector.shape_cast %421 : vector<8x16xf32> to vector<1x8x16xf32>
    tpu.vector_store %arg23[%c0_180, %c0_181, %c0_182], %424 {strides = array<i32>} : memref<1x8x16xf32, #tpu.memory_space<vmem>>, vector<1x8x16xf32>,
    %cst_183 = arith.constant 9.99999993E-9 : f32
    %425 = vector.broadcast %cst_183 : f32 to vector<8x16xf32>
    %426 = arith.addf %421, %425 : vector<8x16xf32>
    %cst_184 = arith.constant dense<0.000000e+00> : vector<8xf32>
    %427 = vector.multi_reduction <add>, %426, %cst_184 [1] : vector<8x16xf32> to vector<8xf32>
    %428 = vector.shape_cast %427 : vector<8xf32> to vector<8x1xf32>
    %429 = tpu.reciprocal %428 : vector<8x1xf32> -> vector<8x1xf32>
    %430 = vector.broadcast %429 : vector<8x1xf32> to vector<8x16xf32>
    %431 = arith.mulf %426, %430 : vector<8x16xf32>
    %cst_185 = arith.constant dense<0.000000e+00> : vector<8x32xf32>
    %432 = tpu.matmul %431, %30, %cst_185 {dimension_numbers = #tpu.dot_dimension_numbers<[1], [0], [0], [1], [0, 0, 1, 1], [], []>} : vector<8x16xf32>, vector<16x32xf32>, vector<8x32xf32> -> vector<8x32xf32>
    %cst_186 = arith.constant dense<0.000000e+00> : vector<8x32xf32>
    %433 = tpu.matmul %432, %42, %cst_186 {dimension_numbers = #tpu.dot_dimension_numbers<[1], [0], [0], [1], [0, 0, 1, 1], [], []>} : vector<8x32xf32>, vector<32x32xf32>, vector<8x32xf32> -> vector<8x32xf32>
    %cst_187 = arith.constant dense<0.000000e+00> : vector<8x32xf32>
    %434 = tpu.matmul %334, %48, %cst_187 {dimension_numbers = #tpu.dot_dimension_numbers<[1], [0], [0], [1], [0, 0, 1, 1], [], []>} : vector<8x32xf32>, vector<32x32xf32>, vector<8x32xf32> -> vector<8x32xf32>
    %435 = arith.addf %433, %434 : vector<8x32xf32>
    %436 = vector.broadcast %37 : vector<1x32xf32> to vector<8x32xf32>
    %437 = arith.addf %435, %436 : vector<8x32xf32>
    %cst_188 = arith.constant 0.000000e+00 : f32
    %438 = vector.broadcast %cst_188 : f32 to vector<8x32xf32>
    %439 = arith.subf %438, %437 : vector<8x32xf32>
    %440 = math.exp %439 : vector<8x32xf32>
    %cst_189 = arith.constant 1.000000e+00 : f32
    %441 = vector.broadcast %cst_189 : f32 to vector<8x32xf32>
    %442 = arith.addf %441, %440 : vector<8x32xf32>
    %443 = tpu.reciprocal %442 : vector<8x32xf32> -> vector<8x32xf32>
    %cst_190 = arith.constant dense<0.000000e+00> : vector<8x32xf32>
    %444 = tpu.matmul %432, %44, %cst_190 {dimension_numbers = #tpu.dot_dimension_numbers<[1], [0], [0], [1], [0, 0, 1, 1], [], []>} : vector<8x32xf32>, vector<32x32xf32>, vector<8x32xf32> -> vector<8x32xf32>
    %cst_191 = arith.constant dense<0.000000e+00> : vector<8x32xf32>
    %445 = tpu.matmul %334, %50, %cst_191 {dimension_numbers = #tpu.dot_dimension_numbers<[1], [0], [0], [1], [0, 0, 1, 1], [], []>} : vector<8x32xf32>, vector<32x32xf32>, vector<8x32xf32> -> vector<8x32xf32>
    %446 = arith.addf %444, %445 : vector<8x32xf32>
    %447 = vector.broadcast %38 : vector<1x32xf32> to vector<8x32xf32>
    %448 = arith.addf %446, %447 : vector<8x32xf32>
    %cst_192 = arith.constant 0.000000e+00 : f32
    %449 = vector.broadcast %cst_192 : f32 to vector<8x32xf32>
    %450 = arith.subf %449, %448 : vector<8x32xf32>
    %451 = math.exp %450 : vector<8x32xf32>
    %cst_193 = arith.constant 1.000000e+00 : f32
    %452 = vector.broadcast %cst_193 : f32 to vector<8x32xf32>
    %453 = arith.addf %452, %451 : vector<8x32xf32>
    %454 = tpu.reciprocal %453 : vector<8x32xf32> -> vector<8x32xf32>
    %cst_194 = arith.constant dense<0.000000e+00> : vector<8x32xf32>
    %455 = tpu.matmul %432, %46, %cst_194 {dimension_numbers = #tpu.dot_dimension_numbers<[1], [0], [0], [1], [0, 0, 1, 1], [], []>} : vector<8x32xf32>, vector<32x32xf32>, vector<8x32xf32> -> vector<8x32xf32>
    %456 = vector.broadcast %39 : vector<1x32xf32> to vector<8x32xf32>
    %457 = arith.addf %455, %456 : vector<8x32xf32>
    %cst_195 = arith.constant dense<0.000000e+00> : vector<8x32xf32>
    %458 = tpu.matmul %334, %52, %cst_195 {dimension_numbers = #tpu.dot_dimension_numbers<[1], [0], [0], [1], [0, 0, 1, 1], [], []>} : vector<8x32xf32>, vector<32x32xf32>, vector<8x32xf32> -> vector<8x32xf32>
    %459 = vector.broadcast %40 : vector<1x32xf32> to vector<8x32xf32>
    %460 = arith.addf %458, %459 : vector<8x32xf32>
    %461 = arith.mulf %443, %460 : vector<8x32xf32>
    %462 = arith.addf %457, %461 : vector<8x32xf32>
    %463 = math.tanh %462 : vector<8x32xf32>
    %cst_196 = arith.constant 1.000000e+00 : f32
    %464 = vector.broadcast %cst_196 : f32 to vector<8x32xf32>
    %465 = arith.subf %464, %454 : vector<8x32xf32>
    %466 = arith.mulf %465, %463 : vector<8x32xf32>
    %467 = arith.mulf %454, %334 : vector<8x32xf32>
    %468 = arith.addf %466, %467 : vector<8x32xf32>
    %cst_197 = arith.constant dense<0.000000e+00> : vector<8xf32>
    %469 = vector.multi_reduction <add>, %468, %cst_197 [1] : vector<8x32xf32> to vector<8xf32>
    %470 = vector.shape_cast %469 : vector<8xf32> to vector<8x1xf32>
    %cst_198 = arith.constant 3.200000e+01 : f32
    %471 = vector.broadcast %cst_198 : f32 to vector<8x1xf32>
    %472 = arith.divf %470, %471 : vector<8x1xf32>
    %473 = vector.broadcast %472 : vector<8x1xf32> to vector<8x32xf32>
    %474 = arith.subf %468, %473 : vector<8x32xf32>
    %475 = arith.mulf %474, %474 : vector<8x32xf32>
    %cst_199 = arith.constant dense<0.000000e+00> : vector<8xf32>
    %476 = vector.multi_reduction <add>, %475, %cst_199 [1] : vector<8x32xf32> to vector<8xf32>
    %477 = vector.shape_cast %476 : vector<8xf32> to vector<8x1xf32>
    %cst_200 = arith.constant 3.200000e+01 : f32
    %478 = vector.broadcast %cst_200 : f32 to vector<8x1xf32>
    %479 = arith.divf %477, %478 : vector<8x1xf32>
    %480 = vector.broadcast %472 : vector<8x1xf32> to vector<8x32xf32>
    %481 = arith.subf %468, %480 : vector<8x32xf32>
    %cst_201 = arith.constant 9.99999974E-6 : f32
    %482 = vector.broadcast %cst_201 : f32 to vector<8x1xf32>
    %483 = arith.addf %479, %482 : vector<8x1xf32>
    %484 = math.rsqrt %483 : vector<8x1xf32>
    %485 = vector.broadcast %484 : vector<8x1xf32> to vector<8x32xf32>
    %486 = arith.mulf %481, %485 : vector<8x32xf32>
    %487 = vector.broadcast %34 : vector<1x32xf32> to vector<8x32xf32>
    %488 = arith.mulf %486, %487 : vector<8x32xf32>
    %489 = vector.broadcast %35 : vector<1x32xf32> to vector<8x32xf32>
    %490 = arith.addf %488, %489 : vector<8x32xf32>
    %c0_202 = arith.constant 0 : index
    %c0_203 = arith.constant 0 : index
    %491 = vector.load %arg11[%c0_202, %c0_203] : memref<32x128xf32, #tpu.memory_space<vmem>>, vector<32x128xf32>
    %cst_204 = arith.constant dense<0.000000e+00> : vector<8x128xf32>
    %492 = tpu.matmul %490, %491, %cst_204 {dimension_numbers = #tpu.dot_dimension_numbers<[1], [0], [0], [1], [0, 0, 1, 1], [], []>} : vector<8x32xf32>, vector<32x128xf32>, vector<8x128xf32> -> vector<8x128xf32>
    %c0_205 = arith.constant 0 : index
    %c0_206 = arith.constant 0 : index
    %493 = vector.load %arg12[%c0_205, %c0_206] : memref<1x128xf32, #tpu.memory_space<vmem>>, vector<1x128xf32>
    %494 = vector.broadcast %493 : vector<1x128xf32> to vector<8x128xf32>
    %495 = arith.addf %492, %494 : vector<8x128xf32>
    %c0_207 = arith.constant 0 : index
    %c0_208 = arith.constant 0 : index
    %496 = vector.load %arg18[%c0_207, %c0_208] : memref<32x128xf32, #tpu.memory_space<vmem>>, vector<32x128xf32>
    %cst_209 = arith.constant dense<0.000000e+00> : vector<8x128xf32>
    %497 = tpu.matmul %490, %496, %cst_209 {dimension_numbers = #tpu.dot_dimension_numbers<[1], [0], [0], [1], [0, 0, 1, 1], [], []>} : vector<8x32xf32>, vector<32x128xf32>, vector<8x128xf32> -> vector<8x128xf32>
    %498 = arith.mulf %497, %366 : vector<8x128xf32>
    %c0_210 = arith.constant 0 : index
    %c0_211 = arith.constant 0 : index
    %499 = vector.load %arg19[%c0_210, %c0_211] : memref<128x128xf32, #tpu.memory_space<vmem>>, vector<128x128xf32>
    %cst_212 = arith.constant dense<0.000000e+00> : vector<8x128xf32>
    %500 = tpu.matmul %498, %499, %cst_212 {dimension_numbers = #tpu.dot_dimension_numbers<[1], [0], [0], [1], [0, 0, 1, 1], [], []>} : vector<8x128xf32>, vector<128x128xf32>, vector<8x128xf32> -> vector<8x128xf32>
    %cst_213 = arith.constant 1.000000e+00 : f32
    %501 = vector.broadcast %cst_213 : f32 to vector<8x128xf32>
    %502 = arith.mulf %500, %501 : vector<8x128xf32>
    %503 = arith.addf %495, %502 : vector<8x128xf32>
    %cst_214 = arith.constant 0.000000e+00 : f32
    %504 = vector.broadcast %cst_214 : f32 to vector<8x128xf32>
    %505 = arith.maximumf %503, %504 : vector<8x128xf32>
    %c0_215 = arith.constant 0 : index
    %c0_216 = arith.constant 0 : index
    %506 = vector.load %arg13[%c0_215, %c0_216] : memref<128x32xf32, #tpu.memory_space<vmem>>, vector<128x32xf32>
    %cst_217 = arith.constant dense<0.000000e+00> : vector<8x32xf32>
    %507 = tpu.matmul %505, %506, %cst_217 {dimension_numbers = #tpu.dot_dimension_numbers<[1], [0], [0], [1], [0, 0, 1, 1], [], []>} : vector<8x128xf32>, vector<128x32xf32>, vector<8x32xf32> -> vector<8x32xf32>
    %c0_218 = arith.constant 0 : index
    %c0_219 = arith.constant 0 : index
    %508 = vector.load %arg14[%c0_218, %c0_219] : memref<1x32xf32, #tpu.memory_space<vmem>>, vector<1x32xf32>
    %509 = vector.broadcast %508 : vector<1x32xf32> to vector<8x32xf32>
    %510 = arith.addf %507, %509 : vector<8x32xf32>
    %c0_220 = arith.constant 0 : index
    %c0_221 = arith.constant 0 : index
    %511 = vector.load %arg20[%c0_220, %c0_221] : memref<128x128xf32, #tpu.memory_space<vmem>>, vector<128x128xf32>
    %cst_222 = arith.constant dense<0.000000e+00> : vector<8x128xf32>
    %512 = tpu.matmul %505, %511, %cst_222 {dimension_numbers = #tpu.dot_dimension_numbers<[1], [0], [0], [1], [0, 0, 1, 1], [], []>} : vector<8x128xf32>, vector<128x128xf32>, vector<8x128xf32> -> vector<8x128xf32>
    %513 = arith.mulf %512, %366 : vector<8x128xf32>
    %c0_223 = arith.constant 0 : index
    %c0_224 = arith.constant 0 : index
    %514 = vector.load %arg21[%c0_223, %c0_224] : memref<128x32xf32, #tpu.memory_space<vmem>>, vector<128x32xf32>
    %cst_225 = arith.constant dense<0.000000e+00> : vector<8x32xf32>
    %515 = tpu.matmul %513, %514, %cst_225 {dimension_numbers = #tpu.dot_dimension_numbers<[1], [0], [0], [1], [0, 0, 1, 1], [], []>} : vector<8x128xf32>, vector<128x32xf32>, vector<8x32xf32> -> vector<8x32xf32>
    %cst_226 = arith.constant 1.000000e+00 : f32
    %516 = vector.broadcast %cst_226 : f32 to vector<8x32xf32>
    %517 = arith.mulf %515, %516 : vector<8x32xf32>
    %518 = arith.addf %510, %517 : vector<8x32xf32>
    %519 = arith.addf %518, %468 : vector<8x32xf32>
    %c0_227 = arith.constant 0 : index
    %c0_228 = arith.constant 0 : index
    %c0_229 = arith.constant 0 : index
    %520 = vector.load %arg22[%c0_227, %c0_228, %c0_229] : memref<1x8x32xf32, #tpu.memory_space<vmem>>, vector<1x8x32xf32>
    %521 = vector.shape_cast %520 : vector<1x8x32xf32> to vector<8x32xf32>
    %522 = vector.shape_cast %519 : vector<8x32xf32> to vector<1x8x32xf32>
    tpu.vector_store %arg22[%c0_227, %c0_228, %c0_229], %522 {strides = array<i32>} : memref<1x8x32xf32, #tpu.memory_space<vmem>>, vector<1x8x32xf32>,
    return
  }
  func.func @transform_0(%arg0: i32) -> (i32, i32, i32) {
    %c0_i32 = arith.constant 0 : i32
    %c0_i32_0 = arith.constant 0 : i32
    %c0_i32_1 = arith.constant 0 : i32
    return %arg0, %c0_i32, %c0_i32_0 : i32, i32, i32
  }
  func.func @transform_1(%arg0: i32) -> (i32, i32, i32) {
    %c0_i32 = arith.constant 0 : i32
    %c0_i32_0 = arith.constant 0 : i32
    %c0_i32_1 = arith.constant 0 : i32
    return %arg0, %c0_i32, %c0_i32_0 : i32, i32, i32
  }
  func.func @transform_2(%arg0: i32) -> (i32, i32) {
    %c0_i32 = arith.constant 0 : i32
    %c0_i32_0 = arith.constant 0 : i32
    %c0_i32_1 = arith.constant 0 : i32
    return %c0_i32, %c0_i32_0 : i32, i32
  }
  func.func @transform_3(%arg0: i32) -> (i32, i32) {
    %c0_i32 = arith.constant 0 : i32
    %c0_i32_0 = arith.constant 0 : i32
    %c0_i32_1 = arith.constant 0 : i32
    return %c0_i32, %c0_i32_0 : i32, i32
  }
  func.func @transform_4(%arg0: i32) -> (i32, i32) {
    %c0_i32 = arith.constant 0 : i32
    %c0_i32_0 = arith.constant 0 : i32
    %c0_i32_1 = arith.constant 0 : i32
    return %c0_i32, %c0_i32_0 : i32, i32
  }
  func.func @transform_5(%arg0: i32) -> (i32, i32) {
    %c0_i32 = arith.constant 0 : i32
    %c0_i32_0 = arith.constant 0 : i32
    %c0_i32_1 = arith.constant 0 : i32
    return %c0_i32, %c0_i32_0 : i32, i32
  }
  func.func @transform_6(%arg0: i32) -> (i32, i32) {
    %c0_i32 = arith.constant 0 : i32
    %c0_i32_0 = arith.constant 0 : i32
    %c0_i32_1 = arith.constant 0 : i32
    return %c0_i32, %c0_i32_0 : i32, i32
  }
  func.func @transform_7(%arg0: i32) -> (i32, i32, i32) {
    %c0_i32 = arith.constant 0 : i32
    %c0_i32_0 = arith.constant 0 : i32
    %c0_i32_1 = arith.constant 0 : i32
    %c0_i32_2 = arith.constant 0 : i32
    return %c0_i32, %c0_i32_0, %c0_i32_1 : i32, i32, i32
  }
  func.func @transform_8(%arg0: i32) -> (i32, i32, i32) {
    %c0_i32 = arith.constant 0 : i32
    %c0_i32_0 = arith.constant 0 : i32
    %c0_i32_1 = arith.constant 0 : i32
    %c0_i32_2 = arith.constant 0 : i32
    return %c0_i32, %c0_i32_0, %c0_i32_1 : i32, i32, i32
  }
  func.func @transform_9(%arg0: i32) -> (i32, i32) {
    %c0_i32 = arith.constant 0 : i32
    %c0_i32_0 = arith.constant 0 : i32
    %c0_i32_1 = arith.constant 0 : i32
    return %c0_i32, %c0_i32_0 : i32, i32
  }
  func.func @transform_10(%arg0: i32) -> (i32, i32) {
    %c0_i32 = arith.constant 0 : i32
    %c0_i32_0 = arith.constant 0 : i32
    %c0_i32_1 = arith.constant 0 : i32
    return %c0_i32, %c0_i32_0 : i32, i32
  }
  func.func @transform_11(%arg0: i32) -> (i32, i32) {
    %c0_i32 = arith.constant 0 : i32
    %c0_i32_0 = arith.constant 0 : i32
    %c0_i32_1 = arith.constant 0 : i32
    return %c0_i32, %c0_i32_0 : i32, i32
  }
  func.func @transform_12(%arg0: i32) -> (i32, i32) {
    %c0_i32 = arith.constant 0 : i32
    %c0_i32_0 = arith.constant 0 : i32
    %c0_i32_1 = arith.constant 0 : i32
    return %c0_i32, %c0_i32_0 : i32, i32
  }
  func.func @transform_13(%arg0: i32) -> (i32, i32) {
    %c0_i32 = arith.constant 0 : i32
    %c0_i32_0 = arith.constant 0 : i32
    %c0_i32_1 = arith.constant 0 : i32
    return %c0_i32, %c0_i32_0 : i32, i32
  }
  func.func @transform_14(%arg0: i32) -> (i32, i32) {
    %c0_i32 = arith.constant 0 : i32
    %c0_i32_0 = arith.constant 0 : i32
    %c0_i32_1 = arith.constant 0 : i32
    return %c0_i32, %c0_i32_0 : i32, i32
  }
  func.func @transform_15(%arg0: i32) -> (i32, i32) {
    %c0_i32 = arith.constant 0 : i32
    %c0_i32_0 = arith.constant 0 : i32
    %c0_i32_1 = arith.constant 0 : i32
    return %c0_i32, %c0_i32_0 : i32, i32
  }
  func.func @transform_16(%arg0: i32) -> (i32, i32) {
    %c0_i32 = arith.constant 0 : i32
    %c0_i32_0 = arith.constant 0 : i32
    %c0_i32_1 = arith.constant 0 : i32
    return %c0_i32, %c0_i32_0 : i32, i32
  }
  func.func @transform_17(%arg0: i32) -> (i32, i32) {
    %c0_i32 = arith.constant 0 : i32
    %c0_i32_0 = arith.constant 0 : i32
    %c0_i32_1 = arith.constant 0 : i32
    return %c0_i32, %c0_i32_0 : i32, i32
  }
  func.func @transform_18(%arg0: i32) -> (i32, i32) {
    %c0_i32 = arith.constant 0 : i32
    %c0_i32_0 = arith.constant 0 : i32
    %c0_i32_1 = arith.constant 0 : i32
    return %c0_i32, %c0_i32_0 : i32, i32
  }
  func.func @transform_19(%arg0: i32) -> (i32, i32) {
    %c0_i32 = arith.constant 0 : i32
    %c0_i32_0 = arith.constant 0 : i32
    %c0_i32_1 = arith.constant 0 : i32
    return %c0_i32, %c0_i32_0 : i32, i32
  }
  func.func @transform_20(%arg0: i32) -> (i32, i32) {
    %c0_i32 = arith.constant 0 : i32
    %c0_i32_0 = arith.constant 0 : i32
    %c0_i32_1 = arith.constant 0 : i32
    return %c0_i32, %c0_i32_0 : i32, i32
  }
  func.func @transform_21(%arg0: i32) -> (i32, i32, i32) {
    %c0_i32 = arith.constant 0 : i32
    %c0_i32_0 = arith.constant 0 : i32
    %c0_i32_1 = arith.constant 0 : i32
    return %arg0, %c0_i32, %c0_i32_0 : i32, i32, i32
  }
  func.func @transform_22(%arg0: i32) -> (i32, i32, i32) {
    %c0_i32 = arith.constant 0 : i32
    %c0_i32_0 = arith.constant 0 : i32
    %c0_i32_1 = arith.constant 0 : i32
    return %arg0, %c0_i32, %c0_i32_0 : i32, i32, i32
  }
  func.func @transform_23(%arg0: i32) -> (i32, i32, i32) {
    %c0_i32 = arith.constant 0 : i32
    %c0_i32_0 = arith.constant 0 : i32
    %c0_i32_1 = arith.constant 0 : i32
    return %arg0, %c0_i32, %c0_i32_0 : i32, i32, i32
  }
  func.func @transform_24(%arg0: i32) -> (i32, i32, i32) {
    %c0_i32 = arith.constant 0 : i32
    %c0_i32_0 = arith.constant 0 : i32
    %c0_i32_1 = arith.constant 0 : i32
    return %arg0, %c0_i32, %c0_i32_0 : i32, i32, i32
  }
}

</mosaic_0001>

<bundles_post_ra>
// kernel: _lambda_.1
= control target key start
LH: loop header
LB: loop body
LE: loop exit
PB: predicated region body
PF: predicated region fallthrough
CT: control target
= control target key end

     0   :  { %s5418_s0 = inlined_call_operand.hbm [shape: f32[2,16,48], index: 0, kind: input, shape index: {}]   ;;  %s5419_s1 = inlined_call_operand.hbm [shape: f32[2,8,32], index: 1, kind: input, shape index: {}]   ;;  %s5420_s2 = inlined_call_operand.vmem [shape: f32[2,48], index: 2, kind: input, shape index: {}]   ;;  %s5421_s3 = inlined_call_operand.hbm [shape: f32[48,32], index: 3, kind: input, shape index: {}]   ;;  %s5422_s4 = inlined_call_operand.hbm [shape: f32[48,32], index: 4, kind: input, shape index: {}]   ;;  %s5423_s5 = inlined_call_operand.hbm [shape: f32[32,32], index: 5, kind: input, shape index: {}]   ;;  %s5424_s6 = inlined_call_operand.vmem [shape: f32[4,32], index: 6, kind: input, shape index: {}]   ;;  %s5425_s7 = inlined_call_operand.hbm [shape: f32[3,32,32], index: 7, kind: input, shape index: {}]   ;;  %s5426_s8 = inlined_call_operand.hbm [shape: f32[3,32,32], index: 8, kind: input, shape index: {}]   ;;  %s5427_s9 = inlined_call_operand.vmem [shape: f32[4,32], index: 9, kind: input, shape index: {}]   ;;  %s5428_s10 = inlined_call_operand.hbm [shape: f32[32,128], index: 10, kind: input, shape index: {}]   ;;  %s5429_s11 = inlined_call_operand.hbm [shape: f32[1,128], index: 11, kind: input, shape index: {}]   ;;  %s5430_s12 = inlined_call_operand.hbm [shape: f32[128,32], index: 12, kind: input, shape index: {}]   ;;  %s5431_s13 = inlined_call_operand.hbm [shape: f32[1,32], index: 13, kind: input, shape index: {}]   ;;  %s5432_s14 = inlined_call_operand.hbm [shape: f32[32,16], index: 14, kind: input, shape index: {}]   ;;  %s5433_s15 = inlined_call_operand.vmem [shape: f32[1,16], index: 15, kind: input, shape index: {}]   ;;  %s5434_s16 = inlined_call_operand.hbm [shape: f32[16,32], index: 16, kind: input, shape index: {}]   ;;  %s5435_s17 = inlined_call_operand.hbm [shape: f32[32,128], index: 17, kind: input, shape index: {}]   ;;  %s5436_s18 = inlined_call_operand.hbm [shape: f32[128,128], index: 18, kind: input, shape index: {}]   ;;  %s5437_s19 = inlined_call_operand.hbm [shape: f32[128,128], index: 19, kind: input, shape index: {}]   ;;  %s5438_s20 = inlined_call_operand.hbm [shape: f32[128,32], index: 20, kind: input, shape index: {}]   ;;  %s5439_s21 = inlined_call_operand.hbm [shape: f32[2,8,32], index: 21, kind: output, shape index: {0}]   ;;  %s5440_s22 = inlined_call_operand.hbm [shape: f32[2,8,16], index: 22, kind: output, shape index: {1}]   ;;  %s5441_s23 = inlined_call_operand.vmem [shape: s32[2,8,1], index: 23, kind: output, shape index: {2}]   ;;  %s5442_s24 = inlined_call_operand.vmem [shape: f32[2,1,1], index: 24, kind: output, shape index: {3}]  }
   0x1   :  { %5455 = sst [smem:[#allocation47_spill]] %s5418_s0 }
   0x2   :  { %5456 = sst [smem:[#allocation48_spill]] %s5419_s1 }
   0x3   :  { %5457 = sst [smem:[#allocation49_spill]] %s5420_s2 }
   0x4   :  { %5458 = sst [smem:[#allocation50_spill]] %s5421_s3 }
   0x5   :  { %5459 = sst [smem:[#allocation51_spill]] %s5422_s4 }
   0x6   :  { %5460 = sst [smem:[#allocation52_spill]] %s5423_s5 }
   0x7   :  { %5461 = sst [smem:[#allocation53_spill]] %s5424_s6 }
   0x8   :  { %5462 = sst [smem:[#allocation54_spill]] %s5425_s7 }
   0x9   :  { %5463 = sst [smem:[#allocation55_spill]] %s5426_s8 }
   0xa   :  { %5464 = sst [smem:[#allocation56_spill]] %s5427_s9 }
   0xb   :  { %5465 = sst [smem:[#allocation57_spill]] %s5428_s10 }
   0xc   :  { %5466 = sst [smem:[#allocation58_spill]] %s5429_s11 }
   0xd   :  { %5467 = sst [smem:[#allocation59_spill]] %s5430_s12 }
   0xe   :  { %5468 = sst [smem:[#allocation60_spill]] %s5431_s13 }
   0xf   :  { %5469 = sst [smem:[#allocation61_spill]] %s5432_s14 }
  0x10   :  { %5470 = sst [smem:[#allocation62_spill]] %s5433_s15 }
  0x11   :  { %5471 = sst [smem:[#allocation63_spill]] %s5434_s16 }
  0x12   :  { %5472 = sst [smem:[#allocation64_spill]] %s5435_s17 }
  0x13   :  { %5473 = sst [smem:[#allocation65_spill]] %s5436_s18 }
  0x14   :  { %5474 = sst [smem:[#allocation66_spill]] %s5437_s19 }
  0x15   :  { %5475 = sst [smem:[#allocation67_spill]] %s5438_s20 }
  0x16   :  { %5476 = sst [smem:[#allocation68_spill]] %s5439_s21 }
  0x17   :  { %5477 = sst [smem:[#allocation69_spill]] %s5440_s22 }
  0x18   :  { %5478 = sst [smem:[#allocation70_spill]] %s5441_s23 }
  0x19   :  { %5479 = sst [smem:[#allocation71_spill]] %s5442_s24 }
  0x1a   :  { %30 = vsyncpa [#allocation3], 0 }
  0x1b   :  { %32 = vsyncpa [#allocation3 + $0x1], 0 }
  0x1c   :  { %33 = vsyncpa [#allocation6], 0 }
  0x1d   :  { %35 = vsyncpa [#allocation6 + $0x1], 0 }
  0x1e   :  { %36 = vsyncpa [#allocation9], 0 }
  0x1f   :  { %37 = vsyncpa [#allocation12], 0 }
  0x20   :  { %38 = vsyncpa [#allocation15], 0 }
  0x21   :  { %39 = vsyncpa [#allocation18], 0 }
  0x22   :  { %40 = vsyncpa [#allocation21], 0 }
  0x23   :  { %41 = vsyncpa [#allocation24], 0 }
  0x24   :  { %42 = vsyncpa [#allocation27], 0 }
  0x25   :  { %43 = vsyncpa [#allocation4], 0 }
  0x26   :  { %45 = vsyncpa [#allocation4 + $0x1], 0 }
  0x27   :  { %46 = vsyncpa [#allocation31], 0 }
  0x28   :  { %48 = vsyncpa [#allocation31 + $0x1], 0  ;;  %s4441_s5 = smov 0   ;;  %s4443_s26 = smov 0  }
  0x29   :  { %s4445_s27 = smov 0   ;;  %s4447_s28 = smov 0  }
  0x2a LB: > { %s5480_s29 = sld [smem:[#allocation50_spill]]  ;;  %s4465_s7 = sadd.s32 4294967295, %s4294_s28   ;;  %s4294_s28 = sphi %s4447_s28, %s5526_s28   ;;  %s4290_s27 = sphi %s4445_s27, %s5525_s27   ;;  %s4286_s26 = sphi %s4443_s26, %s5524_s26   ;;  %s4282_s5 = sphi %s4441_s5, %s5523_s5  }
  0x2b   : > { %p3233_p0 = scmp.ge.s32.totalorder %s4294_s28, 1  ;;  %p75_p1 = scmp.eq.s32.totalorder %s4465_s7, 0 }
  0x2c   : > { %p614_p2 = scmp.lt.s32.totalorder %s4294_s28, 3  ;;  %s4296_s3 = smov [#allocation7]  }
  0x2d   : > { %s630_s25 = sshll.u32 %s4296_s3, 4  ;;  %s5482_s1 = sld [smem:[#allocation51_spill]]  ;;  %s631_s25 = int_to_ptr.vmem [resolvable:$true] %s630_s25 }
  0x2e   : > { %p4470_p3 = pnand %p3233_p0, %p614_p2  ;;  %s5484_s3 = sld [smem:[#allocation54_spill]] }
  0x2f   : > { %s4297_s24 = smov [#allocation8]   ;;  %s5447_s15 = smov 128  }
  0x30   : > { %s628_s0 = sshll.u32 %s5480_s29, 4  ;;  %p3409_p4 = pneg %p4470_p3  ;;  %s629_s0 = int_to_ptr.hbm [resolvable:$true] %s628_s0 }
  0x31   : > { %s644_s23 = sshll.u32 %s4297_s24, 4  ;;  %s5448_s9 = smov 8   ;;  %s645_s23 = int_to_ptr.vmem [resolvable:$true] %s644_s23 }
  0x32   : > { %p4482_p6 = pnand %p3409_p4, %p75_p1  ;;  %s5485_s10 = sld [smem:[#allocation57_spill]] }
  0x33   : > { %s642_s6 = sshll.u32 %s5482_s1, 4  ;;  %s4300_s24 = smov [#allocation11]   ;;  %s643_s6 = int_to_ptr.hbm [resolvable:$true] %s642_s6 }
  0x34   : > { %s673_s22 = sshll.u32 %s5484_s3, 4  ;;  %s675_s1 = sshll.u32 %s4300_s24, 4  ;;  %s674_s22 = int_to_ptr.hbm [resolvable:$true] %s673_s22  ;;  %s676_s1 = int_to_ptr.vmem [resolvable:$true] %s675_s1 }
  0x35   : > { %3412 = dma.hbm_to_vmem [thread:$0]  (!%p4482_p6), %s629_s0, 768, %s631_s25, [#allocation6], %s5447_s15, %s5447_s15, %s5448_s9  }
  0x36   : > { %3415 = dma.hbm_to_vmem [thread:$0]  (!%p4482_p6), %s643_s6, 768, %s645_s23, [#allocation9], %s5447_s15, %s5447_s15, %s5448_s9  }
  0x37   : > { %3421 = dma.hbm_to_vmem [thread:$0]  (!%p4482_p6), %s674_s22, 1536, %s676_s1, [#allocation12], %s5447_s15, %s5447_s15, %s5448_s9  }
  0x38   : > { %s704_s4 = sshll.u32 %s5485_s10, 4  ;;  %s4301_s0 = smov [#allocation14]   ;;  %s705_s4 = int_to_ptr.hbm [resolvable:$true] %s704_s4 }
  0x39   : > { %s706_s25 = sshll.u32 %s4301_s0, 4  ;;  %s5486_s12 = sld [smem:[#allocation59_spill]]  ;;  %s707_s25 = int_to_ptr.vmem [resolvable:$true] %s706_s25 }
  0x3a   : > { %3427 = dma.hbm_to_vmem [thread:$0]  (!%p4482_p6), %s705_s4, 512, %s707_s25, [#allocation15], %s5447_s15, %s5447_s15, %s5448_s9  }
  0x3b   : > { %s5487_s14 = sld [smem:[#allocation61_spill]]  ;;  %s4302_s24 = smov [#allocation17]  }
  0x3c   : > { %s732_s22 = sshll.u32 %s4302_s24, 4  ;;  %s4303_s1 = smov [#allocation20]   ;;  %s733_s22 = int_to_ptr.vmem [resolvable:$true] %s732_s22 }
  0x3d   : > { %s758_s0 = sshll.u32 %s4303_s1, 4  ;;  %s5488_s17 = sld [smem:[#allocation64_spill]]  ;;  %s759_s0 = int_to_ptr.vmem [resolvable:$true] %s758_s0 }
  0x3e   : > { %s5489_s19 = sld [smem:[#allocation66_spill]]  ;;  %s4304_s24 = smov [#allocation23]  }
  0x3f   : > { %s730_s23 = sshll.u32 %s5486_s12, 4  ;;  %s5490_s10 = sld [smem:[#allocation52_spill]]  ;;  %s731_s23 = int_to_ptr.hbm [resolvable:$true] %s730_s23 }
  0x40   : > { %3433 = dma.hbm_to_vmem [thread:$0]  (!%p4482_p6), %s731_s23, 2048, %s733_s22, [#allocation18], %s5447_s15, %s5447_s15, %s5448_s9  }
  0x41   : > { %s756_s21 = sshll.u32 %s5487_s14, 4  ;;  %s789_s23 = sshll.u32 %s4304_s24, 4  ;;  %s757_s21 = int_to_ptr.hbm [resolvable:$true] %s756_s21  ;;  %s790_s23 = int_to_ptr.vmem [resolvable:$true] %s789_s23 }
  0x42   : > { %3439 = dma.hbm_to_vmem [thread:$0]  (!%p4482_p6), %s757_s21, 512, %s759_s0, [#allocation21], %s5447_s15, %s5447_s15, %s5448_s9  }
  0x43   : > { %s787_s4 = sshll.u32 %s5488_s17, 4  ;;  %s4305_s22 = smov [#allocation26]   ;;  %s788_s4 = int_to_ptr.hbm [resolvable:$true] %s787_s4 }
  0x44   : > { %s815_s8 = sshll.u32 %s5489_s19, 4  ;;  %s817_s1 = sshll.u32 %s4305_s22, 4  ;;  %s816_s8 = int_to_ptr.hbm [resolvable:$true] %s815_s8  ;;  %s818_s1 = int_to_ptr.vmem [resolvable:$true] %s817_s1 }
  0x45   : > { %3445 = dma.hbm_to_vmem [thread:$0]  (!%p4482_p6), %s788_s4, 512, %s790_s23, [#allocation24], %s5447_s15, %s5447_s15, %s5448_s9  }
  0x46   : > { %s656_s21 = sshll.u32 %s5490_s10, 4  ;;  %s5491_s6 = sld [smem:[#allocation55_spill]]  ;;  %s657_s21 = int_to_ptr.hbm [resolvable:$true] %s656_s21 }
  0x47   : > { %3451 = dma.hbm_to_vmem [thread:$0]  (!%p4482_p6), %s816_s8, 2048, %s818_s1, [#allocation27], %s5447_s15, %s5447_s15, %s5448_s9  }
  0x48   : > { %s4306_s12 = smov [#allocation10]   ;;  %s4307_s10 = smov [#allocation13]  }
  0x49   : > { %s658_s4 = sshll.u32 %s4306_s12, 4  ;;  %s689_s23 = sshll.u32 %s4307_s10, 4  ;;  %s659_s4 = int_to_ptr.vmem [resolvable:$true] %s658_s4  ;;  %s690_s23 = int_to_ptr.vmem [resolvable:$true] %s689_s23 }
  0x4a   : > { %3418 = dma.hbm_to_vmem [thread:$0]  (!%p4482_p6), %s657_s21, 512, %s659_s4, [#allocation9], %s5447_s15, %s5447_s15, %s5448_s9  }
  0x4b   : > { %s5492_s11 = sld [smem:[#allocation58_spill]]  ;;  %s4308_s0 = smov [#allocation16]  }
  0x4c   : > { %s687_s24 = sshll.u32 %s5491_s6, 4  ;;  %s5493_s13 = sld [smem:[#allocation60_spill]]  ;;  %s688_s24 = int_to_ptr.hbm [resolvable:$true] %s687_s24 }
  0x4d   : > { %3424 = dma.hbm_to_vmem [thread:$0]  (!%p4482_p6), %s688_s24, 1536, %s690_s23, [#allocation12], %s5447_s15, %s5447_s15, %s5448_s9  }
  0x4e   : > { %s721_s21 = sshll.u32 %s4308_s0, 4  ;;  %s4309_s25 = smov [#allocation19]   ;;  %s722_s21 = int_to_ptr.vmem [resolvable:$true] %s721_s21 }
  0x4f   : > { %s747_s6 = sshll.u32 %s4309_s25, 4  ;;  %s5494_s16 = sld [smem:[#allocation63_spill]]  ;;  %s748_s6 = int_to_ptr.vmem [resolvable:$true] %s747_s6 }
  0x50   : > { %s5495_s18 = sld [smem:[#allocation65_spill]]  ;;  %s4310_s12 = smov [#allocation22]  }
  0x51   : > { %s719_s8 = sshll.u32 %s5492_s11, 4  ;;  %s4311_s1 = smov [#allocation25]   ;;  %s720_s8 = int_to_ptr.hbm [resolvable:$true] %s719_s8 }
  0x52   : > { %s745_s3 = sshll.u32 %s5493_s13, 4  ;;  %s5496_s20 = sld [smem:[#allocation67_spill]]  ;;  %s746_s3 = int_to_ptr.hbm [resolvable:$true] %s745_s3 }
  0x53   : > { %3430 = dma.hbm_to_vmem [thread:$0]  (!%p4482_p6), %s720_s8, 16, %s722_s21, [#allocation15]  }
  0x54   : > { %3436 = dma.hbm_to_vmem [thread:$0]  (!%p4482_p6), %s746_s3, 16, %s748_s6, [#allocation18]  }
  0x55   : > { %s773_s22 = sshll.u32 %s5494_s16, 4  ;;  %s775_s8 = sshll.u32 %s4310_s12, 4  ;;  %s774_s22 = int_to_ptr.hbm [resolvable:$true] %s773_s22  ;;  %s776_s8 = int_to_ptr.vmem [resolvable:$true] %s775_s8 }
  0x56   : > { %s801_s29 = sshll.u32 %s5495_s18, 4  ;;  %s803_s3 = sshll.u32 %s4311_s1, 4  ;;  %s802_s29 = int_to_ptr.hbm [resolvable:$true] %s801_s29  ;;  %s804_s3 = int_to_ptr.vmem [resolvable:$true] %s803_s3 }
  0x57   : > { %3442 = dma.hbm_to_vmem [thread:$0]  (!%p4482_p6), %s774_s22, 256, %s776_s8, [#allocation21], %s5447_s15, %s5447_s15, %s5448_s9  }
  0x58   : > { %s829_s25 = sshll.u32 %s5496_s20, 4  ;;  %s4312_s6 = smov [#allocation28]   ;;  %s830_s25 = int_to_ptr.hbm [resolvable:$true] %s829_s25 }
  0x59   : > { %3448 = dma.hbm_to_vmem [thread:$0]  (!%p4482_p6), %s802_s29, 2048, %s804_s3, [#allocation24], %s5447_s15, %s5447_s15, %s5448_s9  }
  0x5a   : > { %s831_s4 = sshll.u32 %s4312_s6, 4  ;;  %s3232_s10 = sadd.s32 4294967294, %s4294_s28   ;;  %s832_s4 = int_to_ptr.vmem [resolvable:$true] %s831_s4 }
  0x5b   : > { %3454 = dma.hbm_to_vmem [thread:$0]  (!%p4482_p6), %s830_s25, 2048, %s832_s4, [#allocation27], %s5447_s15, %s5447_s15, %s5448_s9  }
  0x5c   : > { %s4596_s22 = sadd.s32 1, %s4294_s28   ;;  %s61_s24 = sadd.s32 1, %s4290_s27 }
  0x5d   : > { %s58_s23 = ssub.s32 %s4294_s28, %s4596_s22  ;;  %p68_p7 = scmp.ne.s32.totalorder %s4290_s27, %s4286_s26 }
  0x5e   : > { %p59_p8 = scmp.eq.s32.totalorder %s58_s23, 0  ;;  %p69_p9 = scmp.eq.s32.totalorder %s4294_s28, 0 }
  0x5f   : > { %p74_p10 = scmp.ne.s32.totalorder %s4286_s26, %s4282_s5  ;;  %p523_p11 = scmp.eq.s32.totalorder %s4465_s7, 1 }
  0x60   : > { %s4608_s29 = scalar_select %p59_p8, %s4290_s27, %s61_s24  }
  0x61   : > { %p4610_p12 = por %p69_p9, %p68_p7  ;;  %p4616_p13 = por %p75_p1, %p74_p10 }
  0x62   : > { %p4620_p0 = por %p523_p11, %p68_p7  ;;  %p529_p2 = scmp.eq.s32.totalorder %s3232_s10, 1 }
  0x63   : > { %p3484_p4 = scmp.lt.s32.totalorder %s4294_s28, 2  ;;  %s4626_s1 = sand.u32 1, %s4290_s27  }
  0x64   : > { %p4628_p6 = por %p529_p2, %p74_p10  ;;  %s3250_s0 = sshll.u32 %s4626_s1, 4 }
  0x65   : > { %s3330_s21 = sshll.u32 %s4294_s28, 4  ;;  %s5501_s4 = sld [smem:[#allocation47_spill]] }
  0x66   : > { %s849_s15 = scalar_lea.vmem [#allocation2], %s3250_s0  ;;  %p4639_p7 = pnand %p3484_p4, %p4610_p12 }
  0x67   : > { %s857_s9 = sshll.u32 %s849_s15, 4  ;;  %s867_s11 = sand.u32 1, %s4294_s28   ;;  %s858_s9 = int_to_ptr.vmem [resolvable:$true] %s857_s9 }
  0x68   : > { %s3253_s13 = sshll.u32 %s4626_s1, 3  ;;  %s846_s14 = scalar_lea.sflag [#allocation3], %s4626_s1 }
  0x69   : > { %p4104_p9 = pneg %p4639_p7 }
  0x6b   : > { %s854_s24 = scalar_lea.hbm %s5501_s4, %s3330_s21  ;;  %s4107_s0 = scalar_lea.hbm %s5501_s4, 32 }
  0x6c   : > { %s855_s23 = sshll.u32 %s854_s24, 4  ;;  %s856_s23 = int_to_ptr.hbm [resolvable:$true] %s855_s23 }
  0x6d   : > { %s4100_s16 = sshra.s32 %s856_s23, 4  ;;  %s4101_s16 = int_to_ptr.hbm [resolvable:$true] %s4100_s16 }
  0x6e   : > { %s4102_s17 = scalar_lea.hbm %s4101_s16, 16  ;;  %p4108_p12 = scmp.lt.s32.totalorder %s4101_s16, %s5501_s4 }
  0x6f   : > { %p4103_p8 = scmp.ne.s32.totalorder %s4101_s16, %s4102_s17  ;;  %p4109_p2 = scmp.lt.s32.totalorder %s4107_s0, %s4102_s17 }
  0x71   : > { %p4105_p10 = pnand %p4104_p9, %p4103_p8  ;;  %p4110_p4 = por %p4109_p2, %p4108_p12 }
  0x73   : > { %p4106_p11 = pneg %p4105_p10 }
  0x75   : > { %p4111_p5 = pnand %p4110_p4, %p4106_p11 }
  0x77   : > { %4114 = shalt.err (!%p4111_p5)
}
  0x78   : > { %s5503_s1 = smov 8   ;;  %s5504_s6 = smov 128  }
  0x79   : > { %3458 = dma.hbm_to_vmem [thread:$0]  (!%p4639_p7), %s856_s23, 256, %s858_s9, %s846_s14, %s5504_s6, %s5504_s6, %s5503_s1  }
  0x7a   : > { %s3254_s24 = sshll.u32 %s4294_s28, 3  ;;  %s871_s18 = scalar_lea.vmem [#allocation5], %s3253_s13 }
  0x7b   : > { %s879_s15 = sshll.u32 %s871_s18, 4  ;;  %s5505_s20 = sld [smem:[#allocation48_spill]]  ;;  %s880_s15 = int_to_ptr.vmem [resolvable:$true] %s879_s15 }
  0x7c   : > { %s868_s17 = scalar_lea.sflag [#allocation6], %s867_s11 }
  0x81   : > { %s875_s21 = scalar_lea.hbm %s5505_s20, %s3254_s24  ;;  %s4137_s13 = scalar_lea.hbm %s5505_s20, 16 }
  0x82   : > { %s877_s16 = sshll.u32 %s875_s21, 4  ;;  %s878_s16 = int_to_ptr.hbm [resolvable:$true] %s877_s16 }
  0x83   : > { %s4130_s0 = sshra.s32 %s878_s16, 4  ;;  %s4131_s0 = int_to_ptr.hbm [resolvable:$true] %s4130_s0 }
  0x84   : > { %s4132_s25 = scalar_lea.hbm %s4131_s0, 8  ;;  %p4138_p11 = scmp.lt.s32.totalorder %s4131_s0, %s5505_s20 }
  0x85   : > { %p4133_p5 = scmp.ne.s32.totalorder %s4131_s0, %s4132_s25  ;;  %p4139_p12 = scmp.lt.s32.totalorder %s4137_s13, %s4132_s25 }
  0x87   : > { %p4135_p8 = pnand %p4133_p5, %p4104_p9  ;;  %p4140_p2 = por %p4139_p12, %p4138_p11 }
  0x89   : > { %p4136_p10 = pneg %p4135_p8 }
  0x8b   : > { %p4141_p4 = pnand %p4140_p2, %p4136_p10 }
  0x8d   : > { %4144 = shalt.err (!%p4141_p4)
}
  0x8e   : > { %3461 = dma.hbm_to_vmem [thread:$0]  (!%p4639_p7), %s878_s16, 128, %s880_s15, %s868_s17  }
  0x8f   : > { %888 = sbr.rel (%p4470_p3) target bundleno = 5429 (0x1535), region = 104 }
  0x94   : > { %s4680_s11 = sand.u32 1, %s4286_s26  }
  0x95   : > { %s3256_s19 = sshll.u32 %s4680_s11, 4  ;;  %s891_s1 = scalar_lea.sflag [#allocation3], %s4680_s11 }
  0x96   : > { %s4684_s6 = scalar_lea.vmem [#allocation2], %s3256_s19 }
  0x97   : > { %4233 = dma.done.wait (%p4616_p13), %s891_s1, 256  }
  0x98   : > { %4235 = vsyncadd (%p4616_p13), %s891_s1, 4294967040  ;;  %s900_s30 = sand.u32 1, %s4465_s7   ;;  %s4692_s10 = sshll.u32 %s4680_s11, 3 }
  0x99   : > { %s901_s24 = scalar_lea.sflag [#allocation6], %s900_s30  ;;  %s904_s15 = scalar_lea.vmem [#allocation5], %s4692_s10 }
  0x9a   : > { %4237 = dma.done.wait (%p4616_p13), %s901_s24, 128  }
  0x9b   : > { %4239 = vsyncadd (%p4616_p13), %s901_s24, 4294967168 }
  0x9c   : > { %4241 = dma.done.wait (%p75_p1), [#allocation6], 768  }
  0x9d   : > { %4243 = vsyncadd (%p75_p1), [#allocation6], 4294966528 }
  0x9e   : > { %4245 = dma.done.wait (%p75_p1), [#allocation9], 1280  }
  0x9f   : > { %4247 = vsyncadd (%p75_p1), [#allocation9], 4294966016 }
  0xa0   : > { %4249 = dma.done.wait (%p75_p1), [#allocation12], 3072  }
  0xa1   : > { %4251 = vsyncadd (%p75_p1), [#allocation12], 4294964224 }
  0xa2   : > { %4253 = dma.done.wait (%p75_p1), [#allocation15], 528  }
  0xa3   : > { %4255 = vsyncadd (%p75_p1), [#allocation15], 4294966768 }
  0xa4   : > { %4257 = dma.done.wait (%p75_p1), [#allocation18], 2064  }
  0xa5   : > { %4259 = vsyncadd (%p75_p1), [#allocation18], 4294965232 }
  0xa6   : > { %4261 = dma.done.wait (%p75_p1), [#allocation21], 768  }
  0xa7   : > { %4263 = vsyncadd (%p75_p1), [#allocation21], 4294966528 }
  0xa8   : > { %4265 = dma.done.wait (%p75_p1), [#allocation24], 2560  }
  0xa9   : > { %4267 = vsyncadd (%p75_p1), [#allocation24], 4294964736 }
  0xaa   : > { %4269 = dma.done.wait (%p75_p1), [#allocation27], 4096  }
  0xab   : > { %4271 = vsyncadd (%p75_p1), [#allocation27], 4294963200  ;;  %vm1072_vm0 = vcmask 392192   ;;  %vm1225_vm1 = vcmask 261120   ;;  %v1070_v0 = vld [vmem:[%s4684_s6] sm:$0xff]  ;;  %v1071_v4 = vld [vmem:[%s4684_s6 + $0x8] sm:$0xff] }
  0xac   : > { %v4732_v1 = vld [vmem:[%s904_s15] sm:$0xff]  ;;  %v1073_v2 = vsel %vm1072_vm0, %v1070_v0, 0.0  ;;  %v1076_v5 = vsel %vm1072_vm0, %v1071_v4, 0.0  ;;  %v4313_v6 = vmov 48.0   ;;  %v4314_v8 = vmov 32.0   ;;  %v1135_v35 = vld [vmem:[#allocation7 + $0x28] sm:$0xff] }
  0xad   : > { %v1226_v3 = vsel %vm1225_vm1, %v4732_v1, 0.0  ;;  %1074 = vadd.xlane.f32.xlu0 %v1073_v2  ;;  %3558 = vrcp.f32 %v4313_v6  ;;  %v1170_v36 = vld [vmem:[#allocation8 + $0x28] sm:$0xff]  ;;  %1152 = vmatpush.msra.mxu0 %v1135_v35  ;;  %v1134_v37 = vld [vmem:[#allocation7 + $0x20] sm:$0xff]  ;;  %v1169_v38 = vld [vmem:[#allocation8 + $0x20] sm:$0xff]  ;;  %s5506_s21 = sld [smem:[#allocation49_spill]]  ;;  %vm1316_vm13 = vcmask 130048  }
  0xae   : > { %1227 = vadd.xlane.f32.xlu1 %v1226_v3  ;;  %3560 = vrcp.f32 %v4314_v8  ;;  %1181 = vmatpush.msra.mxu1 %v1170_v36  ;;  %v1133_v39 = vld [vmem:[#allocation7 + $0x18] sm:$0xff]  ;;  %v1168_v40 = vld [vmem:[#allocation8 + $0x18] sm:$0xff]  ;;  %v1132_v41 = vld [vmem:[#allocation7 + $0x10] sm:$0xff]  ;;  %s5507_s0 = sld [smem:[#allocation53_spill]]  ;;  %p1062_p1 = scmp.lt.s32.totalorder %s4465_s7, 1 }
  0xaf   : > { %1153 = vmatpush.msra.mxu0 %v1134_v37  ;;  %v1167_v42 = vld [vmem:[#allocation8 + $0x10] sm:$0xff]  ;;  %v1131_v43 = vld [vmem:[#allocation7 + $0x8] sm:$0xff]  ;;  %v1166_v44 = vld [vmem:[#allocation8 + $0x8] sm:$0xff]  ;;  %s5509_s14 = sld [smem:[#allocation56_spill]]  ;;  %s1050_s12 = scalar_lea.vmem [#allocation30], %s4692_s10 }
  0xb0   : > { %1182 = vmatpush.msra.mxu1 %v1169_v38  ;;  %v1130_v45 = vld [vmem:[#allocation7] sm:$0xff]  ;;  %v1165_v46 = vld [vmem:[#allocation8] sm:$0xff]  ;;  %v4758_v50 = vld [vmem:[#allocation10 + $0x18] sm:$0xff]  ;;  %s5512_s23 = sld [smem:[#allocation62_spill]]  ;;  %s2912_s18 = sshll.u32 %s1050_s12, 4  ;;  %s2913_s18 = int_to_ptr.vmem [resolvable:$true] %s2912_s18 }
  0xb1   : > { %1154 = vmatpush.msra.mxu0 %v1133_v39  ;;  %1278 = vmatpush.msra.mxu2 %v4758_v50  ;;  %v4761_v51 = vld [vmem:[#allocation10 + $0x10] sm:$0xff]  ;;  %v4763_v52 = vld [vmem:[#allocation10 + $0x8] sm:$0xff]  ;;  %v4766_v55 = vld [vmem:[#allocation10] sm:$0xff]  ;;  %s5271_s19 = scalar_select %p1062_p1, %s4465_s7, 1 }
  0xb2   : > { %1183 = vmatpush.msra.mxu1 %v1168_v40  ;;  %v4811_v39 = vld [vmem:[#allocation13 + $0x10] sm:$0xff]  ;;  %v4814_v40 = vld [vmem:[#allocation13 + $0x8] sm:$0xff]  ;;  %s5517_s24 = sld [smem:[#allocation70_spill]] }
  0xb3   : > { %v3559_v7 = vpop.eup %3558  ;;  %1155 = vmatpush.msra.mxu0 %v1132_v41  ;;  %1279 = vmatpush.msra.mxu2 %v4761_v51  ;;  %v4817_v41 = vld [vmem:[#allocation13] sm:$0xff]  ;;  %s3275_s1 = sshll.u32 %s5271_s19, 3  ;;  %s5519_s16 = sld [smem:[#allocation71_spill]] }
  0xb4   : > { %v1080_v9 = vmul.f32 48.0, %v3559_v7  ;;  %v3561_v11 = vpop.eup %3560  ;;  %vm1084_vm2 = vweird.f32 %v3559_v7  ;;  %1184 = vmatpush.msra.mxu1 %v1167_v42  ;;  %v4821_v42 = vld [vmem:[#allocation13 + $0x38] sm:$0xff] }
  0xb5   : > { %1077 = vadd.xlane.f32.xlu0 %v1076_v5  ;;  %v1230_v13 = vmul.f32 32.0, %v3561_v11  ;;  %vm1234_vm3 = vweird.f32 %v3561_v11  ;;  %1156 = vmatpush.msra.mxu0 %v1131_v43 }
  0xb6   : > { %v1081_v10 = vsub.f32 1.0, %v1080_v9  ;;  %1185 = vmatpush.msra.mxu1 %v1166_v44  ;;  %1280 = vmatpush.msra.mxu2 %v4763_v52  ;;  %v4824_v44 = vld [vmem:[#allocation13 + $0x30] sm:$0xff] }
  0xb7   : > { %v1231_v15 = vsub.f32 1.0, %v1230_v13  ;;  %1157 = vmatpush.msra.mxu0 %v1130_v45  ;;  %v4827_v45 = vld [vmem:[#allocation13 + $0x28] sm:$0xff] }
  0xb8   : > { %v1082_v12 = vmul.f32 %v3559_v7, %v1081_v10  ;;  %1186 = vmatpush.msra.mxu1 %v1165_v46  ;;  %1281 = vmatpush.msra.mxu2 %v4766_v55  ;;  %v4830_v46 = vld [vmem:[#allocation13 + $0x20] sm:$0xff]  ;;  %s1065_s15 = scalar_lea.vmem %s5517_s24, %s3275_s1 }
  0xb9   : > { %v1232_v17 = vmul.f32 %v3561_v11, %v1231_v15  ;;  %s1068_s17 = scalar_lea.vmem %s5519_s16, %s5271_s19  ;;  %s2879_s19 = scalar_lea.sflag [#allocation31], %s4680_s11 }
  0xba   : > { %v1083_v14 = vadd.f32 %v3559_v7, %v1082_v12 }
  0xbb   : > { %v1233_v20 = vadd.f32 %v3561_v11, %v1232_v17 }
  0xbc   : > { %v1085_v16 = vsel %vm1084_vm2, %v3559_v7, %v1083_v14 }
  0xbd   : > { %v4743_v23 = vsel %vm1234_vm3, %v3561_v11, %v1233_v20 }
 0x120   : > { %v1075_v18 = vpop.xlane.xlu0 %1074 }
 0x121   : > { %v1086_v19 = vmul.f32 %v1085_v16, %v1075_v18  ;;  %v1228_v24 = vpop.xlane.xlu1 %1227 }
 0x122   : > { %v1236_v28 = vmul.f32 %v4743_v23, %v1228_v24 }
 0x123   : > { %v4739_v21 = vsub.f32 %v1070_v0, %v1086_v19  ;;  %v1069_v0 = vld [vmem:[%s5506_s21] sm:$0x3] }
 0x124   : > { %v4750_v30 = vsub.f32 %v4732_v1, %v1236_v28  ;;  %v1124_v6 = vperm.slane %v1069_v0, 0  ;;  %v1127_v10 = vperm.slane %v1069_v0, 1 }
 0x125   : > { %v1090_v22 = vmul.f32 %v4739_v21, %v4739_v21 }
 0x126   : > { %v1238_v33 = vmul.f32 %v4750_v30, %v4750_v30 }
 0x127   : > { %v1092_v25 = vsel %vm1072_vm0, %v1090_v22, 0.0 }
 0x128   : > { %1093 = vadd.xlane.f32.xlu1 %v1092_v25  ;;  %v1078_v26 = vpop.xlane.xlu0 %1077  ;;  %v1239_v34 = vsel %vm1225_vm1, %v1238_v33, 0.0  ;;  %v4781_v25 = vld [vmem:[%s5507_s0] sm:$0xf]  ;;  %s3326_s0 = sshll.u32 %s4465_s7, 3 }
 0x129   : > { %v1087_v27 = vmul.f32 %v1085_v16, %v1078_v26  ;;  %v4786_v28 = vperm.slane %v4781_v25, 0 }
 0x12b   : > { %v4747_v29 = vsub.f32 %v1071_v4, %v1087_v27 }
 0x12d   : > { %v1091_v31 = vmul.f32 %v4747_v29, %v4747_v29 }
 0x12f   : > { %v1095_v32 = vsel %vm1072_vm0, %v1091_v31, 0.0 }
 0x130   : > { %1096 = vadd.xlane.f32.xlu2 %v1095_v32  ;;  %v4790_v32 = vperm.slane %v4781_v25, 1 }
 0x138   : > { %1240 = vadd.xlane.f32.xlu2 %v1239_v34 }
 0x19b   : > { %v1094_v47 = vpop.xlane.xlu1 %1093 }
 0x19c   : > { %v1098_v48 = vmul.f32 %v1094_v47, %v1085_v16  ;;  %v4833_v47 = vld [vmem:[#allocation14 + $0x18] sm:$0xff] }
 0x19e   : > { %v1100_v49 = vadd.f32 1e-05, %v1098_v48  ;;  %v4838_v48 = vld [vmem:[#allocation14 + $0x10] sm:$0xff] }
 0x1a0   : > { %3562 = vrsqrt.f32 %v1100_v49  ;;  %vm1108_vm5 = vweird.f32 %v1100_v49 }
 0x1a3   : > { %v1097_v53 = vpop.xlane.xlu2 %1096 }
 0x1a4   : > { %v1099_v54 = vmul.f32 %v1097_v53, %v1085_v16  ;;  %v4844_v53 = vld [vmem:[#allocation14] sm:$0xff] }
 0x1a6   : > { %v3563_v56 = vpop.eup %3562  ;;  %v1101_v57 = vadd.f32 1e-05, %v1099_v54 }
 0x1a7   : > { %v1103_v58 = vmul.f32 %v3563_v56, %v1100_v49  ;;  %vm1109_vm4 = vweird.f32 %v3563_v56  ;;  %v4841_v49 = vld [vmem:[#allocation14 + $0x8] sm:$0xff] }
 0x1a8   : > { %3564 = vrsqrt.f32 %v1101_v57  ;;  %vm1110_vm6 = vmor %vm1108_vm5, %vm1109_vm4  ;;  %vm1118_vm8 = vweird.f32 %v1101_v57 }
 0x1a9   : > { %v1104_v59 = vmul.f32 %v3563_v56, %v1103_v58 }
 0x1ab   : > { %v1105_v60 = vmul.f32 0.5, %v1104_v59  ;;  %v1241_v61 = vpop.xlane.xlu2 %1240 }
 0x1ac   : > { %v1242_v62 = vmul.f32 %v1241_v61, %v4743_v23 }
 0x1ad   : > { %v1106_v63 = vsub.f32 1.5, %v1105_v60 }
 0x1ae   : > { %v3565_v2 = vpop.eup %3564  ;;  %v1243_v3 = vadd.f32 1e-05, %v1242_v62 }
 0x1af   : > { %v1107_v4 = vmul.f32 %v3563_v56, %v1106_v63  ;;  %v1113_v5 = vmul.f32 %v3565_v2, %v1101_v57  ;;  %vm1119_vm7 = vweird.f32 %v3565_v2 }
 0x1b0   : > { %3566 = vrsqrt.f32 %v1243_v3  ;;  %vm1120_vm9 = vmor %vm1118_vm8, %vm1119_vm7  ;;  %vm1250_vm11 = vweird.f32 %v1243_v3 }
 0x1b1   : > { %v1111_v7 = vsel %vm1110_vm6, %v3563_v56, %v1107_v4  ;;  %v1114_v8 = vmul.f32 %v3565_v2, %v1113_v5 }
 0x1b2   : > { %v1122_v9 = vmul.f32 %v1111_v7, %v4739_v21 }
 0x1b3   : > { %v1115_v11 = vmul.f32 0.5, %v1114_v8 }
 0x1b4   : > { %v1125_v12 = vmul.f32 %v1124_v6, %v1122_v9 }
 0x1b5   : > { %v1116_v13 = vsub.f32 1.5, %v1115_v11 }
 0x1b6   : > { %v3567_v14 = vpop.eup %3566  ;;  %v1128_v15 = vadd.f32 %v1127_v10, %v1125_v12 }
 0x1b7   : > { %v1117_v16 = vmul.f32 %v3565_v2, %v1116_v13  ;;  %v1245_v17 = vmul.f32 %v3567_v14, %v1243_v3  ;;  %vm1251_vm10 = vweird.f32 %v3567_v14 }
 0x1b8   : > { %3276 = vmatmul.msk.f32.vlgmr.msra.gmra.mxu0 %vm1072_vm0, %v1128_v15  ;;  %3278 = vmatmul.msk.f32.vlgmr.msra.gmra.mxu1 %vm1072_vm0, %v1128_v15  ;;  %vm1252_vm12 = vmor %vm1250_vm11, %vm1251_vm10 }
 0x1b9   : > { %v1121_v18 = vsel %vm1120_vm9, %v3565_v2, %v1117_v16  ;;  %v1246_v19 = vmul.f32 %v3567_v14, %v1245_v17 }
 0x1ba   : > { %v1123_v20 = vmul.f32 %v1121_v18, %v4747_v29 }
 0x1bb   : > { %v1247_v21 = vmul.f32 0.5, %v1246_v19 }
 0x1bc   : > { %v1126_v22 = vmul.f32 %v1124_v6, %v1123_v20 }
 0x1bd   : > { %v1248_v24 = vsub.f32 1.5, %v1247_v21 }
 0x1be   : > { %v1129_v26 = vadd.f32 %v1127_v10, %v1126_v22 }
 0x1bf   : > { %v1249_v27 = vmul.f32 %v3567_v14, %v1248_v24 }
 0x1c0   : > { %3277 = vmatmul.msk.f32.gmra.mxu0 %vm1072_vm0, %v1129_v26  ;;  %3279 = vmatmul.msk.f32.gmra.mxu1 %vm1072_vm0, %v1129_v26  ;;  %v4857_v26 = vld [vmem:[#allocation11 + $0x58] sm:$0xff] }
 0x1c1   : > { %v1253_v29 = vsel %vm1252_vm12, %v3567_v14, %v1249_v27  ;;  %v4859_v27 = vld [vmem:[#allocation11 + $0x50] sm:$0xff]  ;;  %1530 = vmatpush.msrb.mxu1 %v4857_v26 }
 0x1c2   : > { %v1254_v31 = vmul.f32 %v1253_v29, %v4750_v30  ;;  %v4807_v30 = vld [vmem:[#allocation13 + $0x18] sm:$0xff] }
 0x1c3   : > { %v4862_v29 = vld [vmem:[#allocation11 + $0x18] sm:$0xff]  ;;  %1531 = vmatpush.msrb.mxu1 %v4859_v27 }
 0x1c4   : > { %v1256_v33 = vmul.f32 %v4786_v28, %v1254_v31  ;;  %v4864_v31 = vld [vmem:[#allocation11 + $0x38] sm:$0xff] }
 0x1c5   : > { %1489 = vmatpush.msrb.mxu0 %v4864_v31 }
 0x1c6   : > { %v1258_v34 = vadd.f32 %v4790_v32, %v1256_v33  ;;  %v4866_v33 = vld [vmem:[#allocation11 + $0x48] sm:$0xff] }
 0x1c7   : > { %1532 = vmatpush.msrb.mxu1 %v4866_v33 }
 0x1c8   : > { %3280 = vmatmul.msk.f32.vlgmr.msra.gmra.mxu2 %vm1225_vm1, %v1258_v34  ;;  %v4870_v34 = vld [vmem:[#allocation11 + $0x10] sm:$0xff] }
 0x235   : > { %v4795_v35 = vpop.f32.mrf.mxu0  ;;  %v4797_v36 = vpop.f32.mrf.mxu1 }
 0x236   : > { %5508 = vst [vmem:[#allocation44_spill] sm:$0xff] %v4797_v36 }
 0x23d   : > { %v4799_v37 = vpop.f32.mrf.mxu0  ;;  %v4801_v38 = vpop.f32.mrf.mxu1 }
 0x23e   : > { %3281 = vmatpush.xpose.msk.msra.mxu3 %vm1225_vm1, %v4799_v37  ;;  %1385 = vmatpush.msrb.mxu2 %v4801_v38 }
 0x240   : > { %1386 = vmatpush.msrb.mxu2 %v4797_v36 }
 0x242   : > { %3282 = vmatpush.xpose.msk.msra.mxu3 %vm1225_vm1, %v4795_v35  ;;  %1429 = vmatpush.msra.mxu2 %v4862_v29 }
 0x244   : > { %1430 = vmatpush.msra.mxu2 %v4870_v34 }
 0x246   : > { %1406 = vmatpush.msrb.mxu3 %v4807_v30 }
 0x248   : > { %1407 = vmatpush.msrb.mxu3 %v4811_v39 }
 0x24a   : > { %1408 = vmatpush.msrb.mxu3 %v4814_v40 }
 0x24b   : > { %v1283_v43 = vpop.f32.mrf.mxu2 }
 0x24c   : > { %1409 = vmatpush.msrb.mxu3 %v4817_v41 }
 0x24d   : > { %3283 = vmatmul.msk.f32.vlgmr.msra.gmra.mxu3 %vm1225_vm1, %v1283_v43  ;;  %v4872_v43 = vld [vmem:[#allocation11 + $0x30] sm:$0xff] }
 0x24e   : > { %1469 = vmatpush.msra.mxu3 %v4821_v42  ;;  %1490 = vmatpush.msrb.mxu0 %v4872_v43 }
 0x250   : > { %1470 = vmatpush.msra.mxu3 %v4824_v44 }
 0x252   : > { %1471 = vmatpush.msra.mxu3 %v4827_v45 }
 0x254   : > { %1472 = vmatpush.msra.mxu3 %v4830_v46 }
 0x255   : > { %3285 = vmatmul.msk.f32.vlgmr.msrb.gmra.mxu3 %vm1225_vm1, %v4732_v1 }
 0x256   : > { %1615 = vmatpush.msrb.mxu3 %v4833_v47 }
 0x258   : > { %1616 = vmatpush.msrb.mxu3 %v4838_v48 }
 0x25a   : > { %1617 = vmatpush.msrb.mxu3 %v4841_v49 }
 0x25c   : > { %1618 = vmatpush.msrb.mxu3 %v4844_v53 }
 0x25d   : > { %3287 = vmatmul.msk.f32.vlgmr.msra.gmra.mxu3 %vm1225_vm1, %v4732_v1 }
 0x25e   : > { %3295 = vmatpush.xpose.msk.msra.mxu3 %vm1225_vm1, %v4799_v37 }
 0x262   : > { %3296 = vmatpush.xpose.msk.msra.mxu3 %vm1225_vm1, %v4795_v35 }
 0x2d0   : > { %v1312_v54 = vpop.f32.mrf.mxu3 }
 0x2d1   : > { %v1315_v56 = vmul.f32 0.17677669, %v1312_v54  ;;  %v4875_v54 = vld [vmem:[#allocation11 + $0x8] sm:$0xff] }
 0x2d2   : > { %1431 = vmatpush.msra.mxu2 %v4875_v54 }
 0x2d3   : > { %v1317_v57 = vsel %vm1316_vm13, %v1315_v56, -inf }
 0x2d4   : > { %v1318_v58 = vrot.slane %v1317_v57, 4 }
 0x2d6   : > { %v1319_v59 = vmax.f32 %v1317_v57, %v1318_v58  ;;  %v4879_v57 = vld [vmem:[#allocation11 + $0x40] sm:$0xff] }
 0x2d7   : > { %v4884_v58 = vld [vmem:[#allocation20 + $0x18] sm:$0xff]  ;;  %1533 = vmatpush.msrb.mxu1 %v4879_v57 }
 0x2d8   : > { %v1320_v60 = vrot.slane %v1319_v59, 2 }
 0x2d9   : > { %1684 = vmatpush.msra.mxu1 %v4884_v58 }
 0x2da   : > { %v1321_v61 = vmax.f32 %v1319_v59, %v1320_v60  ;;  %v4886_v59 = vld [vmem:[#allocation11] sm:$0xff]  ;;  %v4891_v60 = vld [vmem:[#allocation20 + $0x10] sm:$0xff] }
 0x2db   : > { %1432 = vmatpush.msra.mxu2 %v4886_v59  ;;  %1685 = vmatpush.msra.mxu1 %v4891_v60 }
 0x2dc   : > { %v1322_v62 = vrot.slane %v1321_v61, 1 }
 0x2de   : > { %v1323_v63 = vmax.f32 %v1321_v61, %v1322_v62  ;;  %v4895_v61 = vld [vmem:[#allocation20 + $0x8] sm:$0xff] }
 0x2df   : > { %1686 = vmatpush.msra.mxu1 %v4895_v61 }
 0x2e0   : > { %v1324_v0 = vsub.f32 %v1315_v56, %v1323_v63  ;;  %v4877_v56 = vld [vmem:[#allocation11 + $0x28] sm:$0xff] }
 0x2e1   : > { %1491 = vmatpush.msrb.mxu0 %v4877_v56 }
 0x2e2   : > { %v1325_v2 = vmul.f32 1.442695, %v1324_v0 }
 0x2e4   : > { %3568 = vpow2.f32 %v1325_v2 }
 0x2ea   : > { %v3569_v3 = vpop.eup %3568 }
 0x2eb   : > { %v1327_v4 = vsel %vm1316_vm13, %v3569_v3, 0.0 }
 0x2ec   : > { %v1328_v5 = vrot.slane %v1327_v4, 4 }
 0x2ee   : > { %v1329_v6 = vadd.f32 %v1328_v5, %v1327_v4 }
 0x2f0   : > { %v1330_v7 = vrot.slane %v1329_v6, 2 }
 0x2f2   : > { %v1331_v8 = vadd.f32 %v1330_v7, %v1329_v6 }
 0x2f4   : > { %v1332_v9 = vrot.slane %v1331_v8, 1 }
 0x2f6   : > { %v1333_v10 = vadd.f32 %v1332_v9, %v1331_v8 }
 0x2f8   : > { %3570 = vrcp.f32 %v1333_v10  ;;  %v1345_v14 = vand.u32 2147483648, %v1333_v10  ;;  %v1343_v16 = vand.u32 2147483647, %v1333_v10  ;;  %vm1339_vm15 = vweird.f32 %v1333_v10 }
 0x2fa   : > { %v1346_v18 = vor.u32 1.1754944e-38, %v1345_v14  ;;  %vm1344_vm2 = vcmp.eq.f32.partialorder %v1343_v16, 8.507059e+37  ;;  %v4908_v14 = vld [vmem:[#allocation13 + $0x50] sm:$0xff]  ;;  %v4914_v16 = vld [vmem:[#allocation13 + $0x40] sm:$0xff] }
 0x2fe   : > { %v3571_v11 = vpop.eup %3570 }
 0x2ff   : > { %v1335_v12 = vmul.f32 %v3571_v11, %v1333_v10  ;;  %vm1340_vm14 = vweird.f32 %v3571_v11 }
 0x300   : > { %vm1341_vm0 = vmor %vm1339_vm15, %vm1340_vm14 }
 0x301   : > { %v1336_v13 = vsub.f32 1.0, %v1335_v12  ;;  %v4902_v12 = vld [vmem:[#allocation20] sm:$0xff] }
 0x302   : > { %1687 = vmatpush.msra.mxu1 %v4902_v12 }
 0x303   : > { %v1337_v15 = vmul.f32 %v3571_v11, %v1336_v13  ;;  %v4906_v13 = vld [vmem:[#allocation13 + $0x58] sm:$0xff] }
 0x305   : > { %v1338_v17 = vadd.f32 %v3571_v11, %v1337_v15  ;;  %v4911_v15 = vld [vmem:[#allocation13 + $0x48] sm:$0xff] }
 0x307   : > { %v1342_v19 = vsel %vm1341_vm0, %v3571_v11, %v1338_v17  ;;  %v4900_v11 = vld [vmem:[#allocation11 + $0x20] sm:$0xff] }
 0x308   : > { %v1347_v20 = vsel %vm1344_vm2, %v1346_v18, %v1342_v19  ;;  %1492 = vmatpush.msrb.mxu0 %v4900_v11 }
 0x309   : > { %v1348_v21 = vmul.f32 %v3569_v3, %v1347_v20 }
 0x30b   : > { %v1349_v22 = vadd.f32 1e-08, %v1348_v21 }
 0x30d   : > { %v1350_v24 = vsel %vm1316_vm13, %v1349_v22, 0.0 }
 0x30e   : > { %1351 = vadd.xlane.f32.xlu0 %v1350_v24 }
 0x381   : > { %v1352_v62 = vpop.xlane.xlu0 %1351 }
 0x382   : > { %3572 = vrcp.f32 %v1352_v62  ;;  %v1364_v3 = vand.u32 2147483648, %v1352_v62  ;;  %v1362_v5 = vand.u32 2147483647, %v1352_v62  ;;  %vm1358_vm4 = vweird.f32 %v1352_v62 }
 0x384   : > { %v1365_v7 = vor.u32 1.1754944e-38, %v1364_v3  ;;  %vm1363_vm6 = vcmp.eq.f32.partialorder %v1362_v5, 8.507059e+37 }
 0x388   : > { %v3573_v63 = vpop.eup %3572 }
 0x389   : > { %v1354_v0 = vmul.f32 %v3573_v63, %v1352_v62  ;;  %vm1359_vm3 = vweird.f32 %v3573_v63 }
 0x38a   : > { %vm1360_vm5 = vmor %vm1358_vm4, %vm1359_vm3 }
 0x38b   : > { %v1355_v2 = vsub.f32 1.0, %v1354_v0 }
 0x38d   : > { %v1356_v4 = vmul.f32 %v3573_v63, %v1355_v2 }
 0x38f   : > { %v1357_v6 = vadd.f32 %v3573_v63, %v1356_v4 }
 0x391   : > { %v1361_v8 = vsel %vm1360_vm5, %v3573_v63, %v1357_v6 }
 0x392   : > { %v1366_v9 = vsel %vm1363_vm6, %v1365_v7, %v1361_v8 }
 0x393   : > { %v1367_v10 = vmul.f32 %v1366_v9, %v1349_v22 }
 0x395   : > { %3284 = vmatmul.msk.f32.vlgmr.msrb.gmra.mxu2 %vm1316_vm13, %v1367_v10 }
 0x396   : > { %1551 = vmatpush.msrb.mxu2 %v4906_v13 }
 0x398   : > { %1552 = vmatpush.msrb.mxu2 %v4908_v14 }
 0x39a   : > { %1553 = vmatpush.msrb.mxu2 %v4911_v15 }
 0x39c   : > { %1554 = vmatpush.msrb.mxu2 %v4914_v16 }
 0x418   : > { %v1388_v17 = vpop.f32.mrf.mxu2 }
 0x419   : > { %3286 = vmatmul.msk.f32.vlgmr.msra.gmra.mxu2 %vm1225_vm1, %v1388_v17  ;;  %3288 = vmatmul.msk.f32.vlgmr.msrb.gmra.mxu0 %vm1225_vm1, %v1388_v17 }
 0x41a   : > { %3289 = vmatmul.msk.f32.vlgmr.msrb.gmra.mxu1 %vm1225_vm1, %v1388_v17  ;;  %1757 = vmatpush.msra.mxu2 %v4758_v50  ;;  %v1411_v50 = vpop.f32.mrf.mxu3 }
 0x41b   : > { %1857 = vmatpush.msrb.mxu1 %v4801_v38 }
 0x41c   : > { %1758 = vmatpush.msra.mxu2 %v4761_v51  ;;  %v1195_v51 = vld [vmem:[%s5509_s14] sm:$0xf]  ;;  %s5520_s14 = sld [smem:[#allocation69_spill]] }
 0x41d   : > { %1858 = vmatpush.msrb.mxu1 %v4797_v36  ;;  %v4942_v10 = vperm.slane %v1195_v51, 3 }
 0x41e   : > { %1759 = vmatpush.msra.mxu2 %v4763_v52  ;;  %v4936_v52 = vperm.slane %v1195_v51, 1 }
 0x420   : > { %1760 = vmatpush.msra.mxu2 %v4766_v55 }
 0x421   : > { %3290 = vmatmul.msk.f32.vlgmr.msrb.gmra.mxu2 %vm1225_vm1, %v4732_v1 }
 0x422   : > { %1875 = vmatpush.msrb.mxu2 %v4807_v30  ;;  %v1474_v18 = vpop.f32.mrf.mxu3  ;;  %v4939_v30 = vperm.slane %v1195_v51, 0  ;;  %s2910_s13 = scalar_lea.hbm %s5520_s14, %s3326_s0  ;;  %s4180_s7 = scalar_lea.hbm %s5520_s14, 16 }
 0x424   : > { %1876 = vmatpush.msrb.mxu2 %v4811_v39 }
 0x426   : > { %1877 = vmatpush.msrb.mxu2 %v4814_v40 }
 0x428   : > { %1878 = vmatpush.msrb.mxu2 %v4817_v41 }
 0x496   : > { %v1494_v55 = vpop.f32.mrf.mxu0 }
 0x497   : > { %v1495_v19 = vadd.f32 %v1494_v55, %v1474_v18 }
 0x499   : > { %v1498_v20 = vadd.f32 %v4936_v52, %v1495_v19 }
 0x49b   : > { %v1499_v21 = vsub.f32 0.0, %v1498_v20  ;;  %v4944_v20 = vperm.slane %v1195_v51, 2 }
 0x49c   : > { %v1434_v39 = vpop.f32.mrf.mxu2 }
 0x49d   : > { %v1500_v22 = vmul.f32 1.442695, %v1499_v21  ;;  %v1435_v40 = vadd.f32 %v1434_v39, %v1411_v50 }
 0x49f   : > { %3574 = vpow2.f32 %v1500_v22  ;;  %v1438_v41 = vadd.f32 %v4939_v30, %v1435_v40  ;;  %v1535_v22 = vpop.f32.mrf.mxu1 }
 0x4a1   : > { %v1439_v24 = vsub.f32 0.0, %v1438_v41 }
 0x4a3   : > { %v1440_v62 = vmul.f32 1.442695, %v1439_v24 }
 0x4a4   : > { %v1556_v50 = vpop.f32.mrf.mxu2 }
 0x4a5   : > { %v3575_v63 = vpop.eup %3574  ;;  %3576 = vpow2.f32 %v1440_v62  ;;  %v1557_v39 = vadd.f32 %v1556_v50, %v4942_v10 }
 0x4a6   : > { %v1502_v0 = vadd.f32 1.0, %v3575_v63  ;;  %v1536_v63 = vadd.f32 %v1535_v22, %v4944_v20 }
 0x4a8   : > { %3578 = vrcp.f32 %v1502_v0  ;;  %vm1508_vm12 = vweird.f32 %v1502_v0 }
 0x4ab   : > { %v3577_v2 = vpop.eup %3576 }
 0x4ac   : > { %v1442_v3 = vadd.f32 1.0, %v3577_v2 }
 0x4ae   : > { %3580 = vrcp.f32 %v1442_v3  ;;  %v3579_v4 = vpop.eup %3578  ;;  %v1454_v17 = vand.u32 2147483648, %v1442_v3  ;;  %v1452_v55 = vand.u32 2147483647, %v1442_v3  ;;  %vm1448_vm8 = vweird.f32 %v1442_v3 }
 0x4af   : > { %v1504_v5 = vmul.f32 %v3579_v4, %v1502_v0  ;;  %vm1509_vm11 = vweird.f32 %v3579_v4 }
 0x4b0   : > { %v1455_v40 = vor.u32 1.1754944e-38, %v1454_v17  ;;  %vm1453_vm10 = vcmp.eq.f32.partialorder %v1452_v55, 8.507059e+37  ;;  %vm1510_vm14 = vmor %vm1508_vm12, %vm1509_vm11 }
 0x4b1   : > { %v1505_v8 = vsub.f32 1.0, %v1504_v5  ;;  %v1514_v5 = vand.u32 2147483648, %v1502_v0 }
 0x4b3   : > { %v1506_v19 = vmul.f32 %v3579_v4, %v1505_v8 }
 0x4b4   : > { %v3581_v6 = vpop.eup %3580 }
 0x4b5   : > { %v1444_v7 = vmul.f32 %v3581_v6, %v1442_v3  ;;  %vm1449_vm7 = vweird.f32 %v3581_v6  ;;  %v1507_v62 = vadd.f32 %v3579_v4, %v1506_v19  ;;  %v1515_v3 = vor.u32 1.1754944e-38, %v1514_v5  ;;  %v4968_v5 = vld [vmem:[#allocation17 + $0x58] sm:$0xff] }
 0x4b6   : > { %vm1450_vm9 = vmor %vm1448_vm8, %vm1449_vm7 }
 0x4b7   : > { %v1445_v9 = vsub.f32 1.0, %v1444_v7  ;;  %v1512_v7 = vand.u32 2147483647, %v1502_v0  ;;  %v1511_v8 = vsel %vm1510_vm14, %v3579_v4, %v1507_v62 }
 0x4b9   : > { %v1446_v18 = vmul.f32 %v3581_v6, %v1445_v9  ;;  %vm1513_vm15 = vcmp.eq.f32.partialorder %v1512_v7, 8.507059e+37  ;;  %v4971_v7 = vld [vmem:[#allocation17 + $0x50] sm:$0xff] }
 0x4ba   : > { %v1516_v9 = vsel %vm1513_vm15, %v1515_v3, %v1511_v8  ;;  %v4977_v8 = vld [vmem:[#allocation17 + $0x40] sm:$0xff] }
 0x4bb   : > { %v1447_v21 = vadd.f32 %v3581_v6, %v1446_v18  ;;  %v1562_v50 = vsub.f32 1.0, %v1516_v9  ;;  %v1564_v18 = vmul.f32 %v1516_v9, %v4732_v1  ;;  %v4961_v1 = vld [vmem:[#allocation17 + $0x68] sm:$0xff]  ;;  %v4980_v9 = vld [vmem:[#allocation17 + $0x38] sm:$0xff] }
 0x4bd   : > { %v1451_v41 = vsel %vm1450_vm9, %v3581_v6, %v1447_v21 }
 0x4be   : > { %v1456_v24 = vsel %vm1453_vm10, %v1455_v40, %v1451_v41  ;;  %v4956_v40 = vld [vmem:[#allocation17 + $0x78] sm:$0xff]  ;;  %v4958_v41 = vld [vmem:[#allocation17 + $0x70] sm:$0xff] }
 0x4bf   : > { %v1559_v2 = vmul.f32 %v1557_v39, %v1456_v24  ;;  %1644 = vmatpush.msra.mxu0 %v4956_v40 }
 0x4c1   : > { %v1560_v51 = vadd.f32 %v1559_v2, %v1536_v63  ;;  %1645 = vmatpush.msra.mxu0 %v4958_v41  ;;  %v4965_v63 = vld [vmem:[#allocation17 + $0x60] sm:$0xff] }
 0x4c3   : > { %3582 = vtanh.f32 %v1560_v51  ;;  %1646 = vmatpush.msra.mxu0 %v4961_v1  ;;  %v4974_v51 = vld [vmem:[#allocation17 + $0x48] sm:$0xff] }
 0x4c5   : > { %1647 = vmatpush.msra.mxu0 %v4965_v63 }
 0x4c7   : > { %1648 = vmatpush.msra.mxu0 %v4968_v5 }
 0x4c9   : > { %v3583_v17 = vpop.eup %3582  ;;  %1649 = vmatpush.msra.mxu0 %v4971_v7 }
 0x4ca   : > { %v1563_v6 = vmul.f32 %v3583_v17, %v1562_v50  ;;  %v4983_v17 = vld [vmem:[#allocation17 + $0x30] sm:$0xff] }
 0x4cb   : > { %1650 = vmatpush.msra.mxu0 %v4974_v51 }
 0x4cc   : > { %v4949_v55 = vadd.f32 %v1564_v18, %v1563_v6  ;;  %v4986_v18 = vld [vmem:[#allocation17 + $0x28] sm:$0xff] }
 0x4cd   : > { %1651 = vmatpush.msra.mxu0 %v4977_v8 }
 0x4ce   : > { %v1566_v19 = vsel %vm1225_vm1, %v4949_v55, 0.0 }
 0x4cf   : > { %1567 = vadd.xlane.f32.xlu1 %v1566_v19  ;;  %1652 = vmatpush.msra.mxu0 %v4980_v9 }
 0x4d1   : > { %1653 = vmatpush.msra.mxu0 %v4983_v17 }
 0x4d3   : > { %1654 = vmatpush.msra.mxu0 %v4986_v18 }
 0x542   : > { %v1568_v21 = vpop.xlane.xlu1 %1567 }
 0x543   : > { %v1569_v0 = vmul.f32 %v1568_v21, %v4743_v23  ;;  %v4989_v21 = vld [vmem:[#allocation17 + $0x20] sm:$0xff] }
 0x544   : > { %1655 = vmatpush.msra.mxu0 %v4989_v21 }
 0x545   : > { %v1570_v4 = vsub.f32 %v4949_v55, %v1569_v0 }
 0x547   : > { %v1571_v39 = vmul.f32 %v1570_v4, %v1570_v4 }
 0x549   : > { %v1572_v22 = vsel %vm1225_vm1, %v1571_v39, 0.0  ;;  %v4992_v39 = vld [vmem:[#allocation17 + $0x18] sm:$0xff] }
 0x54a   : > { %1573 = vadd.xlane.f32.xlu2 %v1572_v22  ;;  %1656 = vmatpush.msra.mxu0 %v4992_v39 }
 0x5bd   : > { %v1574_v24 = vpop.xlane.xlu2 %1573 }
 0x5be   : > { %v1575_v62 = vmul.f32 %v1574_v24, %v4743_v23  ;;  %v4996_v24 = vperm.slane %v4781_v25, 2 }
 0x5c0   : > { %v1576_v2 = vadd.f32 1e-05, %v1575_v62 }
 0x5c2   : > { %3584 = vrsqrt.f32 %v1576_v2  ;;  %vm1583_vm2 = vweird.f32 %v1576_v2 }
 0x5c8   : > { %v3585_v3 = vpop.eup %3584 }
 0x5c9   : > { %v1578_v50 = vmul.f32 %v3585_v3, %v1576_v2  ;;  %vm1584_vm0 = vweird.f32 %v3585_v3  ;;  %v5009_v2 = vld [vmem:[#allocation17 + $0x10] sm:$0xff] }
 0x5ca   : > { %vm1585_vm3 = vmor %vm1583_vm2, %vm1584_vm0  ;;  %1657 = vmatpush.msra.mxu0 %v5009_v2 }
 0x5cb   : > { %v1579_v6 = vmul.f32 %v3585_v3, %v1578_v50 }
 0x5cd   : > { %v1580_v19 = vmul.f32 0.5, %v1579_v6  ;;  %v5000_v6 = vperm.slane %v4781_v25, 3  ;;  %v5012_v25 = vld [vmem:[#allocation17 + $0x8] sm:$0xff] }
 0x5ce   : > { %1658 = vmatpush.msra.mxu0 %v5012_v25 }
 0x5cf   : > { %v1581_v0 = vsub.f32 1.5, %v1580_v19 }
 0x5d1   : > { %v1582_v22 = vmul.f32 %v3585_v3, %v1581_v0 }
 0x5d3   : > { %v1586_v62 = vsel %vm1585_vm3, %v3585_v3, %v1582_v22 }
 0x5d4   : > { %v1587_v50 = vmul.f32 %v1586_v62, %v1570_v4  ;;  %v5014_v4 = vld [vmem:[#allocation17] sm:$0xff] }
 0x5d5   : > { %1659 = vmatpush.msra.mxu0 %v5014_v4 }
 0x5d6   : > { %v1589_v19 = vmul.f32 %v4996_v24, %v1587_v50 }
 0x5d8   : > { %v1591_v36 = vadd.f32 %v5000_v6, %v1589_v19 }
 0x5da   : > { %3291 = vmatmul.msk.f32.vlgmr.msrb.gmra.mxu3 %vm1225_vm1, %v1591_v36  ;;  %v5018_v36 = vld [vmem:[#allocation16] ss:$0 sm:$0xff] }
 0x5db   : > { %1898 = vmatpush.msrb.mxu3 %v4862_v29  ;;  %5510 = vst [vmem:[#allocation45_spill] sm:$0xff] %v5018_v36 }
 0x5dd   : > { %1899 = vmatpush.msrb.mxu3 %v4870_v34 }
 0x5df   : > { %1900 = vmatpush.msrb.mxu3 %v4875_v54 }
 0x5e1   : > { %1901 = vmatpush.msrb.mxu3 %v4886_v59  ;;  %v5021_v59 = vld [vmem:[#allocation19] ss:$0 sm:$0xff] }
 0x5e2   : > { %5511 = vst [vmem:[#allocation46_spill] sm:$0xff] %v5021_v59 }
 0x65d   : > { %v1620_v29 = vpop.f32.mrf.mxu3 }
 0x65e   : > { %v1621_v34 = vadd.f32 %v5018_v36, %v1620_v29 }
 0x660   : > { %v1623_v54 = vmax.f32 %v1621_v34, 0.0 }
 0x662   : > { %1660 = vmatmul.f32.vlgmr.msra.gmra.mxu0 %v1623_v54 }
 0x6df   : > { %v1661_v3 = vpop.f32.mrf.mxu0 }
 0x6e0   : > { %v1662_v0 = vadd.f32 %v5021_v59, %v1661_v3 }
 0x6e2   : > { %v5025_v22 = vadd.f32 %v1662_v0, %v4949_v55 }
 0x6e4   : > { %3292 = vmatmul.msk.f32.vlgmr.msra.gmra.mxu1 %vm1225_vm1, %v5025_v22  ;;  %v1718_v62 = vsel %vm1225_vm1, %v5025_v22, 0.0 }
 0x6e5   : > { %1719 = vadd.xlane.f32.xlu0 %v1718_v62  ;;  %1937 = vmatpush.msra.mxu1 %v4821_v42 }
 0x6e7   : > { %1938 = vmatpush.msra.mxu1 %v4824_v44 }
 0x6e9   : > { %1939 = vmatpush.msra.mxu1 %v4827_v45 }
 0x6eb   : > { %1940 = vmatpush.msra.mxu1 %v4830_v46 }
 0x758   : > { %v1720_v50 = vpop.xlane.xlu0 %1719 }
 0x759   : > { %v1721_v19 = vmul.f32 %v1720_v50, %v4743_v23 }
 0x75b   : > { %v1722_v55 = vsub.f32 %v5025_v22, %v1721_v19 }
 0x75d   : > { %v1723_v29 = vmul.f32 %v1722_v55, %v1722_v55 }
 0x75f   : > { %v1724_v34 = vsel %vm1225_vm1, %v1723_v29, 0.0 }
 0x760   : > { %1725 = vadd.xlane.f32.xlu1 %v1724_v34 }
 0x7d3   : > { %v1726_v54 = vpop.xlane.xlu1 %1725 }
 0x7d4   : > { %v1727_v3 = vmul.f32 %v1726_v54, %v4743_v23 }
 0x7d6   : > { %v1728_v0 = vadd.f32 1e-05, %v1727_v3 }
 0x7d8   : > { %3586 = vrsqrt.f32 %v1728_v0  ;;  %vm1735_vm5 = vweird.f32 %v1728_v0 }
 0x7de   : > { %v3587_v42 = vpop.eup %3586 }
 0x7df   : > { %v1730_v44 = vmul.f32 %v3587_v42, %v1728_v0  ;;  %vm1736_vm4 = vweird.f32 %v3587_v42 }
 0x7e0   : > { %vm1737_vm6 = vmor %vm1735_vm5, %vm1736_vm4 }
 0x7e1   : > { %v1731_v62 = vmul.f32 %v3587_v42, %v1730_v44 }
 0x7e3   : > { %v1732_v45 = vmul.f32 0.5, %v1731_v62 }
 0x7e5   : > { %v1733_v59 = vsub.f32 1.5, %v1732_v45 }
 0x7e7   : > { %v1734_v46 = vmul.f32 %v3587_v42, %v1733_v59 }
 0x7e9   : > { %v1738_v50 = vsel %vm1737_vm6, %v3587_v42, %v1734_v46 }
 0x7ea   : > { %v1739_v19 = vmul.f32 %v1738_v50, %v1722_v55 }
 0x7ec   : > { %v1740_v36 = vmul.f32 %v1739_v19, %v4786_v28 }
 0x7ee   : > { %v1741_v29 = vadd.f32 %v1740_v36, %v4790_v32 }
 0x7f0   : > { %3294 = vmatmul.msk.f32.vlgmr.msra.gmra.mxu2 %vm1225_vm1, %v1741_v29 }
 0x7f1   : > { %1957 = vmatpush.msra.mxu2 %v4864_v31 }
 0x7f3   : > { %1958 = vmatpush.msra.mxu2 %v4872_v43 }
 0x7f5   : > { %1959 = vmatpush.msra.mxu2 %v4877_v56 }
 0x7f7   : > { %1960 = vmatpush.msra.mxu2 %v4900_v11 }
 0x7f8   : > { %3299 = vmatmul.msk.f32.vlgmr.msrb.gmra.mxu2 %vm1225_vm1, %v5025_v22 }
 0x7f9   : > { %2070 = vmatpush.msrb.mxu2 %v4833_v47 }
 0x7fb   : > { %2071 = vmatpush.msrb.mxu2 %v4838_v48 }
 0x7fd   : > { %2072 = vmatpush.msrb.mxu2 %v4841_v49 }
 0x7ff   : > { %2073 = vmatpush.msrb.mxu2 %v4844_v53 }
 0x873   : > { %v1762_v36 = vpop.f32.mrf.mxu2 }
 0x874   : > { %3297 = vmatmul.msk.f32.vlgmr.msra.gmra.mxu3 %vm1225_vm1, %v1762_v36 }
 0x875   : > { %1996 = vmatpush.msra.mxu3 %v4857_v26 }
 0x877   : > { %1997 = vmatpush.msra.mxu3 %v4859_v27 }
 0x879   : > { %1998 = vmatpush.msra.mxu3 %v4866_v33 }
 0x87b   : > { %1999 = vmatpush.msra.mxu3 %v4879_v57 }
 0x8f7   : > { %v1785_v31 = vpop.f32.mrf.mxu3 }
 0x8f8   : > { %v1788_v43 = vmul.f32 0.17677669, %v1785_v31 }
 0x8fa   : > { %v1789_v47 = vsel %vm1316_vm13, %v1788_v43, -inf }
 0x8fb   : > { %v1790_v48 = vrot.slane %v1789_v47, 4 }
 0x8fd   : > { %v1791_v56 = vmax.f32 %v1789_v47, %v1790_v48  ;;  %v1689_v48 = vpop.f32.mrf.mxu1 }
 0x8ff   : > { %v1792_v49 = vrot.slane %v1791_v56, 2 }
 0x901   : > { %v1793_v11 = vmax.f32 %v1791_v56, %v1792_v49  ;;  %v1693_v49 = vmul.f32 2.0, %v1689_v48 }
 0x903   : > { %v1794_v53 = vrot.slane %v1793_v11, 1 }
 0x905   : > { %v1795_v59 = vmax.f32 %v1793_v11, %v1794_v53  ;;  %v5063_v53 = vld [vmem:[%s5512_s23] ss:$0 sm:$0xff]  ;;  %s2914_s23 = sshll.u32 %s2910_s13, 4  ;;  %s2915_s23 = int_to_ptr.hbm [resolvable:$true] %s2914_s23 }
 0x906   : > { %s4174_s1 = sshra.s32 %s2915_s23, 4  ;;  %s4175_s1 = int_to_ptr.hbm [resolvable:$true] %s4174_s1 }
 0x907   : > { %v1796_v55 = vsub.f32 %v1788_v43, %v1795_v59  ;;  %v5066_v59 = vsub.f32 %v5063_v53, %v1693_v49  ;;  %s4176_s6 = scalar_lea.hbm %s4175_s1, 8  ;;  %p4181_p9 = scmp.lt.s32.totalorder %s4175_s1, %s5520_s14 }
 0x908   : > { %p4177_p3 = scmp.ne.s32.totalorder %s4175_s1, %s4176_s6  ;;  %p4182_p5 = scmp.lt.s32.totalorder %s4180_s7, %s4176_s6 }
 0x909   : > { %v1797_v34 = vmul.f32 1.442695, %v1796_v55  ;;  %v1698_v55 = vsel %vm1316_vm13, %v5066_v59, inf }
 0x90a   : > { %p4178_p13 = pnand %p4177_p3, %p4620_p0  ;;  %p4183_p8 = por %p4182_p5, %p4181_p9 }
 0x90b   : > { %3588 = vpow2.f32 %v1797_v34 }
 0x90c   : > { %p4179_p7 = pneg %p4178_p13 }
 0x90e   : > { %p4184_p10 = pnand %p4183_p8, %p4179_p7 }
 0x911   : > { %v3589_v26 = vpop.eup %3588 }
 0x912   : > { %v1799_v27 = vsel %vm1316_vm13, %v3589_v26, 0.0 }
 0x913   : > { %v1800_v54 = vrot.slane %v1799_v27, 4 }
 0x915   : > { %v1801_v33 = vadd.f32 %v1800_v54, %v1799_v27 }
 0x917   : > { %v1802_v3 = vrot.slane %v1801_v33, 2 }
 0x919   : > { %v1803_v57 = vadd.f32 %v1802_v3, %v1801_v33 }
 0x91b   : > { %v1804_v0 = vrot.slane %v1803_v57, 1 }
 0x91d   : > { %v1805_v42 = vadd.f32 %v1804_v0, %v1803_v57 }
 0x91f   : > { %3590 = vrcp.f32 %v1805_v42  ;;  %v1817_v46 = vand.u32 2147483648, %v1805_v42  ;;  %v1815_v19 = vand.u32 2147483647, %v1805_v42  ;;  %vm1811_vm8 = vweird.f32 %v1805_v42 }
 0x921   : > { %v1818_v36 = vor.u32 1.1754944e-38, %v1817_v46  ;;  %vm1816_vm10 = vcmp.eq.f32.partialorder %v1815_v19, 8.507059e+37 }
 0x925   : > { %v3591_v44 = vpop.eup %3590 }
 0x926   : > { %v1807_v62 = vmul.f32 %v3591_v44, %v1805_v42  ;;  %vm1812_vm7 = vweird.f32 %v3591_v44 }
 0x927   : > { %vm1813_vm9 = vmor %vm1811_vm8, %vm1812_vm7 }
 0x928   : > { %v1808_v45 = vsub.f32 1.0, %v1807_v62 }
 0x92a   : > { %v1809_v50 = vmul.f32 %v3591_v44, %v1808_v45 }
 0x92c   : > { %v1810_v29 = vadd.f32 %v3591_v44, %v1809_v50 }
 0x92e   : > { %v1814_v31 = vsel %vm1813_vm9, %v3591_v44, %v1810_v29 }
 0x92f   : > { %v1819_v43 = vsel %vm1816_vm10, %v1818_v36, %v1814_v31 }
 0x930   : > { %v1820_v47 = vmul.f32 %v3589_v26, %v1819_v43 }
 0x932   : > { %v1821_v56 = vadd.f32 1e-08, %v1820_v47 }
 0x934   : > { %v1822_v11 = vsel %vm1316_vm13, %v1821_v56, 0.0 }
 0x935   : > { %1823 = vadd.xlane.f32.xlu2 %v1822_v11 }
 0x93d   : > { %1699 = vmin.xlane.f32.xlu2 %v1698_v55 }
 0x9a8   : > { %v1824_v34 = vpop.xlane.xlu2 %1823 }
 0x9a9   : > { %3592 = vrcp.f32 %v1824_v34  ;;  %v1836_v33 = vand.u32 2147483648, %v1824_v34  ;;  %v1834_v57 = vand.u32 2147483647, %v1824_v34  ;;  %vm1830_vm12 = vweird.f32 %v1824_v34 }
 0x9ab   : > { %v1837_v42 = vor.u32 1.1754944e-38, %v1836_v33  ;;  %vm1835_vm15 = vcmp.eq.f32.partialorder %v1834_v57, 8.507059e+37 }
 0x9af   : > { %v3593_v26 = vpop.eup %3592 }
 0x9b0   : > { %v1826_v27 = vmul.f32 %v3593_v26, %v1824_v34  ;;  %vm1831_vm11 = vweird.f32 %v3593_v26 }
 0x9b1   : > { %vm1832_vm14 = vmor %vm1830_vm12, %vm1831_vm11 }
 0x9b2   : > { %v1827_v54 = vsub.f32 1.0, %v1826_v27 }
 0x9b4   : > { %v1828_v3 = vmul.f32 %v3593_v26, %v1827_v54 }
 0x9b6   : > { %v1829_v0 = vadd.f32 %v3593_v26, %v1828_v3 }
 0x9b8   : > { %v1833_v44 = vsel %vm1832_vm14, %v3593_v26, %v1829_v0 }
 0x9b9   : > { %v1838_v62 = vsel %vm1835_vm15, %v1837_v42, %v1833_v44 }
 0x9ba   : > { %v1839_v45 = vmul.f32 %v1838_v62, %v1821_v56  ;;  %v1701_v62 = vlaneseq }
 0x9bc   : > { %3298 = vmatmul.msk.f32.vlgmr.msrb.gmra.mxu1 %vm1316_vm13, %v1839_v45 }
 0x9bd   : > { %2016 = vmatpush.msrb.mxu1 %v4906_v13 }
 0x9bf   : > { %2017 = vmatpush.msrb.mxu1 %v4908_v14  ;;  %v1880_v14 = vpop.f32.mrf.mxu2 }
 0x9c1   : > { %2018 = vmatpush.msrb.mxu1 %v4911_v15 }
 0x9c3   : > { %2019 = vmatpush.msrb.mxu1 %v4914_v16 }
 0x9c4   : > { %3301 = vmatmul.msk.f32.vlgmr.msra.gmra.mxu1 %vm1225_vm1, %v5025_v22 }
 0x9c5   : > { %2141 = vmatpush.msra.mxu1 %v4956_v40 }
 0x9c7   : > { %2142 = vmatpush.msra.mxu1 %v4958_v41 }
 0x9c9   : > { %2143 = vmatpush.msra.mxu1 %v4961_v1 }
 0x9cb   : > { %2144 = vmatpush.msra.mxu1 %v4965_v63 }
 0x9cc   : > { %3304 = vmatmul.msk.f32.vlgmr.msrb.gmra.mxu1 %vm1225_vm1, %v5025_v22 }
 0x9cd   : > { %2145 = vmatpush.msra.mxu1 %v4968_v5 }
 0x9cf   : > { %2146 = vmatpush.msra.mxu1 %v4971_v7 }
 0x9d1   : > { %2147 = vmatpush.msra.mxu1 %v4974_v51 }
 0x9d3   : > { %2148 = vmatpush.msra.mxu1 %v4977_v8 }
 0x9d5   : > { %2149 = vmatpush.msra.mxu1 %v4980_v9 }
 0x9d7   : > { %2150 = vmatpush.msra.mxu1 %v4983_v17 }
 0x9d9   : > { %2151 = vmatpush.msra.mxu1 %v4986_v18 }
 0x9db   : > { %2152 = vmatpush.msra.mxu1 %v4989_v21 }
 0x9dd   : > { %2153 = vmatpush.msra.mxu1 %v4992_v39 }
 0x9df   : > { %2154 = vmatpush.msra.mxu1 %v5009_v2 }
 0x9e1   : > { %2155 = vmatpush.msra.mxu1 %v5012_v25 }
 0x9e3   : > { %2156 = vmatpush.msra.mxu1 %v5014_v4 }
 0xa39   : > { %v1860_v13 = vpop.f32.mrf.mxu1 }
 0xa3a   : > { %3300 = vmatmul.msk.f32.vlgmr.msrb.gmra.mxu3 %vm1225_vm1, %v1860_v13  ;;  %3302 = vmatmul.msk.f32.vlgmr.msra.gmra.mxu2 %vm1225_vm1, %v1860_v13 }
 0xa41   : > { %v1942_v15 = vpop.f32.mrf.mxu1 }
 0xa42   : > { %3303 = vmatmul.msk.f32.vlgmr.msra.gmra.mxu3 %vm1225_vm1, %v1860_v13 }
 0xa49   : > { %v2021_v43 = vpop.f32.mrf.mxu1 }
 0xa4a   : > { %v2022_v11 = vadd.f32 %v2021_v43, %v4942_v10  ;;  %v2204_v43 = vld [vmem:[#allocation28 + $0x30] sm:$0xff] }
 0xabd   : > { %v1903_v16 = vpop.f32.mrf.mxu3  ;;  %v1962_v40 = vpop.f32.mrf.mxu2 }
 0xabe   : > { %v1904_v41 = vadd.f32 %v1903_v16, %v1880_v14  ;;  %v1963_v1 = vadd.f32 %v1962_v40, %v1942_v15  ;;  %v5103_v16 = vand.u32 127, %v1701_v62 }
 0xac0   : > { %v1906_v63 = vadd.f32 %v1904_v41, %v4939_v30  ;;  %v1965_v5 = vadd.f32 %v1963_v1, %v4936_v52  ;;  %v1700_v41 = vpop.xlane.xlu2 %1699 }
 0xac1   : > { %vm1703_vm9 = vcmp.le.f32.partialorder %v5066_v59, %v1700_v41  ;;  %v2213_v59 = vld [vmem:[#allocation28 + $0x78] sm:$0xff] }
 0xac2   : > { %v1907_v7 = vsub.f32 0.0, %v1906_v63  ;;  %v1966_v51 = vsub.f32 0.0, %v1965_v5  ;;  %v5454_v63 = vcvt.s32.f32 %v5103_v16  ;;  %v5157_v41 = vld [vmem:[#allocation25 + $0x38] sm:$0xff] }
 0xac4   : > { %v1908_v8 = vmul.f32 1.442695, %v1907_v7  ;;  %v1967_v9 = vmul.f32 1.442695, %v1966_v51  ;;  %v1705_v5 = vsel %vm1703_vm9, %v5454_v63, 16.0  ;;  %v5116_v51 = vld [vmem:[#allocation23 + $0x10] sm:$0xff] }
 0xac5   : > { %v2001_v49 = vpop.f32.mrf.mxu3  ;;  %v1706_v7 = vsel %vm1316_vm13, %v1705_v5, inf  ;;  %v5160_v5 = vld [vmem:[#allocation25 + $0x30] sm:$0xff] }
 0xac6   : > { %3594 = vpow2.f32 %v1908_v8  ;;  %v2002_v27 = vadd.f32 %v2001_v49, %v4944_v20  ;;  %v5119_v8 = vld [vmem:[#allocation23 + $0x8] sm:$0xff]  ;;  %v2200_v49 = vld [vmem:[#allocation28 + $0x10] sm:$0xff] }
 0xac7   : > { %3596 = vpow2.f32 %v1967_v9  ;;  %v5122_v9 = vld [vmem:[#allocation23] sm:$0xff] }
 0xacc   : > { %v3595_v17 = vpop.eup %3594 }
 0xacd   : > { %v3597_v18 = vpop.eup %3596  ;;  %v1910_v21 = vadd.f32 1.0, %v3595_v17  ;;  %v2212_v17 = vld [vmem:[#allocation28 + $0x70] sm:$0xff] }
 0xace   : > { %v1969_v39 = vadd.f32 1.0, %v3597_v18 }
 0xacf   : > { %3598 = vrcp.f32 %v1910_v21  ;;  %v1922_v19 = vand.u32 2147483648, %v1910_v21  ;;  %v1920_v31 = vand.u32 2147483647, %v1910_v21  ;;  %vm1916_vm2 = vweird.f32 %v1910_v21 }
 0xad0   : > { %3600 = vrcp.f32 %v1969_v39  ;;  %v1981_v33 = vand.u32 2147483648, %v1969_v39  ;;  %vm1975_vm6 = vweird.f32 %v1969_v39  ;;  %v1979_v3 = vand.u32 2147483647, %v1969_v39 }
 0xad1   : > { %v1923_v56 = vor.u32 1.1754944e-38, %v1922_v19  ;;  %vm1921_vm4 = vcmp.eq.f32.partialorder %v1920_v31, 8.507059e+37  ;;  %v2208_v19 = vld [vmem:[#allocation28 + $0x50] sm:$0xff]  ;;  %v2205_v31 = vld [vmem:[#allocation28 + $0x38] sm:$0xff] }
 0xad2   : > { %v1982_v42 = vor.u32 1.1754944e-38, %v1981_v33  ;;  %vm1980_vm8 = vcmp.eq.f32.partialorder %v1979_v3, 8.507059e+37  ;;  %v5139_v3 = vld [vmem:[#allocation25 + $0x68] sm:$0xff] }
 0xad5   : > { %v3599_v2 = vpop.eup %3598 }
 0xad6   : > { %v3601_v25 = vpop.eup %3600  ;;  %v1912_v4 = vmul.f32 %v3599_v2, %v1910_v21  ;;  %vm1917_vm0 = vweird.f32 %v3599_v2 }
 0xad7   : > { %v1971_v46 = vmul.f32 %v3601_v25, %v1969_v39  ;;  %vm1918_vm3 = vmor %vm1916_vm2, %vm1917_vm0  ;;  %vm1976_vm5 = vweird.f32 %v3601_v25 }
 0xad8   : > { %v1913_v50 = vsub.f32 1.0, %v1912_v4  ;;  %vm1977_vm7 = vmor %vm1975_vm6, %vm1976_vm5  ;;  %v2211_v4 = vld [vmem:[#allocation28 + $0x68] sm:$0xff] }
 0xad9   : > { %v1972_v29 = vsub.f32 1.0, %v1971_v46  ;;  %v2210_v46 = vld [vmem:[#allocation28 + $0x60] sm:$0xff] }
 0xada   : > { %v1914_v36 = vmul.f32 %v3599_v2, %v1913_v50  ;;  %v2209_v50 = vld [vmem:[#allocation28 + $0x58] sm:$0xff] }
 0xadb   : > { %v1973_v47 = vmul.f32 %v3601_v25, %v1972_v29  ;;  %v2207_v29 = vld [vmem:[#allocation28 + $0x48] sm:$0xff] }
 0xadc   : > { %v1915_v48 = vadd.f32 %v3599_v2, %v1914_v36  ;;  %v2206_v36 = vld [vmem:[#allocation28 + $0x40] sm:$0xff] }
 0xadd   : > { %v1974_v26 = vadd.f32 %v3601_v25, %v1973_v47  ;;  %v2203_v47 = vld [vmem:[#allocation28 + $0x28] sm:$0xff] }
 0xade   : > { %v1919_v55 = vsel %vm1918_vm3, %v3599_v2, %v1915_v48  ;;  %v2202_v48 = vld [vmem:[#allocation28 + $0x20] sm:$0xff] }
 0xadf   : > { %v1924_v34 = vsel %vm1921_vm4, %v1923_v56, %v1919_v55  ;;  %v1978_v0 = vsel %vm1977_vm7, %v3601_v25, %v1974_v26  ;;  %v2201_v56 = vld [vmem:[#allocation28 + $0x18] sm:$0xff]  ;;  %v2198_v55 = vld [vmem:[#allocation28] sm:$0xff] }
 0xae0   : > { %v2024_v54 = vmul.f32 %v2022_v11, %v1924_v34  ;;  %v1983_v44 = vsel %vm1980_vm8, %v1982_v42, %v1978_v0  ;;  %v2199_v11 = vld [vmem:[#allocation28 + $0x8] sm:$0xff]  ;;  %v5145_v0 = vld [vmem:[#allocation25 + $0x58] sm:$0xff]  ;;  %v5148_v42 = vld [vmem:[#allocation25 + $0x50] sm:$0xff]  ;;  %vm2317_vm8 = vcmask 7168  }
 0xae1   : > { %v2027_v45 = vsub.f32 1.0, %v1983_v44  ;;  %v2029_v15 = vmul.f32 %v1983_v44, %v5025_v22  ;;  %v5114_v22 = vld [vmem:[#allocation23 + $0x18] sm:$0xff] }
 0xae2   : > { %v2025_v57 = vadd.f32 %v2024_v54, %v2002_v27  ;;  %2094 = vmatpush.msrb.mxu3 %v5114_v22  ;;  %v5134_v27 = vld [vmem:[#allocation25 + $0x78] sm:$0xff]  ;;  %v5136_v54 = vld [vmem:[#allocation25 + $0x70] sm:$0xff] }
 0xae3   : > { %2119 = vmatpush.msrb.mxu0 %v5134_v27 }
 0xae4   : > { %3602 = vtanh.f32 %v2025_v57  ;;  %2095 = vmatpush.msrb.mxu3 %v5116_v51  ;;  %v5142_v57 = vld [vmem:[#allocation25 + $0x60] sm:$0xff] }
 0xae5   : > { %2120 = vmatpush.msrb.mxu0 %v5136_v54 }
 0xae6   : > { %2096 = vmatpush.msrb.mxu3 %v5119_v8 }
 0xae7   : > { %2121 = vmatpush.msrb.mxu0 %v5139_v3 }
 0xae8   : > { %2097 = vmatpush.msrb.mxu3 %v5122_v9 }
 0xae9   : > { %2122 = vmatpush.msrb.mxu0 %v5142_v57 }
 0xaea   : > { %v3603_v13 = vpop.eup %3602  ;;  %2214 = vmatpush.msra.mxu3 %v2213_v59  ;;  %v5163_v59 = vld [vmem:[#allocation25 + $0x28] sm:$0xff] }
 0xaeb   : > { %v2028_v14 = vmul.f32 %v3603_v13, %v2027_v45  ;;  %2123 = vmatpush.msrb.mxu0 %v5145_v0  ;;  %v5151_v45 = vld [vmem:[#allocation25 + $0x48] sm:$0xff] }
 0xaec   : > { %2215 = vmatpush.msra.mxu3 %v2212_v17 }
 0xaed   : > { %v5105_v40 = vadd.f32 %v2029_v15, %v2028_v14  ;;  %2124 = vmatpush.msrb.mxu0 %v5148_v42  ;;  %v5154_v14 = vld [vmem:[#allocation25 + $0x40] sm:$0xff] }
 0xaee   : > { %2216 = vmatpush.msra.mxu3 %v2211_v4 }
 0xaef   : > { %v2031_v1 = vsel %vm1225_vm1, %v5105_v40, 0.0  ;;  %2125 = vmatpush.msrb.mxu0 %v5151_v45 }
 0xaf0   : > { %2032 = vadd.xlane.f32.xlu0 %v2031_v1  ;;  %2217 = vmatpush.msra.mxu3 %v2210_v46  ;;  %v5176_v46 = vld [vmem:[#allocation25 + $0x10] sm:$0xff] }
 0xaf1   : > { %2126 = vmatpush.msrb.mxu0 %v5154_v14 }
 0xaf2   : > { %2218 = vmatpush.msra.mxu3 %v2209_v50  ;;  %v5180_v50 = vld [vmem:[#allocation25 + $0x8] sm:$0xff] }
 0xaf3   : > { %2127 = vmatpush.msrb.mxu0 %v5157_v41 }
 0xaf4   : > { %2219 = vmatpush.msra.mxu3 %v2208_v19  ;;  %v5195_v19 = vld [vmem:[#allocation26 + $0x78] sm:$0xff] }
 0xaf5   : > { %2128 = vmatpush.msrb.mxu0 %v5160_v5  ;;  %2177 = vmatpush.msra.mxu2 %v5195_v19 }
 0xaf6   : > { %2220 = vmatpush.msra.mxu3 %v2207_v29  ;;  %v5197_v29 = vld [vmem:[#allocation26 + $0x70] sm:$0xff] }
 0xaf7   : > { %2129 = vmatpush.msrb.mxu0 %v5163_v59  ;;  %2178 = vmatpush.msra.mxu2 %v5197_v29 }
 0xaf8   : > { %1707 = vmin.xlane.f32.xlu0 %v1706_v7  ;;  %2221 = vmatpush.msra.mxu3 %v2206_v36 }
 0xafa   : > { %2222 = vmatpush.msra.mxu3 %v2205_v31 }
 0xafc   : > { %2223 = vmatpush.msra.mxu3 %v2204_v43  ;;  %v5209_v43 = vld [vmem:[#allocation26 + $0x50] sm:$0xff] }
 0xafe   : > { %2224 = vmatpush.msra.mxu3 %v2203_v47  ;;  %v5212_v47 = vld [vmem:[#allocation26 + $0x48] sm:$0xff] }
 0xb00   : > { %2225 = vmatpush.msra.mxu3 %v2202_v48 }
 0xb02   : > { %2226 = vmatpush.msra.mxu3 %v2201_v56  ;;  %v5215_v56 = vld [vmem:[#allocation26 + $0x40] sm:$0xff] }
 0xb04   : > { %2227 = vmatpush.msra.mxu3 %v2200_v49  ;;  %v5218_v49 = vld [vmem:[#allocation26 + $0x38] sm:$0xff] }
 0xb06   : > { %2228 = vmatpush.msra.mxu3 %v2199_v11 }
 0xb08   : > { %2229 = vmatpush.msra.mxu3 %v2198_v55  ;;  %v5221_v55 = vld [vmem:[#allocation26 + $0x30] sm:$0xff] }
 0xb63   : > { %v2033_v18 = vpop.xlane.xlu0 %2032 }
 0xb64   : > { %v2034_v21 = vmul.f32 %v2033_v18, %v4743_v23  ;;  %v5166_v18 = vld [vmem:[#allocation25 + $0x20] sm:$0xff] }
 0xb65   : > { %2130 = vmatpush.msrb.mxu0 %v5166_v18 }
 0xb66   : > { %v5128_v39 = vsub.f32 %v5105_v40, %v2034_v21 }
 0xb68   : > { %v2036_v2 = vmul.f32 %v5128_v39, %v5128_v39 }
 0xb6a   : > { %v2037_v25 = vsel %vm1225_vm1, %v2036_v2, 0.0  ;;  %v5170_v2 = vld [vmem:[#allocation25 + $0x18] sm:$0xff] }
 0xb6b   : > { %2038 = vadd.xlane.f32.xlu1 %v2037_v25  ;;  %2131 = vmatpush.msrb.mxu0 %v5170_v2 }
 0xb6d   : > { %2132 = vmatpush.msrb.mxu0 %v5176_v46 }
 0xb6f   : > { %2133 = vmatpush.msrb.mxu0 %v5180_v50 }
 0xbde   : > { %v2039_v34 = vpop.xlane.xlu1 %2038 }
 0xbdf   : > { %v2040_v26 = vmul.f32 %v2039_v34, %v4743_v23 }
 0xbe1   : > { %v2041_v33 = vadd.f32 1e-05, %v2040_v26  ;;  %v5224_v26 = vld [vmem:[#allocation26 + $0x28] sm:$0xff] }
 0xbe3   : > { %3604 = vrsqrt.f32 %v2041_v33  ;;  %vm2048_vm11 = vweird.f32 %v2041_v33 }
 0xbe9   : > { %v3605_v44 = vpop.eup %3604 }
 0xbea   : > { %v2043_v62 = vmul.f32 %v3605_v44, %v2041_v33  ;;  %vm2049_vm10 = vweird.f32 %v3605_v44  ;;  %v5228_v33 = vld [vmem:[#allocation26 + $0x20] sm:$0xff] }
 0xbeb   : > { %vm2050_vm12 = vmor %vm2048_vm11, %vm2049_vm10 }
 0xbec   : > { %v2044_v13 = vmul.f32 %v3605_v44, %v2043_v62  ;;  %v5452_v62 = vmov 0.0  }
 0xbee   : > { %v2045_v15 = vmul.f32 0.5, %v2044_v13 }
 0xbf0   : > { %v2046_v1 = vsub.f32 1.5, %v2045_v15 }
 0xbf2   : > { %v2047_v7 = vmul.f32 %v3605_v44, %v2046_v1 }
 0xbf4   : > { %v2051_v17 = vsel %vm2050_vm12, %v3605_v44, %v2047_v7  ;;  %v5232_v44 = vld [vmem:[#allocation26 + $0x18] sm:$0xff]  ;;  %v5513_v7 = vld [vmem:[#allocation44_spill] sm:$0xff] }
 0xbf5   : > { %v2052_v21 = vmul.f32 %v2051_v17, %v5128_v39  ;;  %v5185_v39 = vld [vmem:[#allocation25] sm:$0xff]  ;;  %v5239_v17 = vld [vmem:[#allocation26 + $0x10] sm:$0xff] }
 0xbf6   : > { %2134 = vmatpush.msrb.mxu0 %v5185_v39 }
 0xbf7   : > { %v2053_v25 = vmul.f32 %v2052_v21, %v4996_v24  ;;  %v5242_v21 = vld [vmem:[#allocation26 + $0x8] sm:$0xff] }
 0xbf8   : > { %2251 = vmatpush.msra.mxu0 %v4884_v58  ;;  %v5203_v58 = vld [vmem:[#allocation26 + $0x60] sm:$0xff] }
 0xbf9   : > { %v2054_v4 = vadd.f32 %v2053_v25, %v5000_v6  ;;  %v5244_v25 = vld [vmem:[#allocation26] sm:$0xff] }
 0xbfa   : > { %2252 = vmatpush.msra.mxu0 %v4891_v60 }
 0xbfb   : > { %3305 = vmatmul.msk.f32.vlgmr.msrb.gmra.mxu2 %vm1225_vm1, %v2054_v4  ;;  %3306 = vmatmul.msk.f32.vlgmr.msrb.gmra.mxu3 %vm1225_vm1, %v2054_v4 }
 0xbfc   : > { %3312 = vmatpush.xpose.msk.msrb.mxu3 %vm1225_vm1, %v4799_v37  ;;  %2253 = vmatpush.msra.mxu0 %v4895_v61  ;;  %v1708_v37 = vpop.xlane.xlu0 %1707  ;;  %v5206_v61 = vld [vmem:[#allocation26 + $0x58] sm:$0xff] }
 0xbfd   : > { %v3332_v36 = vceil.f32 %v1708_v37  ;;  %v3333_v31 = vfloor.f32 %v1708_v37  ;;  %vm3331_vm14 = vcmp.lt.s32.totalorder %v1708_v37, 0  ;;  %v5514_v37 = vld [vmem:[#allocation45_spill] sm:$0xff] }
 0xbfe   : > { %2254 = vmatpush.msra.mxu0 %v4902_v12 }
 0xbff   : > { %v3334_v60 = vsel %vm3331_vm14, %v3332_v36, %v3333_v31 }
 0xc00   : > { %3313 = vmatpush.xpose.msk.msrb.mxu3 %vm1225_vm1, %v4795_v35  ;;  %v5200_v35 = vld [vmem:[#allocation26 + $0x68] sm:$0xff]  ;;  %v3335_v12 = vcvt.f32.s32 %v3334_v60 }
 0xc01   : > { %2179 = vmatpush.msra.mxu2 %v5200_v35 }
 0xc02   : > { %v1712_v48 = vadd.s32 1, %v3335_v12  ;;  %v1710_v34 = vmul.u32 8, %v3335_v12 }
 0xc03   : > { %2180 = vmatpush.msra.mxu2 %v5203_v58 }
 0xc04   : > { %v1713_v11 = vmul.u32 8, %v1712_v48  ;;  %vm1711_vm0 = vcmp.ge.s32.totalorder %v5103_v16, %v1710_v34  ;;  %v3627_v34 = vld [vmem:[#allocation13 + $0x30] sm:$0xff] }
 0xc05   : > { %2181 = vmatpush.msra.mxu2 %v5206_v61 }
 0xc06   : > { %vm1714_vm15 = vcmp.lt.s32.totalorder %v5103_v16, %v1713_v11  ;;  %v3626_v11 = vld [vmem:[#allocation13 + $0x38] sm:$0xff] }
 0xc07   : > { %2182 = vmatpush.msra.mxu2 %v5209_v43  ;;  %vm1715_vm2 = vmand %vm1711_vm0, %vm1714_vm15  ;;  %vm2319_vm15 = vcmask 0  }
 0xc08   : > { %v3293_v13 = vsel %vm1715_vm2, 1.0, %v5452_v62  ;;  %v5515_v62 = vld [vmem:[#allocation46_spill] sm:$0xff] }
 0xc09   : > { %2183 = vmatpush.msra.mxu2 %v5212_v47 }
 0xc0b   : > { %2184 = vmatpush.msra.mxu2 %v5215_v56 }
 0xc0d   : > { %2185 = vmatpush.msra.mxu2 %v5218_v49 }
 0xc0f   : > { %2186 = vmatpush.msra.mxu2 %v5221_v55 }
 0xc11   : > { %2187 = vmatpush.msra.mxu2 %v5224_v26 }
 0xc13   : > { %2188 = vmatpush.msra.mxu2 %v5228_v33 }
 0xc15   : > { %2189 = vmatpush.msra.mxu2 %v5232_v44 }
 0xc17   : > { %2190 = vmatpush.msra.mxu2 %v5239_v17 }
 0xc19   : > { %2191 = vmatpush.msra.mxu2 %v5242_v21 }
 0xc1b   : > { %2192 = vmatpush.msra.mxu2 %v5244_v25 }
 0xc7e   : > { %v2099_v15 = vpop.f32.mrf.mxu3  ;;  %v2075_v4 = vpop.f32.mrf.mxu2 }
 0xc7f   : > { %v2102_v1 = vmul.f32 %v3293_v13, %v2099_v15  ;;  %v2076_v36 = vadd.f32 %v5514_v37, %v2075_v4  ;;  %v3628_v15 = vld [vmem:[#allocation13 + $0x28] sm:$0xff] }
 0xc81   : > { %2135 = vmatmul.f32.vlgmr.msrb.gmra.mxu0 %v2102_v1  ;;  %v3629_v1 = vld [vmem:[#allocation13 + $0x20] sm:$0xff] }
 0xc82   : > { %2465 = vmatpush.msrb.mxu0 %v4801_v38 }
 0xc84   : > { %2466 = vmatpush.msrb.mxu0 %v5513_v7 }
 0xcfe   : > { %v2136_v31 = vpop.f32.mrf.mxu0 }
 0xcff   : > { %v2139_v60 = vadd.f32 %v2136_v31, %v2076_v36  ;;  %v3630_v31 = vld [vmem:[#allocation11 + $0x38] sm:$0xff] }
 0xd01   : > { %v2140_v38 = vmax.f32 %v2139_v60, 0.0  ;;  %v3631_v60 = vld [vmem:[#allocation11 + $0x30] sm:$0xff] }
 0xd03   : > { %2157 = vmatmul.f32.vlgmr.msra.gmra.mxu1 %v2140_v38  ;;  %2193 = vmatmul.f32.vlgmr.msra.gmra.mxu2 %v2140_v38  ;;  %v3632_v38 = vld [vmem:[#allocation11 + $0x28] sm:$0xff] }
 0xd80   : > { %v2158_v7 = vpop.f32.mrf.mxu1 }
 0xd81   : > { %v2159_v63 = vadd.f32 %v5515_v62, %v2158_v7 }
 0xd86   : > { %v2194_v12 = vpop.f32.mrf.mxu2 }
 0xd87   : > { %v2197_v48 = vmul.f32 %v3293_v13, %v2194_v12  ;;  %v3633_v12 = vld [vmem:[#allocation11 + $0x20] sm:$0xff] }
 0xd89   : > { %2230 = vmatmul.f32.vlgmr.msra.gmra.mxu3 %v2197_v48 }
 0xd8a   : > { %2545 = vmatpush.msra.mxu3 %v3626_v11 }
 0xd8c   : > { %2546 = vmatpush.msra.mxu3 %v3627_v34 }
 0xd8e   : > { %2547 = vmatpush.msra.mxu3 %v3628_v15 }
 0xd90   : > { %2548 = vmatpush.msra.mxu3 %v3629_v1 }
 0xe0c   : > { %v2231_v4 = vpop.f32.mrf.mxu3 }
 0xe0d   : > { %v2234_v37 = vadd.f32 %v2231_v4, %v2159_v63  ;;  %v2348_v4 = vld [vmem:[#allocation10 + $0x18] sm:$0xff] }
 0xe0e   : > { %2364 = vmatpush.msrb.mxu2 %v2348_v4 }
 0xe0f   : > { %v5251_v36 = vadd.f32 %v2234_v37, %v5105_v40  ;;  %v2347_v37 = vld [vmem:[#allocation10 + $0x10] sm:$0xff] }
 0xe10   : > { %2365 = vmatpush.msrb.mxu2 %v2347_v37 }
 0xe11   : > { %3307 = vmatmul.msk.f32.vlgmr.msra.gmra.mxu0 %vm1225_vm1, %v5251_v36  ;;  %v2321_v13 = vsel %vm1225_vm1, %v5251_v36, 0.0 }
 0xe12   : > { %2322 = vadd.xlane.f32.xlu1 %v2321_v13  ;;  %2565 = vmatpush.msra.mxu0 %v3630_v31  ;;  %v2346_v13 = vld [vmem:[#allocation10 + $0x8] sm:$0xff]  ;;  %v2345_v31 = vld [vmem:[#allocation10] sm:$0xff] }
 0xe13   : > { %2366 = vmatpush.msrb.mxu2 %v2346_v13 }
 0xe14   : > { %2566 = vmatpush.msra.mxu0 %v3631_v60  ;;  %v3634_v60 = vld [vmem:[#allocation11 + $0x18] sm:$0xff] }
 0xe15   : > { %2367 = vmatpush.msrb.mxu2 %v2345_v31 }
 0xe16   : > { %2567 = vmatpush.msra.mxu0 %v3632_v38 }
 0xe17   : > { %2506 = vmatpush.msra.mxu2 %v3634_v60 }
 0xe18   : > { %2568 = vmatpush.msra.mxu0 %v3633_v12 }
 0xe85   : > { %v2323_v62 = vpop.xlane.xlu1 %2322 }
 0xe86   : > { %v2324_v63 = vmul.f32 %v2323_v62, %v4743_v23  ;;  %v3635_v62 = vld [vmem:[#allocation11 + $0x10] sm:$0xff] }
 0xe87   : > { %2507 = vmatpush.msra.mxu2 %v3635_v62 }
 0xe88   : > { %v2325_v40 = vsub.f32 %v5251_v36, %v2324_v63 }
 0xe8a   : > { %v2326_v48 = vmul.f32 %v2325_v40, %v2325_v40 }
 0xe8c   : > { %v2327_v11 = vsel %vm1225_vm1, %v2326_v48, 0.0  ;;  %v3637_v48 = vld [vmem:[#allocation11] sm:$0xff] }
 0xe8d   : > { %2328 = vadd.xlane.f32.xlu2 %v2327_v11 }
 0xe8e   : > { %v2256_v34 = vpop.f32.mrf.mxu0 }
 0xe8f   : > { %v2259_v15 = vmul.f32 2.0, %v2256_v34  ;;  %v5516_v34 = vcvt.s32.f32 %v5103_v16 }
 0xe91   : > { %v2260_v1 = vsub.f32 %v5063_v53, %v2259_v15  ;;  %v3636_v53 = vld [vmem:[#allocation11 + $0x8] sm:$0xff] }
 0xe92   : > { %2508 = vmatpush.msra.mxu2 %v3636_v53 }
 0xe93   : > { %v2261_v7 = vsel %vm1316_vm13, %v2260_v1, inf }
 0xe94   : > { %2262 = vmin.xlane.f32.xlu1 %v2261_v7  ;;  %2509 = vmatpush.msra.mxu2 %v3637_v48  ;;  %v3638_v48 = vld [vmem:[#allocation13 + $0x58] sm:$0xff] }
 0xf00   : > { %v2329_v38 = vpop.xlane.xlu2 %2328 }
 0xf01   : > { %v2330_v12 = vmul.f32 %v2329_v38, %v4743_v23 }
 0xf03   : > { %v2331_v63 = vadd.f32 1e-05, %v2330_v12 }
 0xf05   : > { %3606 = vrsqrt.f32 %v2331_v63  ;;  %vm2338_vm5 = vweird.f32 %v2331_v63 }
 0xf07   : > { %v2263_v11 = vpop.xlane.xlu1 %2262 }
 0xf08   : > { %vm2264_vm3 = vcmp.le.f32.partialorder %v2260_v1, %v2263_v11  ;;  %v3639_v11 = vld [vmem:[#allocation13 + $0x50] sm:$0xff] }
 0xf09   : > { %v2265_v15 = vsel %vm2264_vm3, %v5516_v34, 16.0  ;;  %v3640_v34 = vld [vmem:[#allocation13 + $0x48] sm:$0xff] }
 0xf0a   : > { %v2266_v7 = vsel %vm1316_vm13, %v2265_v15, inf  ;;  %v3641_v15 = vld [vmem:[#allocation13 + $0x40] sm:$0xff] }
 0xf0b   : > { %v3607_v4 = vpop.eup %3606  ;;  %2267 = vmin.xlane.f32.xlu2 %v2266_v7  ;;  %v2281_v7 = vld [vmem:[#allocation22] sm:$0xff] }
 0xf0c   : > { %v2333_v37 = vmul.f32 %v3607_v4, %v2331_v63  ;;  %vm2339_vm4 = vweird.f32 %v3607_v4  ;;  %v2282_v63 = vld [vmem:[#allocation22 + $0x8] sm:$0xff] }
 0xf0d   : > { %vm2340_vm6 = vmor %vm2338_vm5, %vm2339_vm4  ;;  %2300 = vmatpush.msrb.mxu1 %v2282_v63 }
 0xf0e   : > { %v2334_v13 = vmul.f32 %v3607_v4, %v2333_v37 }
 0xf0f   : > { %2301 = vmatpush.msrb.mxu1 %v2281_v7 }
 0xf10   : > { %v2335_v31 = vmul.f32 0.5, %v2334_v13 }
 0xf12   : > { %v2336_v60 = vsub.f32 1.5, %v2335_v31 }
 0xf14   : > { %v2337_v38 = vmul.f32 %v3607_v4, %v2336_v60 }
 0xf16   : > { %v2341_v12 = vsel %vm2340_vm6, %v3607_v4, %v2337_v38  ;;  %v3645_v4 = vld [vmem:[#allocation13] sm:$0xff] }
 0xf17   : > { %v2342_v62 = vmul.f32 %v2341_v12, %v2325_v40  ;;  %v3642_v40 = vld [vmem:[#allocation13 + $0x18] sm:$0xff]  ;;  %v5518_v12 = vmov 0.0  }
 0xf18   : > { %2483 = vmatpush.msra.mxu1 %v3642_v40 }
 0xf19   : > { %v2343_v53 = vmul.f32 %v2342_v62, %v4786_v28  ;;  %v3643_v28 = vld [vmem:[#allocation13 + $0x10] sm:$0xff] }
 0xf1a   : > { %2484 = vmatpush.msra.mxu1 %v3643_v28 }
 0xf1b   : > { %v2344_v1 = vadd.f32 %v2343_v53, %v4790_v32  ;;  %v3644_v32 = vld [vmem:[#allocation13 + $0x8] sm:$0xff]  ;;  %v3646_v53 = vld [vmem:[#allocation11 + $0x58] sm:$0xff] }
 0xf1c   : > { %2485 = vmatpush.msra.mxu1 %v3644_v32 }
 0xf1d   : > { %3311 = vmatmul.msk.f32.vlgmr.msrb.gmra.mxu2 %vm1225_vm1, %v2344_v1  ;;  %v3647_v1 = vld [vmem:[#allocation11 + $0x50] sm:$0xff] }
 0xf1e   : > { %2624 = vmatpush.msrb.mxu2 %v3638_v48  ;;  %2486 = vmatpush.msra.mxu1 %v3645_v4  ;;  %v3648_v48 = vld [vmem:[#allocation11 + $0x48] sm:$0xff] }
 0xf20   : > { %2625 = vmatpush.msrb.mxu2 %v3639_v11  ;;  %v3649_v11 = vld [vmem:[#allocation11 + $0x40] sm:$0xff] }
 0xf22   : > { %2626 = vmatpush.msrb.mxu2 %v3640_v34 }
 0xf24   : > { %2627 = vmatpush.msrb.mxu2 %v3641_v15 }
 0xf7e   : > { %v2268_v37 = vpop.xlane.xlu2 %2267 }
 0xf7f   : > { %vm3336_vm7 = vcmp.lt.s32.totalorder %v2268_v37, 0  ;;  %v3337_v13 = vceil.f32 %v2268_v37  ;;  %v3338_v31 = vfloor.f32 %v2268_v37 }
 0xf81   : > { %v3339_v60 = vsel %vm3336_vm7, %v3337_v13, %v3338_v31 }
 0xf82   : > { %v5277_v38 = vcvt.f32.s32 %v3339_v60 }
 0xf84   : > { %2318 = vst.msk [vmem:[%s1065_s15] sm:$0xff] %vm2317_vm8, %v5277_v38  ;;  %vm2278_vm9 = vcmp.eq.s32.totalorder %v5103_v16, %v5277_v38 }
 0xf85   : > { %v3309_v62 = vsel %vm2278_vm9, 1.0, %v5518_v12 }
 0xf86   : > { %3310 = vmatmul.msk.f32.vlgmr.msrb.gmra.mxu1 %vm1316_vm13, %v3309_v62 }
 0xf87   : > { %2604 = vmatpush.msrb.mxu1 %v3646_v53 }
 0xf89   : > { %2605 = vmatpush.msrb.mxu1 %v3647_v1 }
 0xf8b   : > { %2606 = vmatpush.msrb.mxu1 %v3648_v48 }
 0xf8d   : > { %2607 = vmatpush.msrb.mxu1 %v3649_v11 }
 0xf8e   : > { %3316 = vmatmul.msk.f32.vlgmr.msra.gmra.mxu1 %vm1225_vm1, %v5251_v36 }
 0xf8f   : > { %2735 = vmatpush.msra.mxu1 %v5134_v27 }
 0xf91   : > { %2736 = vmatpush.msra.mxu1 %v5136_v54 }
 0xf93   : > { %2737 = vmatpush.msra.mxu1 %v5139_v3 }
 0xf95   : > { %2738 = vmatpush.msra.mxu1 %v5142_v57 }
 0xf97   : > { %2739 = vmatpush.msra.mxu1 %v5145_v0 }
 0xf99   : > { %2740 = vmatpush.msra.mxu1 %v5148_v42 }
 0xf9b   : > { %2741 = vmatpush.msra.mxu1 %v5151_v45 }
 0xf9d   : > { %2742 = vmatpush.msra.mxu1 %v5154_v14 }
 0xf9f   : > { %2743 = vmatpush.msra.mxu1 %v5157_v41 }
 0xfa0   : > { %v2369_v34 = vpop.f32.mrf.mxu2 }
 0xfa1   : > { %3314 = vmatmul.msk.f32.vlgmr.msrb.gmra.mxu3 %vm1225_vm1, %v2369_v34  ;;  %2744 = vmatpush.msra.mxu1 %v5160_v5 }
 0xfa3   : > { %2745 = vmatpush.msra.mxu1 %v5163_v59 }
 0xfa5   : > { %2746 = vmatpush.msra.mxu1 %v5166_v18 }
 0xfa7   : > { %2747 = vmatpush.msra.mxu1 %v5170_v2 }
 0xfa9   : > { %3318 = vmatmul.msk.f32.vlgmr.msra.gmra.mxu3 %vm1225_vm1, %v5251_v36  ;;  %2748 = vmatpush.msra.mxu1 %v5176_v46 }
 0xfab   : > { %2749 = vmatpush.msra.mxu1 %v5180_v50 }
 0xfad   : > { %2750 = vmatpush.msra.mxu1 %v5185_v39 }
0x1003   : > { %v2303_v27 = vpop.f32.mrf.mxu1 }
0x1004   : > { %v2306_v54 = vsub.f32 %v5251_v36, %v2303_v27 }
0x1006   : > { %v2307_v3 = vmul.f32 %v2306_v54, %v2306_v54 }
0x1008   : > { %v2308_v57 = vsel %vm1225_vm1, %v2307_v3, 0.0 }
0x1009   : > { %2309 = vadd.xlane.f32.xlu2 %v2308_v57 }
0x1024   : > { %v2392_v0 = vpop.f32.mrf.mxu3 }
0x1025   : > { %v2395_v42 = vmul.f32 0.17677669, %v2392_v0 }
0x1027   : > { %v2396_v45 = vsel %vm1316_vm13, %v2395_v42, -inf }
0x1028   : > { %v2397_v14 = vrot.slane %v2396_v45, 4 }
0x102a   : > { %v2398_v41 = vmax.f32 %v2396_v45, %v2397_v14 }
0x102c   : > { %v2399_v5 = vrot.slane %v2398_v41, 2 }
0x102e   : > { %v2400_v59 = vmax.f32 %v2398_v41, %v2399_v5 }
0x1030   : > { %v2401_v18 = vrot.slane %v2400_v59, 1 }
0x1032   : > { %v2402_v2 = vmax.f32 %v2400_v59, %v2401_v18 }
0x1034   : > { %v2403_v46 = vsub.f32 %v2395_v42, %v2402_v2 }
0x1036   : > { %v2404_v50 = vmul.f32 1.442695, %v2403_v46 }
0x1038   : > { %3608 = vpow2.f32 %v2404_v50 }
0x103e   : > { %v3609_v39 = vpop.eup %3608 }
0x103f   : > { %v2406_v15 = vsel %vm1316_vm13, %v3609_v39, 0.0 }
0x1040   : > { %v2407_v63 = vrot.slane %v2406_v15, 4 }
0x1042   : > { %v2408_v7 = vadd.f32 %v2407_v63, %v2406_v15 }
0x1044   : > { %v2409_v40 = vrot.slane %v2408_v7, 2 }
0x1046   : > { %v2410_v28 = vadd.f32 %v2409_v40, %v2408_v7 }
0x1048   : > { %v2411_v32 = vrot.slane %v2410_v28, 1 }
0x104a   : > { %v2412_v4 = vadd.f32 %v2411_v32, %v2410_v28 }
0x104c   : > { %3610 = vrcp.f32 %v2412_v4  ;;  %v2424_v60 = vand.u32 2147483648, %v2412_v4  ;;  %v2422_v53 = vand.u32 2147483647, %v2412_v4  ;;  %vm2418_vm11 = vweird.f32 %v2412_v4 }
0x104e   : > { %v2425_v48 = vor.u32 1.1754944e-38, %v2424_v60  ;;  %vm2423_vm14 = vcmp.eq.f32.partialorder %v2422_v53, 8.507059e+37  ;;  %v2488_v60 = vpop.f32.mrf.mxu1 }
0x1052   : > { %v3611_v37 = vpop.eup %3610 }
0x1053   : > { %v2414_v13 = vmul.f32 %v3611_v37, %v2412_v4  ;;  %vm2419_vm10 = vweird.f32 %v3611_v37 }
0x1054   : > { %vm2420_vm12 = vmor %vm2418_vm11, %vm2419_vm10 }
0x1055   : > { %v2415_v31 = vsub.f32 1.0, %v2414_v13 }
0x1057   : > { %v2416_v62 = vmul.f32 %v3611_v37, %v2415_v31 }
0x1059   : > { %v2417_v1 = vadd.f32 %v3611_v37, %v2416_v62 }
0x105b   : > { %v2421_v11 = vsel %vm2420_vm12, %v3611_v37, %v2417_v1  ;;  %v2550_v37 = vpop.f32.mrf.mxu3 }
0x105c   : > { %v2426_v34 = vsel %vm2423_vm14, %v2425_v48, %v2421_v11 }
0x105d   : > { %v2427_v27 = vmul.f32 %v3609_v39, %v2426_v34 }
0x105f   : > { %v2429_v54 = vadd.f32 1e-08, %v2427_v27  ;;  %2428 = vst.msk [vmem:[%s1050_s12] sm:$0xff] %vm1316_vm13, %v2427_v27 }
0x1061   : > { %v2430_v3 = vsel %vm1316_vm13, %v2429_v54, 0.0 }
0x1062   : > { %2431 = vadd.xlane.f32.xlu0 %v2430_v3 }
0x107c   : > { %v2310_v57 = vpop.xlane.xlu2 %2309 }
0x107d   : > { %v2311_v0 = vrot.slane %v2310_v57, 4 }
0x107f   : > { %v2312_v42 = vadd.f32 %v2311_v0, %v2310_v57 }
0x1081   : > { %v2313_v45 = vrot.slane %v2312_v42, 2 }
0x1083   : > { %v2314_v14 = vadd.f32 %v2313_v45, %v2312_v42 }
0x1085   : > { %v2315_v41 = vrot.slane %v2314_v14, 1 }
0x1087   : > { %v2316_v5 = vadd.f32 %v2315_v41, %v2314_v14 }
0x1089   : > { %2320 = vst.msk [vmem:[%s1068_s17] sm:$0x1] %vm2319_vm15, %v2316_v5 }
0x10d5   : > { %v2432_v59 = vpop.xlane.xlu0 %2431 }
0x10d6   : > { %3612 = vrcp.f32 %v2432_v59  ;;  %v2444_v50 = vand.u32 2147483648, %v2432_v59  ;;  %v2442_v15 = vand.u32 2147483647, %v2432_v59  ;;  %vm2438_vm2 = vweird.f32 %v2432_v59 }
0x10d8   : > { %v2445_v7 = vor.u32 1.1754944e-38, %v2444_v50  ;;  %vm2443_vm4 = vcmp.eq.f32.partialorder %v2442_v15, 8.507059e+37 }
0x10dc   : > { %v3613_v18 = vpop.eup %3612 }
0x10dd   : > { %v2434_v2 = vmul.f32 %v3613_v18, %v2432_v59  ;;  %vm2439_vm0 = vweird.f32 %v3613_v18 }
0x10de   : > { %vm2440_vm3 = vmor %vm2438_vm2, %vm2439_vm0 }
0x10df   : > { %v2435_v46 = vsub.f32 1.0, %v2434_v2 }
0x10e1   : > { %v2436_v39 = vmul.f32 %v3613_v18, %v2435_v46 }
0x10e3   : > { %v2437_v63 = vadd.f32 %v3613_v18, %v2436_v39 }
0x10e5   : > { %v2441_v40 = vsel %vm2440_vm3, %v3613_v18, %v2437_v63 }
0x10e6   : > { %v2446_v28 = vsel %vm2443_vm4, %v2445_v7, %v2441_v40 }
0x10e7   : > { %v2447_v32 = vmul.f32 %v2446_v28, %v2429_v54 }
0x10e9   : > { %3315 = vmatmul.msk.f32.vlgmr.msrb.gmra.mxu0 %vm1316_vm13, %v2447_v32 }
0x10ea   : > { %2710 = vmatpush.msrb.mxu0 %v5114_v22 }
0x10ec   : > { %2711 = vmatpush.msrb.mxu0 %v5116_v51 }
0x10ee   : > { %2712 = vmatpush.msrb.mxu0 %v5119_v8 }
0x10f0   : > { %2713 = vmatpush.msrb.mxu0 %v5122_v9 }
0x1166   : > { %v2468_v4 = vpop.f32.mrf.mxu0 }
0x1167   : > { %3317 = vmatmul.msk.f32.vlgmr.msra.gmra.mxu2 %vm1225_vm1, %v2468_v4  ;;  %3319 = vmatmul.msk.f32.vlgmr.msra.gmra.mxu0 %vm1225_vm1, %v2468_v4 }
0x1168   : > { %3320 = vmatmul.msk.f32.vlgmr.msrb.gmra.mxu1 %vm1225_vm1, %v2468_v4 }
0x116f   : > { %3321 = vmatmul.msk.f32.vlgmr.msrb.gmra.mxu2 %vm1225_vm1, %v5251_v36 }
0x11e4   : > { %v2570_v13 = vpop.f32.mrf.mxu0 }
0x11e5   : > { %v2571_v31 = vadd.f32 %v2570_v13, %v2550_v37  ;;  %v2609_v2 = vpop.f32.mrf.mxu1 }
0x11e6   : > { %v2610_v7 = vadd.f32 %v2609_v2, %v4944_v20  ;;  %v2759_v2 = vld [vmem:[#allocation17 + $0x10] sm:$0xff] }
0x11e7   : > { %v2573_v22 = vadd.f32 %v2571_v31, %v4936_v52 }
0x11e9   : > { %v2574_v51 = vsub.f32 0.0, %v2573_v22 }
0x11ea   : > { %v2511_v8 = vpop.f32.mrf.mxu2 }
0x11eb   : > { %v2575_v62 = vmul.f32 1.442695, %v2574_v51  ;;  %v2512_v9 = vadd.f32 %v2511_v8, %v2488_v60 }
0x11ed   : > { %3614 = vpow2.f32 %v2575_v62  ;;  %v2514_v53 = vadd.f32 %v2512_v9, %v4939_v30 }
0x11ef   : > { %v2515_v1 = vsub.f32 0.0, %v2514_v53 }
0x11f1   : > { %v2516_v48 = vmul.f32 1.442695, %v2515_v1 }
0x11f2   : > { %v2629_v30 = vpop.f32.mrf.mxu2 }
0x11f3   : > { %v3615_v11 = vpop.eup %3614  ;;  %3616 = vpow2.f32 %v2516_v48  ;;  %v2630_v39 = vadd.f32 %v2629_v30, %v4942_v10 }
0x11f4   : > { %v2577_v34 = vadd.f32 1.0, %v3615_v11  ;;  %v2666_v11 = vld [vmem:[#allocation14 + $0x18] sm:$0xff] }
0x11f5   : > { %2686 = vmatpush.msrb.mxu3 %v2666_v11 }
0x11f6   : > { %3618 = vrcp.f32 %v2577_v34  ;;  %v2589_v28 = vand.u32 2147483648, %v2577_v34  ;;  %vm2583_vm9 = vweird.f32 %v2577_v34  ;;  %v2587_v32 = vand.u32 2147483647, %v2577_v34 }
0x11f8   : > { %v2590_v13 = vor.u32 1.1754944e-38, %v2589_v28  ;;  %vm2588_vm11 = vcmp.eq.f32.partialorder %v2587_v32, 8.507059e+37  ;;  %v2841_v28 = vld [vmem:[#allocation28 + $0x38] sm:$0xff]  ;;  %v2840_v32 = vld [vmem:[#allocation28 + $0x30] sm:$0xff] }
0x11f9   : > { %v3617_v27 = vpop.eup %3616 }
0x11fa   : > { %v2518_v54 = vadd.f32 1.0, %v3617_v27  ;;  %v2664_v27 = vld [vmem:[#allocation14 + $0x8] sm:$0xff] }
0x11fc   : > { %3620 = vrcp.f32 %v2518_v54  ;;  %v3619_v3 = vpop.eup %3618  ;;  %v2530_v14 = vand.u32 2147483648, %v2518_v54  ;;  %v2528_v5 = vand.u32 2147483647, %v2518_v54  ;;  %vm2524_vm5 = vweird.f32 %v2518_v54 }
0x11fd   : > { %v2579_v57 = vmul.f32 %v3619_v3, %v2577_v34  ;;  %vm2584_vm8 = vweird.f32 %v3619_v3  ;;  %v2665_v34 = vld [vmem:[#allocation14 + $0x10] sm:$0xff] }
0x11fe   : > { %v2531_v46 = vor.u32 1.1754944e-38, %v2530_v14  ;;  %vm2529_vm7 = vcmp.eq.f32.partialorder %v2528_v5, 8.507059e+37  ;;  %vm2585_vm10 = vmor %vm2583_vm9, %vm2584_vm8  ;;  %2687 = vmatpush.msrb.mxu3 %v2665_v34  ;;  %v2762_v14 = vld [vmem:[#allocation17 + $0x28] sm:$0xff]  ;;  %v2760_v5 = vld [vmem:[#allocation17 + $0x18] sm:$0xff] }
0x11ff   : > { %v2580_v42 = vsub.f32 1.0, %v2579_v57 }
0x1200   : > { %2688 = vmatpush.msrb.mxu3 %v2664_v27 }
0x1201   : > { %v2581_v59 = vmul.f32 %v3619_v3, %v2580_v42 }
0x1202   : > { %v3621_v52 = vpop.eup %3620 }
0x1203   : > { %v2520_v0 = vmul.f32 %v3621_v52, %v2518_v54  ;;  %vm2525_vm13 = vweird.f32 %v3621_v52  ;;  %v2582_v63 = vadd.f32 %v3619_v3, %v2581_v59 }
0x1204   : > { %vm2526_vm6 = vmor %vm2524_vm5, %vm2525_vm13 }
0x1205   : > { %v2521_v45 = vsub.f32 1.0, %v2520_v0  ;;  %v2586_v37 = vsel %vm2585_vm10, %v3619_v3, %v2582_v63  ;;  %v2845_v63 = vld [vmem:[#allocation28 + $0x58] sm:$0xff] }
0x1206   : > { %v2591_v31 = vsel %vm2588_vm11, %v2590_v13, %v2586_v37  ;;  %v2838_v37 = vld [vmem:[#allocation28 + $0x20] sm:$0xff]  ;;  %v3556_v13 = vld [vmem:[#allocation16] ss:$0 sm:$0xff] }
0x1207   : > { %v2522_v41 = vmul.f32 %v3621_v52, %v2521_v45  ;;  %v2635_v22 = vsub.f32 1.0, %v2591_v31  ;;  %v2637_v10 = vmul.f32 %v2591_v31, %v5251_v36  ;;  %v2663_v36 = vld [vmem:[#allocation14] sm:$0xff]  ;;  %v2270_v45 = vmul.u32 8, %v5277_v38  ;;  %v2837_v31 = vld [vmem:[#allocation28 + $0x18] sm:$0xff] }
0x1208   : > { %2689 = vmatpush.msrb.mxu3 %v2663_v36 }
0x1209   : > { %v2523_v18 = vadd.f32 %v3621_v52, %v2522_v41  ;;  %v2761_v41 = vld [vmem:[#allocation17 + $0x20] sm:$0xff]  ;;  %vm2271_vm2 = vcmp.ge.s32.totalorder %v5103_v16, %v2270_v45 }
0x120a   : > { %2813 = vmatpush.msra.mxu3 %v5195_v19 }
0x120b   : > { %v2527_v50 = vsel %vm2526_vm6, %v3621_v52, %v2523_v18 }
0x120c   : > { %v2532_v15 = vsel %vm2529_vm7, %v2531_v46, %v2527_v50  ;;  %2814 = vmatpush.msra.mxu3 %v5197_v29  ;;  %v2757_v46 = vld [vmem:[#allocation17] sm:$0xff]  ;;  %v2849_v50 = vld [vmem:[#allocation28 + $0x78] sm:$0xff] }
0x120d   : > { %v2632_v40 = vmul.f32 %v2630_v39, %v2532_v15  ;;  %v2848_v39 = vld [vmem:[#allocation28 + $0x70] sm:$0xff]  ;;  %2850 = vmatpush.msra.mxu0 %v2849_v50  ;;  %v2846_v15 = vld [vmem:[#allocation28 + $0x60] sm:$0xff] }
0x120e   : > { %2815 = vmatpush.msra.mxu3 %v5200_v35 }
0x120f   : > { %v2633_v4 = vadd.f32 %v2632_v40, %v2610_v7  ;;  %2851 = vmatpush.msra.mxu0 %v2848_v39  ;;  %v2843_v7 = vld [vmem:[#allocation28 + $0x48] sm:$0xff]  ;;  %v2842_v40 = vld [vmem:[#allocation28 + $0x40] sm:$0xff] }
0x1210   : > { %2816 = vmatpush.msra.mxu3 %v5203_v58 }
0x1211   : > { %3622 = vtanh.f32 %v2633_v4  ;;  %v2839_v4 = vld [vmem:[#allocation28 + $0x28] sm:$0xff] }
0x1212   : > { %2817 = vmatpush.msra.mxu3 %v5206_v61 }
0x1214   : > { %2818 = vmatpush.msra.mxu3 %v5209_v43 }
0x1216   : > { %2819 = vmatpush.msra.mxu3 %v5212_v47 }
0x1217   : > { %v3623_v51 = vpop.eup %3622 }
0x1218   : > { %v2636_v60 = vmul.f32 %v3623_v51, %v2635_v22  ;;  %2820 = vmatpush.msra.mxu3 %v5215_v56  ;;  %v2772_v56 = vld [vmem:[#allocation17 + $0x78] sm:$0xff]  ;;  %v2836_v51 = vld [vmem:[#allocation28 + $0x10] sm:$0xff] }
0x1219   : > { %2777 = vmatpush.msra.mxu2 %v2772_v56 }
0x121a   : > { %v5333_v8 = vadd.f32 %v2637_v10, %v2636_v60  ;;  %2821 = vmatpush.msra.mxu3 %v5218_v49  ;;  %v2771_v49 = vld [vmem:[#allocation17 + $0x70] sm:$0xff] }
0x121b   : > { %2778 = vmatpush.msra.mxu2 %v2771_v49 }
0x121c   : > { %v2639_v20 = vsel %vm1225_vm1, %v5333_v8, 0.0  ;;  %2822 = vmatpush.msra.mxu3 %v5221_v55  ;;  %v2770_v55 = vld [vmem:[#allocation17 + $0x68] sm:$0xff] }
0x121d   : > { %2640 = vadd.xlane.f32.xlu0 %v2639_v20  ;;  %2779 = vmatpush.msra.mxu2 %v2770_v55 }
0x121e   : > { %2823 = vmatpush.msra.mxu3 %v5224_v26  ;;  %v2769_v26 = vld [vmem:[#allocation17 + $0x60] sm:$0xff] }
0x121f   : > { %2780 = vmatpush.msra.mxu2 %v2769_v26 }
0x1220   : > { %2824 = vmatpush.msra.mxu3 %v5228_v33  ;;  %v2767_v33 = vld [vmem:[#allocation17 + $0x50] sm:$0xff] }
0x1222   : > { %2825 = vmatpush.msra.mxu3 %v5232_v44  ;;  %v2272_v44 = vadd.s32 1, %v5277_v38  ;;  %v2758_v38 = vld [vmem:[#allocation17 + $0x8] sm:$0xff] }
0x1224   : > { %2826 = vmatpush.msra.mxu3 %v5239_v17  ;;  %v2765_v17 = vld [vmem:[#allocation17 + $0x40] sm:$0xff]  ;;  %v2273_v42 = vmul.u32 8, %v2272_v44 }
0x1226   : > { %2827 = vmatpush.msra.mxu3 %v5242_v21  ;;  %v2764_v21 = vld [vmem:[#allocation17 + $0x38] sm:$0xff]  ;;  %vm2274_vm0 = vcmp.lt.s32.totalorder %v5103_v16, %v2273_v42 }
0x1227   : > { %vm2275_vm3 = vmand %vm2271_vm2, %vm2274_vm0  ;;  %v2847_v16 = vld [vmem:[#allocation28 + $0x68] sm:$0xff] }
0x1228   : > { %2828 = vmatpush.msra.mxu3 %v5244_v25  ;;  %v2763_v25 = vld [vmem:[#allocation17 + $0x30] sm:$0xff]  ;;  %v3308_v30 = vsel %vm2275_vm3, 1.0, %v5518_v12  ;;  %2852 = vmatpush.msra.mxu0 %v2847_v16  ;;  %v2844_v12 = vld [vmem:[#allocation28 + $0x50] sm:$0xff] }
0x122a   : > { %2853 = vmatpush.msra.mxu0 %v2846_v15 }
0x122c   : > { %2854 = vmatpush.msra.mxu0 %v2845_v63 }
0x122e   : > { %2855 = vmatpush.msra.mxu0 %v2844_v12 }
0x1230   : > { %2856 = vmatpush.msra.mxu0 %v2843_v7 }
0x1232   : > { %2857 = vmatpush.msra.mxu0 %v2842_v40 }
0x1234   : > { %2858 = vmatpush.msra.mxu0 %v2841_v28 }
0x1236   : > { %2859 = vmatpush.msra.mxu0 %v2840_v32 }
0x1238   : > { %2860 = vmatpush.msra.mxu0 %v2839_v4 }
0x123a   : > { %2861 = vmatpush.msra.mxu0 %v2838_v37 }
0x123c   : > { %2862 = vmatpush.msra.mxu0 %v2837_v31 }
0x123e   : > { %2863 = vmatpush.msra.mxu0 %v2836_v51 }
0x1290   : > { %v2641_v62 = vpop.xlane.xlu0 %2640 }
0x1291   : > { %v2642_v9 = vmul.f32 %v2641_v62, %v4743_v23 }
0x1293   : > { %v2643_v53 = vsub.f32 %v5333_v8, %v2642_v9  ;;  %v2835_v9 = vld [vmem:[#allocation28 + $0x8] sm:$0xff] }
0x1294   : > { %2864 = vmatpush.msra.mxu0 %v2835_v9 }
0x1295   : > { %v2644_v1 = vmul.f32 %v2643_v53, %v2643_v53 }
0x1297   : > { %v2645_v48 = vsel %vm1225_vm1, %v2644_v1, 0.0 }
0x1298   : > { %2646 = vadd.xlane.f32.xlu1 %v2645_v48 }
0x130b   : > { %v2647_v54 = vpop.xlane.xlu1 %2646 }
0x130c   : > { %v2648_v3 = vmul.f32 %v2647_v54, %v4743_v23 }
0x130e   : > { %v2649_v57 = vadd.f32 1e-05, %v2648_v3 }
0x1310   : > { %3624 = vrsqrt.f32 %v2649_v57  ;;  %vm2656_vm14 = vweird.f32 %v2649_v57 }
0x1316   : > { %v3625_v52 = vpop.eup %3624 }
0x1317   : > { %v2651_v0 = vmul.f32 %v3625_v52, %v2649_v57  ;;  %vm2657_vm12 = vweird.f32 %v3625_v52 }
0x1318   : > { %vm2658_vm15 = vmor %vm2656_vm14, %vm2657_vm12 }
0x1319   : > { %v2652_v19 = vmul.f32 %v3625_v52, %v2651_v0 }
0x131b   : > { %v2653_v23 = vmul.f32 0.5, %v2652_v19 }
0x131d   : > { %v2654_v29 = vsub.f32 1.5, %v2653_v23 }
0x131f   : > { %v2655_v35 = vmul.f32 %v3625_v52, %v2654_v29 }
0x1321   : > { %v2659_v58 = vsel %vm2658_vm15, %v3625_v52, %v2655_v35 }
0x1322   : > { %v2660_v61 = vmul.f32 %v2659_v58, %v2643_v53  ;;  %v2834_v53 = vld [vmem:[#allocation28] sm:$0xff] }
0x1323   : > { %2865 = vmatpush.msra.mxu0 %v2834_v53 }
0x1324   : > { %v2661_v43 = vmul.f32 %v2660_v61, %v4996_v24  ;;  %v2768_v24 = vld [vmem:[#allocation17 + $0x58] sm:$0xff] }
0x1325   : > { %2781 = vmatpush.msra.mxu2 %v2768_v24 }
0x1326   : > { %v2662_v47 = vadd.f32 %v2661_v43, %v5000_v6  ;;  %v2766_v6 = vld [vmem:[#allocation17 + $0x48] sm:$0xff] }
0x1327   : > { %2782 = vmatpush.msra.mxu2 %v2767_v33 }
0x1328   : > { %3322 = vmatmul.msk.f32.vlgmr.msrb.gmra.mxu3 %vm1225_vm1, %v2662_v47  ;;  %3323 = vmatmul.msk.f32.vlgmr.msrb.gmra.mxu0 %vm1225_vm1, %v2662_v47 }
0x1329   : > { %2783 = vmatpush.msra.mxu2 %v2766_v6 }
0x132b   : > { %2784 = vmatpush.msra.mxu2 %v2765_v17 }
0x132d   : > { %2785 = vmatpush.msra.mxu2 %v2764_v21 }
0x132f   : > { %2786 = vmatpush.msra.mxu2 %v2763_v25 }
0x1331   : > { %2787 = vmatpush.msra.mxu2 %v2762_v14 }
0x1333   : > { %2788 = vmatpush.msra.mxu2 %v2761_v41 }
0x1335   : > { %2789 = vmatpush.msra.mxu2 %v2760_v5 }
0x1337   : > { %2790 = vmatpush.msra.mxu2 %v2759_v2 }
0x1339   : > { %2791 = vmatpush.msra.mxu2 %v2758_v38 }
0x133b   : > { %2792 = vmatpush.msra.mxu2 %v2757_v46 }
0x13a5   : > { %v2715_v59 = vpop.f32.mrf.mxu0 }
0x13a6   : > { %v2718_v18 = vmul.f32 %v3308_v30, %v2715_v59 }
0x13a8   : > { %2751 = vmatmul.f32.vlgmr.msra.gmra.mxu1 %v2718_v18 }
0x13ab   : > { %v2691_v22 = vpop.f32.mrf.mxu3 }
0x13ac   : > { %v2692_v60 = vadd.f32 %v3556_v13, %v2691_v22 }
0x1425   : > { %v2752_v10 = vpop.f32.mrf.mxu1 }
0x1426   : > { %v2755_v20 = vadd.f32 %v2752_v10, %v2692_v60 }
0x1428   : > { %v2756_v62 = vmax.f32 %v2755_v20, 0.0 }
0x142a   : > { %2793 = vmatmul.f32.vlgmr.msra.gmra.mxu2 %v2756_v62  ;;  %2829 = vmatmul.f32.vlgmr.msra.gmra.mxu3 %v2756_v62 }
0x14ad   : > { %v2830_v1 = vpop.f32.mrf.mxu3 }
0x14ae   : > { %v2833_v48 = vmul.f32 %v3308_v30, %v2830_v1 }
0x14b0   : > { %2866 = vmatmul.f32.vlgmr.msra.gmra.mxu0 %v2833_v48 }
0x14b1   : > { %4187 = shalt.err (!%p4184_p10)
}
0x14b2   : > { %3406 = dma.vmem_to_hbm [thread:$0]  (%p4620_p0), %s2913_s18, 128, %s2915_s23, %s2879_s19   ;;  %v3557_v11 = vld [vmem:[#allocation19] ss:$0 sm:$0xff]  ;;  %v2794_v34 = vpop.f32.mrf.mxu2 }
0x14b3   : > { %s5521_s16 = sld [smem:[#allocation68_spill]]  ;;  %v2795_v27 = vadd.f32 %v3557_v11, %v2794_v34  ;;  %s1043_s25 = scalar_lea.vmem [#allocation29], %s4692_s10 }
0x14b4   : > { %s2898_s9 = sshll.u32 %s1043_s25, 4  ;;  %s2874_s18 = scalar_lea.sflag [#allocation4], %s4680_s11  ;;  %s2899_s9 = int_to_ptr.vmem [resolvable:$true] %s2898_s9 }
0x14b9   : > { %s2896_s17 = scalar_lea.hbm %s5521_s16, %s3326_s0  ;;  %s4208_s10 = scalar_lea.hbm %s5521_s16, 16 }
0x14ba   : > { %s2900_s13 = sshll.u32 %s2896_s17, 4  ;;  %s2901_s13 = int_to_ptr.hbm [resolvable:$true] %s2900_s13 }
0x14bb   : > { %s4202_s23 = sshra.s32 %s2901_s13, 4  ;;  %s4203_s23 = int_to_ptr.hbm [resolvable:$true] %s4202_s23 }
0x14bc   : > { %s4204_s19 = scalar_lea.hbm %s4203_s23, 8  ;;  %p4209_p4 = scmp.lt.s32.totalorder %s4203_s23, %s5521_s16 }
0x14bd   : > { %p4205_p11 = scmp.ne.s32.totalorder %s4203_s23, %s4204_s19  ;;  %p4210_p1 = scmp.lt.s32.totalorder %s4208_s10, %s4204_s19 }
0x14bf   : > { %p4206_p12 = pnand %p4205_p11, %p4620_p0  ;;  %p4211_p3 = por %p4210_p1, %p4209_p4 }
0x14c1   : > { %p4207_p2 = pneg %p4206_p12 }
0x14c3   : > { %p4212_p13 = pnand %p4211_p3, %p4207_p2 }
0x152d   : > { %v2867_v36 = vpop.f32.mrf.mxu0 }
0x152e   : > { %v2870_v54 = vadd.f32 %v2867_v36, %v2795_v27 }
0x1530   : > { %v2871_v3 = vadd.f32 %v2870_v54, %v5333_v8 }
0x1532   : > { %2872 = vst.msk [vmem:[%s1043_s25] sm:$0xff] %vm1225_vm1, %v2871_v3 }
0x1533   : > { %4215 = shalt.err (!%p4212_p13)
}
0x1534   : > { %3405 = dma.vmem_to_hbm [thread:$0]  (%p4620_p0), %s2899_s9, 128, %s2901_s13, %s2874_s18  }
0x1535 PF: > { %s2932_s11 = sand.u32 1, %s4282_s5   ;;  %p5522_p7 = scmp.ge.s32.totalorder %s4294_s28, 2 }
0x1536   : > { %s2933_s24 = scalar_lea.sflag [#allocation4], %s2932_s11 }
0x1537   : > { %p3463_p9 = pnand %p5522_p7, %p4628_p6 }
0x1539   : > { %p3464_p5 = pneg %p3463_p9 }
0x153b   : > { %4273 = dma.done.wait (%p3464_p5), %s2933_s24, 128  }
0x153c   : > { %4275 = vsyncadd (%p3464_p5), %s2933_s24, 4294967168  ;;  %s2943_s7 = scalar_lea.sflag [#allocation31], %s2932_s11 }
0x153d   : > { %4277 = dma.done.wait (%p3464_p5), %s2943_s7, 128  }
0x153e   : > { %4279 = vsyncadd (%p3464_p5), %s2943_s7, 4294967168  ;;  %p51_p0 = scmp.ge.s32.totalorder %s4596_s22, 4   ;;  %s5523_s5 = smov %s4286_s26 }
0x153f   : > { %s5524_s26 = smov %s4290_s27  ;;  %s5525_s27 = smov %s4608_s29 }
0x1540   : > { %s5526_s28 = smov %s4596_s22  ;;  %53 = sbr.rel (!%p51_p0) target bundleno = 42 (0x2a), region = 267 }
0x1545   :  { %2962 = vsyncpa [#allocation3], 1 }
0x1546   :  { %2964 = vsyncpa [#allocation3 + $0x1], 1 }
0x1547   :  { %2965 = vsyncpa [#allocation6], 1 }
0x1548   :  { %2967 = vsyncpa [#allocation6 + $0x1], 1 }
0x1549   :  { %2968 = vsyncpa [#allocation9], 1 }
0x154a   :  { %2969 = vsyncpa [#allocation12], 1 }
0x154b   :  { %2970 = vsyncpa [#allocation15], 1 }
0x154c   :  { %2971 = vsyncpa [#allocation18], 1 }
0x154d   :  { %2972 = vsyncpa [#allocation21], 1 }
0x154e   :  { %2973 = vsyncpa [#allocation24], 1 }
0x154f   :  { %2974 = vsyncpa [#allocation27], 1 }
0x1550   :  { %2975 = vsyncpa [#allocation4], 1 }
0x1551   :  { %2977 = vsyncpa [#allocation4 + $0x1], 1 }
0x1552   :  { %2978 = vsyncpa [#allocation31], 1 }
0x1553   :  { %2980 = vsyncpa [#allocation31 + $0x1], 1 }

</bundles_post_ra>
